<compile_context>
chip_gen: v7x
topology: tpu7x:2x2x1
jax: 0.10.0
libtpu: 0.0.40
codegen_flags: <defaults>
</compile_context>

<pallas_src>
import jax
import jax.numpy as jnp
from jax.experimental import pallas as pl
from jax.experimental.pallas import tpu as pltpu

INTER_DIMS = [1000, 500, 100]
HID_DIM = INTER_DIMS[-1]
LANE = 128
SUBLANE = 8


def _round_up(x, m):
    return (x + m - 1) // m * m


# ---------------------------------------------------------------------------
# Kernel: fused 6-layer MLP. Weights resident in VMEM, batch tile per grid step.
# ---------------------------------------------------------------------------
def ae_kernel(x_ref,
              w1, b1, w2, b2, w3, b3,      # encoder weights (in,out) bf16 / biases (1,out) f32
              w4, b4, w5, b5, w6, b6,      # decoder weights / biases
              z_ref, xo_ref):
    def lin_relu(h, w_r, b_r):
        y = jnp.dot(h.astype(w_r.dtype), w_r[...],
                    preferred_element_type=jnp.float32) + b_r[...]
        return jnp.maximum(y, 0.0)

    h = x_ref[...]                              # Dropout (eval) == identity
    # --- encoder ---
    h = lin_relu(h, w1, b1)                     # D_pad    -> 1024
    h = lin_relu(h, w2, b2)                     # 1024     -> 512
    z = lin_relu(h, w3, b3)                     # 512      -> 128
    z_ref[...] = z.astype(z_ref.dtype)
    # --- decoder ---
    h = lin_relu(z, w4, b4)                     # 128      -> 512
    h = lin_relu(h, w5, b5)                     # 512      -> 1024
    xo = lin_relu(h, w6, b6)                    # 1024     -> D_pad
    xo_ref[...] = xo.astype(xo_ref.dtype)


# ---------------------------------------------------------------------------
# Parameter construction / padding
# ---------------------------------------------------------------------------
def _layer_dims(input_dim):
    return [
        (input_dim, INTER_DIMS[0]),       # enc L1
        (INTER_DIMS[0], INTER_DIMS[1]),   # enc L2
        (INTER_DIMS[1], INTER_DIMS[2]),   # enc L3
        (INTER_DIMS[2], INTER_DIMS[1]),   # dec L1
        (INTER_DIMS[1], INTER_DIMS[0]),   # dec L2
        (INTER_DIMS[0], input_dim),       # dec L3
    ]


def make_params(key, input_dim, dtype=jnp.float32):
    """Deterministic init (PyTorch-Linear-style bounds). W is (in, out)."""
    params = []
    for (din, dout) in _layer_dims(input_dim):
        key, kw, kb = jax.random.split(key, 3)
        bound = 1.0 / jnp.sqrt(din)
        w = jax.random.uniform(kw, (din, dout), dtype, -bound, bound)
        b = jax.random.uniform(kb, (1, dout), dtype, -bound, bound)
        params.append((w, b))
    return params


def _pad_params(params, param_dtype):
    """Zero-pad every layer to lane-multiple widths; weights cast to param_dtype,
    biases kept f32."""
    padded = []
    for (w, b) in params:
        din, dout = w.shape
        din_p, dout_p = _round_up(din, LANE), _round_up(dout, LANE)
        w_p = jnp.zeros((din_p, dout_p), param_dtype)
        w_p = w_p.at[:din, :dout].set(w.astype(param_dtype))
        b_p = jnp.zeros((1, dout_p), jnp.float32)
        b_p = b_p.at[:, :dout].set(b.astype(jnp.float32))
        padded.append((w_p, b_p))
    return padded


# ---------------------------------------------------------------------------
# Wrapper
# ---------------------------------------------------------------------------
def ae_forward(x, params, *, param_dtype=jnp.bfloat16, max_tile_b=256):
    batch, input_dim = x.shape
    d_in_pad = _round_up(input_dim, LANE)
    hid_pad = _round_up(HID_DIM, LANE)

    # Batch tile: small batches -> one sublane-aligned tile (no tiling overhead);
    # large batches -> 256-row tiles (>= MXU M dim), pipelined + parallel grid.
    if batch <= max_tile_b:
        tile_b = _round_up(batch, SUBLANE)
        b_pad = tile_b
    else:
        tile_b = max_tile_b
        b_pad = _round_up(batch, tile_b)
    grid = (b_pad // tile_b,)

    # Zero-pad input (batch + feature axes).
    x_p = jnp.zeros((b_pad, d_in_pad), x.dtype).at[:batch, :input_dim].set(x)

    padded = _pad_params(params, param_dtype)
    flat = []
    for (w, b) in padded:
        flat.extend([w, b])

    # BlockSpecs: activations tiled over batch; weights/biases constant-index (resident).
    x_spec = pl.BlockSpec((tile_b, d_in_pad), lambda i: (i, 0))
    wb_specs = []
    for (w, b) in padded:
        wb_specs.append(pl.BlockSpec(w.shape, lambda i: (0, 0)))
        wb_specs.append(pl.BlockSpec(b.shape, lambda i: (0, 0)))
    z_spec = pl.BlockSpec((tile_b, hid_pad), lambda i: (i, 0))
    xo_spec = pl.BlockSpec((tile_b, d_in_pad), lambda i: (i, 0))

    # Cost estimate (unpadded math) for XLA scheduling.
    flops = 2 * batch * sum(din * dout for din, dout in _layer_dims(input_dim))
    weight_bytes = sum(int(w.size) * w.dtype.itemsize + int(b.size) * b.dtype.itemsize
                       for (w, b) in padded)
    io_bytes = (int(x_p.size) * x_p.dtype.itemsize
                + b_pad * hid_pad * x.dtype.itemsize
                + b_pad * d_in_pad * x.dtype.itemsize)
    cost = pl.CostEstimate(flops=flops, transcendentals=0,
                           bytes_accessed=weight_bytes + io_bytes)

    # VMEM budget: resident weights (double-buffer alloc) + double-buffered
    # x/z/x_out tiles + live f32 activations.
    tile_io_bytes = 2 * 2 * tile_b * (2 * d_in_pad + hid_pad) * 4
    act_bytes = 4 * tile_b * max(d_in_pad, _round_up(INTER_DIMS[0], LANE)) * 4
    est = int(2 * weight_bytes + 1.5 * (tile_io_bytes + act_bytes)) + (4 << 20)
    vmem_limit = min(max(est, 16 << 20), 48 << 20)   # <= 48 MiB fits v7x's 64 MiB/TC

    z_p, xo_p = pl.pallas_call(
        ae_kernel,
        out_shape=(
            jax.ShapeDtypeStruct((b_pad, hid_pad), x.dtype),
            jax.ShapeDtypeStruct((b_pad, d_in_pad), x.dtype),
        ),
        grid=grid,
        in_specs=[x_spec] + wb_specs,
        out_specs=(z_spec, xo_spec),
        compiler_params=pltpu.CompilerParams(
            dimension_semantics=("parallel",),
            vmem_limit_bytes=vmem_limit,
        ),
        cost_estimate=cost,
    )(x_p, *flat)

    return z_p[:batch, :HID_DIM], xo_p[:batch, :input_dim]


# ---------------------------------------------------------------------------
# Pure-JAX reference (same bf16-weight / f32-accumulate numerics as the kernel)
# ---------------------------------------------------------------------------
def ae_forward_ref(x, params, param_dtype=jnp.bfloat16):
    h = x.astype(jnp.float32)
    z = None
    for i, (w, b) in enumerate(params):
        y = jnp.dot(h.astype(param_dtype), w.astype(param_dtype),
                    preferred_element_type=jnp.float32) + b.astype(jnp.float32)
        h = jnp.maximum(y, 0.0)
        if i == 2:
            z = h
    return z, h


if __name__ == "__main__":
    key = jax.random.PRNGKey(0)
    k_in, k_par = jax.random.split(key)

    batch, input_dim = 8, 128
    x = jax.random.normal(k_in, (batch, input_dim), jnp.float32)
    params = make_params(k_par, input_dim)

    z, x_out = jax.jit(ae_forward)(x, params)
    jax.block_until_ready((z, x_out))

    z_ref, x_out_ref = ae_forward_ref(x, params)
    assert z.shape == (batch, HID_DIM)
    assert x_out.shape == (batch, input_dim)
    assert jnp.allclose(z, z_ref, rtol=1e-2, atol=1e-2)
    assert jnp.allclose(x_out, x_out_ref, rtol=1e-2, atol=1e-2)

    print("KERNEL_OK")
</pallas_src>

<mosaic_0001>
module attributes {stable_mosaic.version = 11 : i64} {
  func.func @ae_kernel(%arg0: i32, %arg1: memref<8x128xf32, #tpu.memory_space<vmem>>, %arg2: memref<128x1024xbf16, #tpu.memory_space<vmem>>, %arg3: memref<1x1024xf32, #tpu.memory_space<vmem>>, %arg4: memref<1024x512xbf16, #tpu.memory_space<vmem>>, %arg5: memref<1x512xf32, #tpu.memory_space<vmem>>, %arg6: memref<512x128xbf16, #tpu.memory_space<vmem>>, %arg7: memref<1x128xf32, #tpu.memory_space<vmem>>, %arg8: memref<128x512xbf16, #tpu.memory_space<vmem>>, %arg9: memref<1x512xf32, #tpu.memory_space<vmem>>, %arg10: memref<512x1024xbf16, #tpu.memory_space<vmem>>, %arg11: memref<1x1024xf32, #tpu.memory_space<vmem>>, %arg12: memref<1024x128xbf16, #tpu.memory_space<vmem>>, %arg13: memref<1x128xf32, #tpu.memory_space<vmem>>, %arg14: memref<8x128xf32, #tpu.memory_space<vmem>>, %arg15: memref<8x128xf32, #tpu.memory_space<vmem>>) attributes {dimension_semantics = [#tpu.dimension_semantics<parallel>], iteration_bounds = array<i64: 1>, scalar_prefetch = 0 : i64, scratch_operands = 0 : i64, tpu.core_type = #tpu.core_type<tc>, window_params = [{transform_indices = @transform_0, window_bounds = array<i64: 8, 128>}, {pipeline_mode = #tpu.pipeline_mode<synchronous>, transform_indices = @transform_1, window_bounds = array<i64: 128, 1024>}, {pipeline_mode = #tpu.pipeline_mode<synchronous>, transform_indices = @transform_2, window_bounds = array<i64: 1, 1024>}, {pipeline_mode = #tpu.pipeline_mode<synchronous>, transform_indices = @transform_3, window_bounds = array<i64: 1024, 512>}, {pipeline_mode = #tpu.pipeline_mode<synchronous>, transform_indices = @transform_4, window_bounds = array<i64: 1, 512>}, {pipeline_mode = #tpu.pipeline_mode<synchronous>, transform_indices = @transform_5, window_bounds = array<i64: 512, 128>}, {pipeline_mode = #tpu.pipeline_mode<synchronous>, transform_indices = @transform_6, window_bounds = array<i64: 1, 128>}, {pipeline_mode = #tpu.pipeline_mode<synchronous>, transform_indices = @transform_7, window_bounds = array<i64: 128, 512>}, {pipeline_mode = #tpu.pipeline_mode<synchronous>, transform_indices = @transform_8, window_bounds = array<i64: 1, 512>}, {pipeline_mode = #tpu.pipeline_mode<synchronous>, transform_indices = @transform_9, window_bounds = array<i64: 512, 1024>}, {pipeline_mode = #tpu.pipeline_mode<synchronous>, transform_indices = @transform_10, window_bounds = array<i64: 1, 1024>}, {pipeline_mode = #tpu.pipeline_mode<synchronous>, transform_indices = @transform_11, window_bounds = array<i64: 1024, 128>}, {pipeline_mode = #tpu.pipeline_mode<synchronous>, transform_indices = @transform_12, window_bounds = array<i64: 1, 128>}, {transform_indices = @transform_13, window_bounds = array<i64: 8, 128>}, {transform_indices = @transform_14, window_bounds = array<i64: 8, 128>}]} {
    %c0 = arith.constant 0 : index
    %c0_0 = arith.constant 0 : index
    %0 = vector.load %arg1[%c0, %c0_0] : memref<8x128xf32, #tpu.memory_space<vmem>>, vector<8x128xf32>
    %1 = arith.truncf %0 : vector<8x128xf32> to vector<8x128xbf16>
    %c0_1 = arith.constant 0 : index
    %c0_2 = arith.constant 0 : index
    %2 = vector.load %arg2[%c0_1, %c0_2] : memref<128x1024xbf16, #tpu.memory_space<vmem>>, vector<128x1024xbf16>
    %cst = arith.constant dense<0.000000e+00> : vector<8x1024xf32>
    %3 = tpu.matmul %1, %2, %cst {dimension_numbers = #tpu.dot_dimension_numbers<[1], [0], [0], [1], [0, 0, 1, 1], [], []>} : vector<8x128xbf16>, vector<128x1024xbf16>, vector<8x1024xf32> -> vector<8x1024xf32>
    %c0_3 = arith.constant 0 : index
    %c0_4 = arith.constant 0 : index
    %4 = vector.load %arg3[%c0_3, %c0_4] : memref<1x1024xf32, #tpu.memory_space<vmem>>, vector<1x1024xf32>
    %5 = vector.broadcast %4 : vector<1x1024xf32> to vector<8x1024xf32>
    %6 = arith.addf %3, %5 : vector<8x1024xf32>
    %cst_5 = arith.constant 0.000000e+00 : f32
    %7 = vector.broadcast %cst_5 : f32 to vector<8x1024xf32>
    %8 = arith.maximumf %6, %7 : vector<8x1024xf32>
    %9 = arith.truncf %8 : vector<8x1024xf32> to vector<8x1024xbf16>
    %c0_6 = arith.constant 0 : index
    %c0_7 = arith.constant 0 : index
    %10 = vector.load %arg4[%c0_6, %c0_7] : memref<1024x512xbf16, #tpu.memory_space<vmem>>, vector<1024x512xbf16>
    %cst_8 = arith.constant dense<0.000000e+00> : vector<8x512xf32>
    %11 = tpu.matmul %9, %10, %cst_8 {dimension_numbers = #tpu.dot_dimension_numbers<[1], [0], [0], [1], [0, 0, 1, 1], [], []>} : vector<8x1024xbf16>, vector<1024x512xbf16>, vector<8x512xf32> -> vector<8x512xf32>
    %c0_9 = arith.constant 0 : index
    %c0_10 = arith.constant 0 : index
    %12 = vector.load %arg5[%c0_9, %c0_10] : memref<1x512xf32, #tpu.memory_space<vmem>>, vector<1x512xf32>
    %13 = vector.broadcast %12 : vector<1x512xf32> to vector<8x512xf32>
    %14 = arith.addf %11, %13 : vector<8x512xf32>
    %cst_11 = arith.constant 0.000000e+00 : f32
    %15 = vector.broadcast %cst_11 : f32 to vector<8x512xf32>
    %16 = arith.maximumf %14, %15 : vector<8x512xf32>
    %17 = arith.truncf %16 : vector<8x512xf32> to vector<8x512xbf16>
    %c0_12 = arith.constant 0 : index
    %c0_13 = arith.constant 0 : index
    %18 = vector.load %arg6[%c0_12, %c0_13] : memref<512x128xbf16, #tpu.memory_space<vmem>>, vector<512x128xbf16>
    %cst_14 = arith.constant dense<0.000000e+00> : vector<8x128xf32>
    %19 = tpu.matmul %17, %18, %cst_14 {dimension_numbers = #tpu.dot_dimension_numbers<[1], [0], [0], [1], [0, 0, 1, 1], [], []>} : vector<8x512xbf16>, vector<512x128xbf16>, vector<8x128xf32> -> vector<8x128xf32>
    %c0_15 = arith.constant 0 : index
    %c0_16 = arith.constant 0 : index
    %20 = vector.load %arg7[%c0_15, %c0_16] : memref<1x128xf32, #tpu.memory_space<vmem>>, vector<1x128xf32>
    %21 = vector.broadcast %20 : vector<1x128xf32> to vector<8x128xf32>
    %22 = arith.addf %19, %21 : vector<8x128xf32>
    %cst_17 = arith.constant 0.000000e+00 : f32
    %23 = vector.broadcast %cst_17 : f32 to vector<8x128xf32>
    %24 = arith.maximumf %22, %23 : vector<8x128xf32>
    %c0_18 = arith.constant 0 : index
    %c0_19 = arith.constant 0 : index
    %25 = vector.load %arg14[%c0_18, %c0_19] : memref<8x128xf32, #tpu.memory_space<vmem>>, vector<8x128xf32>
    tpu.vector_store %arg14[%c0_18, %c0_19], %24 {strides = array<i32>} : memref<8x128xf32, #tpu.memory_space<vmem>>, vector<8x128xf32>,
    %26 = arith.truncf %24 : vector<8x128xf32> to vector<8x128xbf16>
    %c0_20 = arith.constant 0 : index
    %c0_21 = arith.constant 0 : index
    %27 = vector.load %arg8[%c0_20, %c0_21] : memref<128x512xbf16, #tpu.memory_space<vmem>>, vector<128x512xbf16>
    %cst_22 = arith.constant dense<0.000000e+00> : vector<8x512xf32>
    %28 = tpu.matmul %26, %27, %cst_22 {dimension_numbers = #tpu.dot_dimension_numbers<[1], [0], [0], [1], [0, 0, 1, 1], [], []>} : vector<8x128xbf16>, vector<128x512xbf16>, vector<8x512xf32> -> vector<8x512xf32>
    %c0_23 = arith.constant 0 : index
    %c0_24 = arith.constant 0 : index
    %29 = vector.load %arg9[%c0_23, %c0_24] : memref<1x512xf32, #tpu.memory_space<vmem>>, vector<1x512xf32>
    %30 = vector.broadcast %29 : vector<1x512xf32> to vector<8x512xf32>
    %31 = arith.addf %28, %30 : vector<8x512xf32>
    %cst_25 = arith.constant 0.000000e+00 : f32
    %32 = vector.broadcast %cst_25 : f32 to vector<8x512xf32>
    %33 = arith.maximumf %31, %32 : vector<8x512xf32>
    %34 = arith.truncf %33 : vector<8x512xf32> to vector<8x512xbf16>
    %c0_26 = arith.constant 0 : index
    %c0_27 = arith.constant 0 : index
    %35 = vector.load %arg10[%c0_26, %c0_27] : memref<512x1024xbf16, #tpu.memory_space<vmem>>, vector<512x1024xbf16>
    %cst_28 = arith.constant dense<0.000000e+00> : vector<8x1024xf32>
    %36 = tpu.matmul %34, %35, %cst_28 {dimension_numbers = #tpu.dot_dimension_numbers<[1], [0], [0], [1], [0, 0, 1, 1], [], []>} : vector<8x512xbf16>, vector<512x1024xbf16>, vector<8x1024xf32> -> vector<8x1024xf32>
    %c0_29 = arith.constant 0 : index
    %c0_30 = arith.constant 0 : index
    %37 = vector.load %arg11[%c0_29, %c0_30] : memref<1x1024xf32, #tpu.memory_space<vmem>>, vector<1x1024xf32>
    %38 = vector.broadcast %37 : vector<1x1024xf32> to vector<8x1024xf32>
    %39 = arith.addf %36, %38 : vector<8x1024xf32>
    %cst_31 = arith.constant 0.000000e+00 : f32
    %40 = vector.broadcast %cst_31 : f32 to vector<8x1024xf32>
    %41 = arith.maximumf %39, %40 : vector<8x1024xf32>
    %42 = arith.truncf %41 : vector<8x1024xf32> to vector<8x1024xbf16>
    %c0_32 = arith.constant 0 : index
    %c0_33 = arith.constant 0 : index
    %43 = vector.load %arg12[%c0_32, %c0_33] : memref<1024x128xbf16, #tpu.memory_space<vmem>>, vector<1024x128xbf16>
    %cst_34 = arith.constant dense<0.000000e+00> : vector<8x128xf32>
    %44 = tpu.matmul %42, %43, %cst_34 {dimension_numbers = #tpu.dot_dimension_numbers<[1], [0], [0], [1], [0, 0, 1, 1], [], []>} : vector<8x1024xbf16>, vector<1024x128xbf16>, vector<8x128xf32> -> vector<8x128xf32>
    %c0_35 = arith.constant 0 : index
    %c0_36 = arith.constant 0 : index
    %45 = vector.load %arg13[%c0_35, %c0_36] : memref<1x128xf32, #tpu.memory_space<vmem>>, vector<1x128xf32>
    %46 = vector.broadcast %45 : vector<1x128xf32> to vector<8x128xf32>
    %47 = arith.addf %44, %46 : vector<8x128xf32>
    %cst_37 = arith.constant 0.000000e+00 : f32
    %48 = vector.broadcast %cst_37 : f32 to vector<8x128xf32>
    %49 = arith.maximumf %47, %48 : vector<8x128xf32>
    %c0_38 = arith.constant 0 : index
    %c0_39 = arith.constant 0 : index
    %50 = vector.load %arg15[%c0_38, %c0_39] : memref<8x128xf32, #tpu.memory_space<vmem>>, vector<8x128xf32>
    tpu.vector_store %arg15[%c0_38, %c0_39], %49 {strides = array<i32>} : memref<8x128xf32, #tpu.memory_space<vmem>>, vector<8x128xf32>,
    return
  }
  func.func @transform_0(%arg0: i32) -> (i32, i32) {
    %c0_i32 = arith.constant 0 : i32
    %c0_i32_0 = arith.constant 0 : i32
    return %arg0, %c0_i32 : i32, i32
  }
  func.func @transform_1(%arg0: i32) -> (i32, i32) {
    %c0_i32 = arith.constant 0 : i32
    %c0_i32_0 = arith.constant 0 : i32
    %c0_i32_1 = arith.constant 0 : i32
    return %c0_i32, %c0_i32_0 : i32, i32
  }
  func.func @transform_2(%arg0: i32) -> (i32, i32) {
    %c0_i32 = arith.constant 0 : i32
    %c0_i32_0 = arith.constant 0 : i32
    %c0_i32_1 = arith.constant 0 : i32
    return %c0_i32, %c0_i32_0 : i32, i32
  }
  func.func @transform_3(%arg0: i32) -> (i32, i32) {
    %c0_i32 = arith.constant 0 : i32
    %c0_i32_0 = arith.constant 0 : i32
    %c0_i32_1 = arith.constant 0 : i32
    return %c0_i32, %c0_i32_0 : i32, i32
  }
  func.func @transform_4(%arg0: i32) -> (i32, i32) {
    %c0_i32 = arith.constant 0 : i32
    %c0_i32_0 = arith.constant 0 : i32
    %c0_i32_1 = arith.constant 0 : i32
    return %c0_i32, %c0_i32_0 : i32, i32
  }
  func.func @transform_5(%arg0: i32) -> (i32, i32) {
    %c0_i32 = arith.constant 0 : i32
    %c0_i32_0 = arith.constant 0 : i32
    %c0_i32_1 = arith.constant 0 : i32
    return %c0_i32, %c0_i32_0 : i32, i32
  }
  func.func @transform_6(%arg0: i32) -> (i32, i32) {
    %c0_i32 = arith.constant 0 : i32
    %c0_i32_0 = arith.constant 0 : i32
    %c0_i32_1 = arith.constant 0 : i32
    return %c0_i32, %c0_i32_0 : i32, i32
  }
  func.func @transform_7(%arg0: i32) -> (i32, i32) {
    %c0_i32 = arith.constant 0 : i32
    %c0_i32_0 = arith.constant 0 : i32
    %c0_i32_1 = arith.constant 0 : i32
    return %c0_i32, %c0_i32_0 : i32, i32
  }
  func.func @transform_8(%arg0: i32) -> (i32, i32) {
    %c0_i32 = arith.constant 0 : i32
    %c0_i32_0 = arith.constant 0 : i32
    %c0_i32_1 = arith.constant 0 : i32
    return %c0_i32, %c0_i32_0 : i32, i32
  }
  func.func @transform_9(%arg0: i32) -> (i32, i32) {
    %c0_i32 = arith.constant 0 : i32
    %c0_i32_0 = arith.constant 0 : i32
    %c0_i32_1 = arith.constant 0 : i32
    return %c0_i32, %c0_i32_0 : i32, i32
  }
  func.func @transform_10(%arg0: i32) -> (i32, i32) {
    %c0_i32 = arith.constant 0 : i32
    %c0_i32_0 = arith.constant 0 : i32
    %c0_i32_1 = arith.constant 0 : i32
    return %c0_i32, %c0_i32_0 : i32, i32
  }
  func.func @transform_11(%arg0: i32) -> (i32, i32) {
    %c0_i32 = arith.constant 0 : i32
    %c0_i32_0 = arith.constant 0 : i32
    %c0_i32_1 = arith.constant 0 : i32
    return %c0_i32, %c0_i32_0 : i32, i32
  }
  func.func @transform_12(%arg0: i32) -> (i32, i32) {
    %c0_i32 = arith.constant 0 : i32
    %c0_i32_0 = arith.constant 0 : i32
    %c0_i32_1 = arith.constant 0 : i32
    return %c0_i32, %c0_i32_0 : i32, i32
  }
  func.func @transform_13(%arg0: i32) -> (i32, i32) {
    %c0_i32 = arith.constant 0 : i32
    %c0_i32_0 = arith.constant 0 : i32
    return %arg0, %c0_i32 : i32, i32
  }
  func.func @transform_14(%arg0: i32) -> (i32, i32) {
    %c0_i32 = arith.constant 0 : i32
    %c0_i32_0 = arith.constant 0 : i32
    return %arg0, %c0_i32 : i32, i32
  }
}

</mosaic_0001>

<bundles_post_ra>
// kernel: ae_forward.1
= control target key start
LH: loop header
LB: loop body
LE: loop exit
PB: predicated region body
PF: predicated region fallthrough
CT: control target
= control target key end

     0   :  { %20 = vsyncpa [#allocation3], 0  ;;  %v7301_v6 = vmov 0   ;;  %s9666_s0 = inlined_call_operand.vmem [shape: f32[8,128], index: 0, kind: input, shape index: {}]   ;;  %s9667_s1 = inlined_call_operand.vmem [shape: bf16[128,1024], index: 1, kind: input, shape index: {}]   ;;  %s9668_s2 = inlined_call_operand.vmem [shape: f32[1,1024], index: 2, kind: input, shape index: {}]   ;;  %s9669_s3 = inlined_call_operand.vmem [shape: bf16[1024,512], index: 3, kind: input, shape index: {}]   ;;  %s9670_s4 = inlined_call_operand.vmem [shape: f32[1,512], index: 4, kind: input, shape index: {}]   ;;  %s9671_s5 = inlined_call_operand.vmem [shape: bf16[512,128], index: 5, kind: input, shape index: {}]   ;;  %s9672_s6 = inlined_call_operand.vmem [shape: f32[1,128], index: 6, kind: input, shape index: {}]   ;;  %s9673_s7 = inlined_call_operand.vmem [shape: bf16[128,512], index: 7, kind: input, shape index: {}]   ;;  %s9674_s8 = inlined_call_operand.vmem [shape: f32[1,512], index: 8, kind: input, shape index: {}]   ;;  %s9675_s9 = inlined_call_operand.vmem [shape: bf16[512,1024], index: 9, kind: input, shape index: {}]   ;;  %s9676_s10 = inlined_call_operand.vmem [shape: f32[1,1024], index: 10, kind: input, shape index: {}]   ;;  %s9677_s11 = inlined_call_operand.vmem [shape: bf16[1024,128], index: 11, kind: input, shape index: {}]   ;;  %s9678_s12 = inlined_call_operand.vmem [shape: f32[1,128], index: 12, kind: input, shape index: {}]   ;;  %s9679_s13 = inlined_call_operand.hbm [shape: f32[8,128], index: 13, kind: output, shape index: {0}]   ;;  %s9680_s14 = inlined_call_operand.hbm [shape: f32[8,128], index: 14, kind: output, shape index: {1}]  }
   0x1   :  { %v51_v0 = vld [vmem:[%s9667_s1] sm:$0xff]  ;;  %509 = vmatprep.mubr.bf16.mxu0 %v7301_v6  ;;  %550 = vmatprep.mubr.bf16.mxu1 %v7301_v6  ;;  %v52_v14 = vld [vmem:[%s9667_s1 + $0x8] sm:$0xff]  ;;  %v53_v59 = vld [vmem:[%s9667_s1 + $0x10] sm:$0xff] }
   0x2   :  { %v55_v1 = vld [vmem:[%s9667_s1 + $0x20] sm:$0xff]  ;;  %v56_v15 = vld [vmem:[%s9667_s1 + $0x28] sm:$0xff]  ;;  %v57_v60 = vld [vmem:[%s9667_s1 + $0x30] sm:$0xff] }
   0x3   :  { %v59_v2 = vld [vmem:[%s9667_s1 + $0x40] sm:$0xff]  ;;  %v5833_v3 = vcombine.high %v51_v0, %v55_v1  ;;  %v5832_v4 = vcombine.low %v51_v0, %v55_v1  ;;  %v60_v16 = vld [vmem:[%s9667_s1 + $0x48] sm:$0xff]  ;;  %v5835_v18 = vcombine.high %v52_v14, %v56_v15  ;;  %v5834_v19 = vcombine.low %v52_v14, %v56_v15  ;;  %v73_v14 = vld [vmem:[%s9667_s1 + $0xb0] sm:$0xff] }
   0x4   :  { %v63_v5 = vld [vmem:[%s9667_s1 + $0x60] sm:$0xff]  ;;  %v64_v17 = vld [vmem:[%s9667_s1 + $0x68] sm:$0xff]  ;;  %v5837_v1 = vcombine.high %v53_v59, %v57_v60 }
   0x5   :  { %v5841_v7 = vcombine.high %v59_v2, %v63_v5  ;;  %v67_v8 = vld [vmem:[%s9667_s1 + $0x80] sm:$0xff]  ;;  %477 = vmatprep.subr.bf16.mxu0 %v5833_v3  ;;  %v5840_v10 = vcombine.low %v59_v2, %v63_v5  ;;  %v5843_v20 = vcombine.high %v60_v16, %v64_v17  ;;  %v68_v22 = vld [vmem:[%s9667_s1 + $0x88] sm:$0xff]  ;;  %518 = vmatprep.subr.bf16.mxu1 %v5835_v18  ;;  %v61_v3 = vld [vmem:[%s9667_s1 + $0x50] sm:$0xff] }
   0x6   :  { %v71_v9 = vld [vmem:[%s9667_s1 + $0xa0] sm:$0xff]  ;;  %478 = vmatpush1.bf16.msra.mxu0 %v5832_v4  ;;  %v72_v23 = vld [vmem:[%s9667_s1 + $0xa8] sm:$0xff]  ;;  %519 = vmatpush1.bf16.msra.mxu1 %v5834_v19  ;;  %v5842_v27 = vcombine.low %v60_v16, %v64_v17  ;;  %v65_v4 = vld [vmem:[%s9667_s1 + $0x70] sm:$0xff] }
   0x7   :  { %479 = vmatprep.subr.bf16.mxu0 %v5841_v7  ;;  %v5849_v11 = vcombine.high %v67_v8, %v71_v9  ;;  %v75_v12 = vld [vmem:[%s9667_s1 + $0xc0] sm:$0xff]  ;;  %v5848_v21 = vcombine.low %v67_v8, %v71_v9  ;;  %520 = vmatprep.subr.bf16.mxu1 %v5843_v20  ;;  %v5851_v28 = vcombine.high %v68_v22, %v72_v23  ;;  %v76_v30 = vld [vmem:[%s9667_s1 + $0xc8] sm:$0xff]  ;;  %v54_v8 = vld [vmem:[%s9667_s1 + $0x18] sm:$0xff] }
   0x8   :  { %v79_v13 = vld [vmem:[%s9667_s1 + $0xe0] sm:$0xff]  ;;  %v80_v31 = vld [vmem:[%s9667_s1 + $0xe8] sm:$0xff]  ;;  %v5850_v35 = vcombine.low %v68_v22, %v72_v23  ;;  %v5836_v9 = vcombine.low %v53_v59, %v57_v60  ;;  %v62_v16 = vld [vmem:[%s9667_s1 + $0x58] sm:$0xff]  ;;  %v5844_v17 = vcombine.low %v61_v3, %v65_v4 }
   0x9   :  { %v5857_v24 = vcombine.high %v75_v12, %v79_v13  ;;  %v83_v25 = vld [vmem:[%s9667_s1 + $0x100] sm:$0xff]  ;;  %v5856_v29 = vcombine.low %v75_v12, %v79_v13  ;;  %v5859_v36 = vcombine.high %v76_v30, %v80_v31  ;;  %v84_v38 = vld [vmem:[%s9667_s1 + $0x108] sm:$0xff]  ;;  %v5858_v43 = vcombine.low %v76_v30, %v80_v31  ;;  %v69_v13 = vld [vmem:[%s9667_s1 + $0x90] sm:$0xff] }
   0xa   :  { %480 = vmatpush1.bf16.msra.mxu0 %v5840_v10  ;;  %v87_v26 = vld [vmem:[%s9667_s1 + $0x120] sm:$0xff]  ;;  %521 = vmatpush1.bf16.msra.mxu1 %v5842_v27  ;;  %v88_v39 = vld [vmem:[%s9667_s1 + $0x128] sm:$0xff]  ;;  %v58_v10 = vld [vmem:[%s9667_s1 + $0x38] sm:$0xff]  ;;  %v5853_v19 = vcombine.high %v69_v13, %v73_v14 }
   0xb   :  { %481 = vmatprep.subr.bf16.mxu0 %v5849_v11  ;;  %v5865_v32 = vcombine.high %v83_v25, %v87_v26  ;;  %v91_v33 = vld [vmem:[%s9667_s1 + $0x140] sm:$0xff]  ;;  %522 = vmatprep.subr.bf16.mxu1 %v5851_v28  ;;  %v5864_v37 = vcombine.low %v83_v25, %v87_v26  ;;  %v5867_v44 = vcombine.high %v84_v38, %v88_v39  ;;  %v92_v46 = vld [vmem:[%s9667_s1 + $0x148] sm:$0xff]  ;;  %v66_v18 = vld [vmem:[%s9667_s1 + $0x78] sm:$0xff] }
   0xc   :  { %v95_v34 = vld [vmem:[%s9667_s1 + $0x160] sm:$0xff]  ;;  %v96_v47 = vld [vmem:[%s9667_s1 + $0x168] sm:$0xff]  ;;  %v5866_v51 = vcombine.low %v84_v38, %v88_v39  ;;  %v5845_v11 = vcombine.high %v61_v3, %v65_v4  ;;  %v5839_v15 = vcombine.high %v54_v8, %v58_v10  ;;  %v77_v20 = vld [vmem:[%s9667_s1 + $0xd0] sm:$0xff]  ;;  %v5838_v22 = vcombine.low %v54_v8, %v58_v10 }
   0xd   :  { %v5873_v40 = vcombine.high %v91_v33, %v95_v34  ;;  %v99_v41 = vld [vmem:[%s9667_s1 + $0x180] sm:$0xff]  ;;  %v5872_v45 = vcombine.low %v91_v33, %v95_v34  ;;  %v5875_v52 = vcombine.high %v92_v46, %v96_v47  ;;  %v100_v53 = vld [vmem:[%s9667_s1 + $0x188] sm:$0xff]  ;;  %v5874_v58 = vcombine.low %v92_v46, %v96_v47  ;;  %v74_v26 = vld [vmem:[%s9667_s1 + $0xb8] sm:$0xff] }
   0xe   :  { %482 = vmatpush1.bf16.msra.mxu0 %v5848_v21  ;;  %v103_v42 = vld [vmem:[%s9667_s1 + $0x1a0] sm:$0xff]  ;;  %523 = vmatpush1.bf16.msra.mxu1 %v5850_v35  ;;  %v104_v55 = vld [vmem:[%s9667_s1 + $0x1a8] sm:$0xff]  ;;  %v81_v21 = vld [vmem:[%s9667_s1 + $0xf0] sm:$0xff]  ;;  %v5847_v23 = vcombine.high %v62_v16, %v66_v18  ;;  %v5852_v25 = vcombine.low %v69_v13, %v73_v14  ;;  %v5846_v30 = vcombine.low %v62_v16, %v66_v18 }
   0xf   :  { %483 = vmatprep.subr.bf16.mxu0 %v5857_v24  ;;  %524 = vmatprep.subr.bf16.mxu1 %v5859_v36  ;;  %v5881_v48 = vcombine.high %v99_v41, %v103_v42  ;;  %v107_v49 = vld [vmem:[%s9667_s1 + $0x1c0] sm:$0xff]  ;;  %v5880_v54 = vcombine.low %v99_v41, %v103_v42  ;;  %v5883_v61 = vcombine.high %v100_v53, %v104_v55  ;;  %v108_v62 = vld [vmem:[%s9667_s1 + $0x1c8] sm:$0xff]  ;;  %v70_v24 = vld [vmem:[%s9667_s1 + $0x98] sm:$0xff] }
  0x10   :  { %v111_v50 = vld [vmem:[%s9667_s1 + $0x1e0] sm:$0xff]  ;;  %v112_v0 = vld [vmem:[%s9667_s1 + $0x1e8] sm:$0xff]  ;;  %v5882_v2 = vcombine.low %v100_v53, %v104_v55  ;;  %v5861_v27 = vcombine.high %v77_v20, %v81_v21  ;;  %v85_v28 = vld [vmem:[%s9667_s1 + $0x110] sm:$0xff]  ;;  %v5855_v31 = vcombine.high %v70_v24, %v74_v26  ;;  %v5860_v33 = vcombine.low %v77_v20, %v81_v21 }
  0x11   :  { %v5889_v56 = vcombine.high %v107_v49, %v111_v50  ;;  %v49_v57 = vld [vmem:[%s9666_s0] sm:$0xff]  ;;  %v5888_v63 = vcombine.low %v107_v49, %v111_v50  ;;  %v5891_v7 = vcombine.high %v108_v62, %v112_v0  ;;  %v5890_v12 = vcombine.low %v108_v62, %v112_v0  ;;  %v82_v34 = vld [vmem:[%s9667_s1 + $0xf8] sm:$0xff]  ;;  %v93_v36 = vld [vmem:[%s9667_s1 + $0x150] sm:$0xff] }
  0x12   :  { %484 = vmatpush1.bf16.msra.mxu0 %v5856_v29  ;;  %525 = vmatpush1.bf16.msra.mxu1 %v5858_v43  ;;  %v7492_v5 = vpack.c.bf16 %v49_v57, %v49_v57  ;;  %v89_v29 = vld [vmem:[%s9667_s1 + $0x130] sm:$0xff]  ;;  %v5854_v38 = vcombine.low %v70_v24, %v74_v26  ;;  %v90_v42 = vld [vmem:[%s9667_s1 + $0x138] sm:$0xff] }
  0x13   :  { %485 = vmatprep.subr.bf16.mxu0 %v5865_v32  ;;  %526 = vmatprep.subr.bf16.mxu1 %v5867_v44  ;;  %v78_v32 = vld [vmem:[%s9667_s1 + $0xd8] sm:$0xff]  ;;  %v5869_v35 = vcombine.high %v85_v28, %v89_v29  ;;  %v5868_v41 = vcombine.low %v85_v28, %v89_v29  ;;  %v101_v44 = vld [vmem:[%s9667_s1 + $0x190] sm:$0xff] }
  0x14   :  { %v5863_v39 = vcombine.high %v78_v32, %v82_v34  ;;  %v5862_v46 = vcombine.low %v78_v32, %v82_v34  ;;  %v98_v50 = vld [vmem:[%s9667_s1 + $0x178] sm:$0xff]  ;;  %v113_v53 = vld [vmem:[%s9667_s1 + $0x1f0] sm:$0xff] }
  0x15   :  { %v114_v62 = vld [vmem:[%s9667_s1 + $0x1f8] sm:$0xff]  ;;  %v6727_v0 = vld [vmem:[%s9669_s3 + $0x4] ss:$16 sps:$4 sm:$0xff]   ;;  %v6725_v3 = vld [vmem:[%s9669_s3] ss:$16 sps:$4 sm:$0xff]  }
  0x16   :  { %486 = vmatpush1.bf16.msra.mxu0 %v5864_v37  ;;  %527 = vmatpush1.bf16.msra.mxu1 %v5866_v51  ;;  %v97_v37 = vld [vmem:[%s9667_s1 + $0x170] sm:$0xff]  ;;  %v6730_v8 = vld [vmem:[%s9669_s3 + $0xc] ss:$16 sps:$4 sm:$0xff]   ;;  %v6734_v16 = vld [vmem:[%s9669_s3 + $0x28] ss:$16 sps:$4 sm:$0xff]  }
  0x17   :  { %487 = vmatprep.subr.bf16.mxu0 %v5873_v40  ;;  %528 = vmatprep.subr.bf16.mxu1 %v5875_v52  ;;  %v86_v40 = vld [vmem:[%s9667_s1 + $0x118] sm:$0xff]  ;;  %v5877_v43 = vcombine.high %v93_v36, %v97_v37  ;;  %v5876_v49 = vcombine.low %v93_v36, %v97_v37  ;;  %v109_v52 = vld [vmem:[%s9667_s1 + $0x1d0] sm:$0xff] }
  0x18   :  { %v5871_v47 = vcombine.high %v86_v40, %v90_v42  ;;  %v5893_v59 = vcombine.high %v109_v52, %v113_v53  ;;  %v6731_v10 = vld [vmem:[%s9669_s3 + $0x20] ss:$16 sps:$4 sm:$0xff]   ;;  %v6736_v13 = vld [vmem:[%s9669_s3 + $0x2c] ss:$16 sps:$4 sm:$0xff]   ;;  %v6740_v20 = vld [vmem:[%s9669_s3 + $0x48] ss:$16 sps:$4 sm:$0xff]  }
  0x19   :  { %v6737_v14 = vld [vmem:[%s9669_s3 + $0x40] ss:$16 sps:$4 sm:$0xff]   ;;  %v6754_v24 = vld [vmem:[%s9669_s3 + $0x8c] ss:$16 sps:$4 sm:$0xff]   ;;  %v6763_v26 = vld [vmem:[%s9669_s3 + $0xc4] ss:$16 sps:$4 sm:$0xff]  }
  0x1a   :  { %488 = vmatpush1.bf16.msra.mxu0 %v5872_v45  ;;  %529 = vmatpush1.bf16.msra.mxu1 %v5874_v58  ;;  %v105_v45 = vld [vmem:[%s9667_s1 + $0x1b0] sm:$0xff]  ;;  %v106_v58 = vld [vmem:[%s9667_s1 + $0x1b8] sm:$0xff] }
  0x1b   :  { %489 = vmatprep.subr.bf16.mxu0 %v5881_v48  ;;  %530 = vmatprep.subr.bf16.mxu1 %v5883_v61  ;;  %v94_v48 = vld [vmem:[%s9667_s1 + $0x158] sm:$0xff]  ;;  %v5885_v51 = vcombine.high %v101_v44, %v105_v45  ;;  %v5884_v57 = vcombine.low %v101_v44, %v105_v45  ;;  %v6743_v18 = vld [vmem:[%s9669_s3 + $0x60] ss:$16 sps:$4 sm:$0xff]   ;;  %v6775_v34 = vld [vmem:[%s9669_s3 + $0x104] ss:$16 sps:$4 sm:$0xff]  }
  0x1c   :  { %v5879_v55 = vcombine.high %v94_v48, %v98_v50  ;;  %v5878_v60 = vcombine.low %v94_v48, %v98_v50  ;;  %v110_v61 = vld [vmem:[%s9667_s1 + $0x1d8] sm:$0xff]  ;;  %v6749_v21 = vld [vmem:[%s9669_s3 + $0x80] ss:$16 sps:$4 sm:$0xff]   ;;  %v6799_v50 = vld [vmem:[%s9669_s3 + $0x184] ss:$16 sps:$4 sm:$0xff]  }
  0x1d   :  { %v5895_v4 = vcombine.high %v110_v61, %v114_v62  ;;  %v6760_v28 = vld [vmem:[%s9669_s3 + $0xac] ss:$16 sps:$4 sm:$0xff]   ;;  %v6761_v29 = vld [vmem:[%s9669_s3 + $0xc0] ss:$16 sps:$4 sm:$0xff]  }
  0x1e   :  { %490 = vmatpush1.bf16.msra.mxu0 %v5880_v54  ;;  %531 = vmatpush1.bf16.msra.mxu1 %v5882_v2  ;;  %v5870_v54 = vcombine.low %v86_v40, %v90_v42  ;;  %v6766_v32 = vld [vmem:[%s9669_s3 + $0xcc] ss:$16 sps:$4 sm:$0xff]   ;;  %v6773_v37 = vld [vmem:[%s9669_s3 + $0x100] ss:$16 sps:$4 sm:$0xff]   ;;  %v6787_v42 = vld [vmem:[%s9669_s3 + $0x144] ss:$16 sps:$4 sm:$0xff]  }
  0x1f   :  { %491 = vmatprep.subr.bf16.mxu0 %v5889_v56  ;;  %532 = vmatprep.subr.bf16.mxu1 %v5891_v7  ;;  %v102_v56 = vld [vmem:[%s9667_s1 + $0x198] sm:$0xff]  ;;  %v6733_v7 = vld [vmem:[%s9669_s3 + $0x24] ss:$16 sps:$4 sm:$0xff]   ;;  %v6785_v45 = vld [vmem:[%s9669_s3 + $0x140] ss:$16 sps:$4 sm:$0xff]  }
  0x20   :  { %v5886_v2 = vcombine.low %v102_v56, %v106_v58  ;;  %v6772_v36 = vld [vmem:[%s9669_s3 + $0xec] ss:$16 sps:$4 sm:$0xff]  }
  0x21   :  { %v6778_v40 = vld [vmem:[%s9669_s3 + $0x10c] ss:$16 sps:$4 sm:$0xff]  }
  0x22   :  { %492 = vmatpush1.bf16.msra.mxu0 %v5888_v63  ;;  %533 = vmatpush1.bf16.msra.mxu1 %v5890_v12  ;;  %v5887_v63 = vcombine.high %v102_v56, %v106_v58  ;;  %v6728_v12 = vld [vmem:[%s9669_s3 + $0x8] ss:$16 sps:$4 sm:$0xff]   ;;  %v6784_v44 = vld [vmem:[%s9669_s3 + $0x12c] ss:$16 sps:$4 sm:$0xff]   ;;  %v6803_v58 = vld [vmem:[%s9669_s3 + $0x1a0] ss:$16 sps:$4 sm:$0xff]  }
  0x23   :  { %559 = vmatprep.subr.bf16.mxu0 %v5837_v1  ;;  %600 = vmatprep.subr.bf16.mxu1 %v5839_v15  ;;  %v5892_v1 = vcombine.low %v109_v52, %v113_v53  ;;  %v6745_v15 = vld [vmem:[%s9669_s3 + $0x64] ss:$16 sps:$4 sm:$0xff]   ;;  %v6790_v48 = vld [vmem:[%s9669_s3 + $0x14c] ss:$16 sps:$4 sm:$0xff]   ;;  %v6797_v53 = vld [vmem:[%s9669_s3 + $0x180] ss:$16 sps:$4 sm:$0xff]  }
  0x24   :  { %v6796_v52 = vld [vmem:[%s9669_s3 + $0x16c] ss:$16 sps:$4 sm:$0xff]  }
  0x25   :  { %510 = vmatmul.mubr.bf16.vlgmr.msra.gmra.mrb[0].mxu0 %v7492_v5  ;;  %551 = vmatmul.mubr.bf16.vlgmr.msra.gmra.mrb[0].mxu1 %v7492_v5  ;;  %v6802_v56 = vld [vmem:[%s9669_s3 + $0x18c] ss:$16 sps:$4 sm:$0xff]  }
  0x26   :  { %560 = vmatpush1.bf16.msra.mxu0 %v5836_v9  ;;  %591 = vmatprep.mubr.bf16.mxu0 %v7301_v6  ;;  %v5894_v9 = vcombine.low %v110_v61, %v114_v62  ;;  %v6806_v61 = vld [vmem:[%s9669_s3 + $0x1a8] ss:$16 sps:$4 sm:$0xff]   ;;  %v6809_v62 = vld [vmem:[%s9669_s3 + $0x1c0] ss:$16 sps:$4 sm:$0xff]  }
  0x27   :  { %561 = vmatprep.subr.bf16.mxu0 %v5845_v11  ;;  %601 = vmatpush1.bf16.msra.mxu1 %v5838_v22  ;;  %v6739_v11 = vld [vmem:[%s9669_s3 + $0x44] ss:$16 sps:$4 sm:$0xff]  }
  0x28   :  { %632 = vmatprep.mubr.bf16.mxu1 %v7301_v6  ;;  %602 = vmatprep.subr.bf16.mxu1 %v5847_v23  ;;  %v6757_v22 = vld [vmem:[%s9669_s3 + $0xa4] ss:$16 sps:$4 sm:$0xff]   ;;  %v6746_v23 = vld [vmem:[%s9669_s3 + $0x68] ss:$16 sps:$4 sm:$0xff]  }
  0x2a   :  { %562 = vmatpush1.bf16.msra.mxu0 %v5844_v17  ;;  %v6742_v17 = vld [vmem:[%s9669_s3 + $0x4c] ss:$16 sps:$4 sm:$0xff]  }
  0x2b   :  { %563 = vmatprep.subr.bf16.mxu0 %v5853_v19  ;;  %603 = vmatpush1.bf16.msra.mxu1 %v5846_v30  ;;  %v6751_v19 = vld [vmem:[%s9669_s3 + $0x84] ss:$16 sps:$4 sm:$0xff]  }
  0x2c   :  { %604 = vmatprep.subr.bf16.mxu1 %v5855_v31  ;;  %v6769_v30 = vld [vmem:[%s9669_s3 + $0xe4] ss:$16 sps:$4 sm:$0xff]   ;;  %v6758_v31 = vld [vmem:[%s9669_s3 + $0xa8] ss:$16 sps:$4 sm:$0xff]  }
  0x2e   :  { %564 = vmatpush1.bf16.msra.mxu0 %v5852_v25  ;;  %v6755_v25 = vld [vmem:[%s9669_s3 + $0xa0] ss:$16 sps:$4 sm:$0xff]  }
  0x2f   :  { %565 = vmatprep.subr.bf16.mxu0 %v5861_v27  ;;  %605 = vmatpush1.bf16.msra.mxu1 %v5854_v38  ;;  %v6752_v27 = vld [vmem:[%s9669_s3 + $0x88] ss:$16 sps:$4 sm:$0xff]   ;;  %v6781_v38 = vld [vmem:[%s9669_s3 + $0x124] ss:$16 sps:$4 sm:$0xff]  }
  0x30   :  { %606 = vmatprep.subr.bf16.mxu1 %v5863_v39  ;;  %v6770_v39 = vld [vmem:[%s9669_s3 + $0xe8] ss:$16 sps:$4 sm:$0xff]  }
  0x32   :  { %566 = vmatpush1.bf16.msra.mxu0 %v5860_v33  ;;  %v6767_v33 = vld [vmem:[%s9669_s3 + $0xe0] ss:$16 sps:$4 sm:$0xff]  }
  0x33   :  { %567 = vmatprep.subr.bf16.mxu0 %v5869_v35  ;;  %607 = vmatpush1.bf16.msra.mxu1 %v5862_v46  ;;  %v6764_v35 = vld [vmem:[%s9669_s3 + $0xc8] ss:$16 sps:$4 sm:$0xff]   ;;  %v6793_v46 = vld [vmem:[%s9669_s3 + $0x164] ss:$16 sps:$4 sm:$0xff]  }
  0x34   :  { %608 = vmatprep.subr.bf16.mxu1 %v5871_v47  ;;  %v6782_v47 = vld [vmem:[%s9669_s3 + $0x128] ss:$16 sps:$4 sm:$0xff]  }
  0x36   :  { %568 = vmatpush1.bf16.msra.mxu0 %v5868_v41  ;;  %v6779_v41 = vld [vmem:[%s9669_s3 + $0x120] ss:$16 sps:$4 sm:$0xff]  }
  0x37   :  { %569 = vmatprep.subr.bf16.mxu0 %v5877_v43  ;;  %609 = vmatpush1.bf16.msra.mxu1 %v5870_v54  ;;  %v6776_v43 = vld [vmem:[%s9669_s3 + $0x108] ss:$16 sps:$4 sm:$0xff]   ;;  %v6805_v54 = vld [vmem:[%s9669_s3 + $0x1a4] ss:$16 sps:$4 sm:$0xff]  }
  0x38   :  { %610 = vmatprep.subr.bf16.mxu1 %v5879_v55  ;;  %v6794_v55 = vld [vmem:[%s9669_s3 + $0x168] ss:$16 sps:$4 sm:$0xff]  }
  0x3a   :  { %570 = vmatpush1.bf16.msra.mxu0 %v5876_v49  ;;  %v6791_v49 = vld [vmem:[%s9669_s3 + $0x160] ss:$16 sps:$4 sm:$0xff]  }
  0x3b   :  { %571 = vmatprep.subr.bf16.mxu0 %v5885_v51  ;;  %611 = vmatpush1.bf16.msra.mxu1 %v5878_v60  ;;  %v6788_v51 = vld [vmem:[%s9669_s3 + $0x148] ss:$16 sps:$4 sm:$0xff]   ;;  %v6811_v60 = vld [vmem:[%s9669_s3 + $0x1c4] ss:$16 sps:$4 sm:$0xff]  }
  0x3c   :  { %612 = vmatprep.subr.bf16.mxu1 %v5887_v63  ;;  %v6814_v63 = vld [vmem:[%s9669_s3 + $0x1cc] ss:$16 sps:$4 sm:$0xff]  }
  0x3e   :  { %572 = vmatpush1.bf16.msra.mxu0 %v5884_v57  ;;  %v6800_v57 = vld [vmem:[%s9669_s3 + $0x188] ss:$16 sps:$4 sm:$0xff]  }
  0x3f   :  { %573 = vmatprep.subr.bf16.mxu0 %v5893_v59  ;;  %613 = vmatpush1.bf16.msra.mxu1 %v5886_v2  ;;  %v6808_v59 = vld [vmem:[%s9669_s3 + $0x1ac] ss:$16 sps:$4 sm:$0xff]   ;;  %v6815_v2 = vld [vmem:[%s9669_s3 + $0x1e0] ss:$16 sps:$4 sm:$0xff]  }
  0x40   :  { %614 = vmatprep.subr.bf16.mxu1 %v5895_v4  ;;  %v6823_v4 = vld [vmem:[%s9669_s3 + $0x204] ss:$16 sps:$4 sm:$0xff]  }
  0x42   :  { %574 = vmatpush1.bf16.msra.mxu0 %v5892_v1  ;;  %v6812_v1 = vld [vmem:[%s9669_s3 + $0x1c8] ss:$16 sps:$4 sm:$0xff]  }
  0x43   :  { %2215 = vmatprep.subr.bf16.mxu0 %v6727_v0  ;;  %615 = vmatpush1.bf16.msra.mxu1 %v5894_v9  ;;  %v6817_v0 = vld [vmem:[%s9669_s3 + $0x1e4] ss:$16 sps:$4 sm:$0xff]   ;;  %v117_v9 = vlaneseq }
  0x44   :  { %2379 = vmatprep.subr.bf16.mxu1 %v6730_v8  ;;  %v6826_v8 = vld [vmem:[%s9669_s3 + $0x20c] ss:$16 sps:$4 sm:$0xff]  }
  0x45   :  { %592 = vmatmul.mubr.bf16.vlgmr.msra.gmra.mrb[4].mxu0 %v7492_v5 }
  0x46   :  { %2216 = vmatpush1.bf16.msra.mxu0 %v6725_v3  ;;  %633 = vmatmul.mubr.bf16.vlgmr.msra.gmra.mrb[4].mxu1 %v7492_v5  ;;  %v6748_v5 = vld [vmem:[%s9669_s3 + $0x6c] ss:$16 sps:$4 sm:$0xff]  }
  0x47   :  { %2217 = vmatprep.subr.bf16.mxu0 %v6733_v7  ;;  %2380 = vmatpush1.bf16.msra.mxu1 %v6728_v12  ;;  %v6820_v3 = vld [vmem:[%s9669_s3 + $0x1ec] ss:$16 sps:$4 sm:$0xff]   ;;  %v6818_v7 = vld [vmem:[%s9669_s3 + $0x1e8] ss:$16 sps:$4 sm:$0xff]   ;;  %v7790_v12 = vld [vmem:[%s9668_s2] sm:$0xff] }
  0x48   :  { %2381 = vmatprep.subr.bf16.mxu1 %v6736_v13 }
  0x4a   :  { %2218 = vmatpush1.bf16.msra.mxu0 %v6731_v10  ;;  %v7782_v10 = vshrl.u32 %v117_v9, 7 }
  0x4b   :  { %2219 = vmatprep.subr.bf16.mxu0 %v6739_v11  ;;  %2382 = vmatpush1.bf16.msra.mxu1 %v6734_v16 }
  0x4c   :  { %2383 = vmatprep.subr.bf16.mxu1 %v6742_v17  ;;  %v7785_v11 = vsub.s32 0, %v7782_v10  ;;  %v7793_v13 = vsub.s32 1, %v7782_v10 }
  0x4e   :  { %2220 = vmatpush1.bf16.msra.mxu0 %v6737_v14  ;;  %v120_v14 = vrot.slane %v7790_v12, %v7785_v11 }
  0x4f   :  { %2221 = vmatprep.subr.bf16.mxu0 %v6745_v15  ;;  %2384 = vmatpush1.bf16.msra.mxu1 %v6740_v20  ;;  %v124_v15 = vrot.slane %v7790_v12, %v7793_v13 }
  0x50   :  { %2385 = vmatprep.subr.bf16.mxu1 %v6748_v5 }
  0x52   :  { %2222 = vmatpush1.bf16.msra.mxu0 %v6743_v18 }
  0x53   :  { %2223 = vmatprep.subr.bf16.mxu0 %v6751_v19  ;;  %2386 = vmatpush1.bf16.msra.mxu1 %v6746_v23 }
  0x54   :  { %2387 = vmatprep.subr.bf16.mxu1 %v6754_v24 }
  0x56   :  { %2224 = vmatpush1.bf16.msra.mxu0 %v6749_v21 }
  0x57   :  { %2225 = vmatprep.subr.bf16.mxu0 %v6757_v22  ;;  %2388 = vmatpush1.bf16.msra.mxu1 %v6752_v27 }
  0x58   :  { %2389 = vmatprep.subr.bf16.mxu1 %v6760_v28 }
  0x5a   :  { %2226 = vmatpush1.bf16.msra.mxu0 %v6755_v25 }
  0x5b   :  { %2227 = vmatprep.subr.bf16.mxu0 %v6763_v26  ;;  %2390 = vmatpush1.bf16.msra.mxu1 %v6758_v31 }
  0x5c   :  { %2391 = vmatprep.subr.bf16.mxu1 %v6766_v32 }
  0x5e   :  { %2228 = vmatpush1.bf16.msra.mxu0 %v6761_v29 }
  0x5f   :  { %2229 = vmatprep.subr.bf16.mxu0 %v6769_v30  ;;  %2392 = vmatpush1.bf16.msra.mxu1 %v6764_v35 }
  0x60   :  { %2393 = vmatprep.subr.bf16.mxu1 %v6772_v36 }
  0x62   :  { %2230 = vmatpush1.bf16.msra.mxu0 %v6767_v33 }
  0x63   :  { %2231 = vmatprep.subr.bf16.mxu0 %v6775_v34  ;;  %2394 = vmatpush1.bf16.msra.mxu1 %v6770_v39 }
  0x64   :  { %2395 = vmatprep.subr.bf16.mxu1 %v6778_v40 }
  0x66   :  { %2232 = vmatpush1.bf16.msra.mxu0 %v6773_v37 }
  0x67   :  { %2233 = vmatprep.subr.bf16.mxu0 %v6781_v38  ;;  %2396 = vmatpush1.bf16.msra.mxu1 %v6776_v43 }
  0x68   :  { %2397 = vmatprep.subr.bf16.mxu1 %v6784_v44 }
  0x6a   :  { %2234 = vmatpush1.bf16.msra.mxu0 %v6779_v41 }
  0x6b   :  { %2235 = vmatprep.subr.bf16.mxu0 %v6787_v42  ;;  %2398 = vmatpush1.bf16.msra.mxu1 %v6782_v47 }
  0x6c   :  { %2399 = vmatprep.subr.bf16.mxu1 %v6790_v48 }
  0x6e   :  { %2236 = vmatpush1.bf16.msra.mxu0 %v6785_v45 }
  0x6f   :  { %2237 = vmatprep.subr.bf16.mxu0 %v6793_v46  ;;  %2400 = vmatpush1.bf16.msra.mxu1 %v6788_v51 }
  0x70   :  { %2401 = vmatprep.subr.bf16.mxu1 %v6796_v52 }
  0x72   :  { %2238 = vmatpush1.bf16.msra.mxu0 %v6791_v49 }
  0x73   :  { %2239 = vmatprep.subr.bf16.mxu0 %v6799_v50  ;;  %2402 = vmatpush1.bf16.msra.mxu1 %v6794_v55 }
  0x74   :  { %2403 = vmatprep.subr.bf16.mxu1 %v6802_v56 }
  0x76   :  { %2240 = vmatpush1.bf16.msra.mxu0 %v6797_v53 }
  0x77   :  { %2241 = vmatprep.subr.bf16.mxu0 %v6805_v54  ;;  %2404 = vmatpush1.bf16.msra.mxu1 %v6800_v57 }
  0x78   :  { %2405 = vmatprep.subr.bf16.mxu1 %v6808_v59 }
  0x7a   :  { %2242 = vmatpush1.bf16.msra.mxu0 %v6803_v58 }
  0x7b   :  { %2243 = vmatprep.subr.bf16.mxu0 %v6811_v60  ;;  %2406 = vmatpush1.bf16.msra.mxu1 %v6806_v61 }
  0x7c   :  { %2407 = vmatprep.subr.bf16.mxu1 %v6814_v63 }
  0x7e   :  { %2244 = vmatpush1.bf16.msra.mxu0 %v6809_v62 }
  0x7f   :  { %2245 = vmatprep.subr.bf16.mxu0 %v6817_v0  ;;  %2408 = vmatpush1.bf16.msra.mxu1 %v6812_v1 }
  0x80   :  { %2409 = vmatprep.subr.bf16.mxu1 %v6820_v3 }
  0x82   :  { %2246 = vmatpush1.bf16.msra.mxu0 %v6815_v2 }
  0x83   :  { %2256 = vmatprep.subr.bf16.mxu0 %v6823_v4  ;;  %2410 = vmatpush1.bf16.msra.mxu1 %v6818_v7 }
  0x84   :  { %2420 = vmatprep.subr.bf16.mxu1 %v6826_v8 }
  0x85   :  { %21 = vsyncpa [#allocation5], 0  ;;  %v7800_v17 = vsub.s32 3, %v7782_v10  ;;  %v6821_v26 = vld [vmem:[%s9669_s3 + $0x200] ss:$16 sps:$4 sm:$0xff]   ;;  %s7302_s17 = smov [#allocation2]  }
  0x86   :  { %v6824_v27 = vld [vmem:[%s9669_s3 + $0x208] ss:$16 sps:$4 sm:$0xff]   ;;  %v6829_v30 = vld [vmem:[%s9669_s3 + $0x224] ss:$16 sps:$4 sm:$0xff]   ;;  %v6832_v31 = vld [vmem:[%s9669_s3 + $0x22c] ss:$16 sps:$4 sm:$0xff]  }
  0x87   :  { %v132_v24 = vrot.slane %v7790_v12, %v7800_v17  ;;  %v6827_v36 = vld [vmem:[%s9669_s3 + $0x220] ss:$16 sps:$4 sm:$0xff]   ;;  %v6830_v37 = vld [vmem:[%s9669_s3 + $0x228] ss:$16 sps:$4 sm:$0xff]   ;;  %v6835_v39 = vld [vmem:[%s9669_s3 + $0x244] ss:$16 sps:$4 sm:$0xff]  }
  0x88   :  { %v6838_v40 = vld [vmem:[%s9669_s3 + $0x24c] ss:$16 sps:$4 sm:$0xff]   ;;  %v6833_v42 = vld [vmem:[%s9669_s3 + $0x240] ss:$16 sps:$4 sm:$0xff]   ;;  %v6836_v43 = vld [vmem:[%s9669_s3 + $0x248] ss:$16 sps:$4 sm:$0xff]  }
  0x89   :  { %v6841_v44 = vld [vmem:[%s9669_s3 + $0x264] ss:$16 sps:$4 sm:$0xff]   ;;  %v6844_v45 = vld [vmem:[%s9669_s3 + $0x26c] ss:$16 sps:$4 sm:$0xff]   ;;  %v6839_v46 = vld [vmem:[%s9669_s3 + $0x260] ss:$16 sps:$4 sm:$0xff]  }
  0x8a   :  { %v6842_v47 = vld [vmem:[%s9669_s3 + $0x268] ss:$16 sps:$4 sm:$0xff]   ;;  %v6847_v48 = vld [vmem:[%s9669_s3 + $0x284] ss:$16 sps:$4 sm:$0xff]   ;;  %v6850_v49 = vld [vmem:[%s9669_s3 + $0x28c] ss:$16 sps:$4 sm:$0xff]  }
  0x8b   :  { %v6845_v50 = vld [vmem:[%s9669_s3 + $0x280] ss:$16 sps:$4 sm:$0xff]   ;;  %v6848_v51 = vld [vmem:[%s9669_s3 + $0x288] ss:$16 sps:$4 sm:$0xff]   ;;  %v6853_v52 = vld [vmem:[%s9669_s3 + $0x2a4] ss:$16 sps:$4 sm:$0xff]  }
  0x8c   :  { %v6856_v53 = vld [vmem:[%s9669_s3 + $0x2ac] ss:$16 sps:$4 sm:$0xff]   ;;  %v6851_v54 = vld [vmem:[%s9669_s3 + $0x2a0] ss:$16 sps:$4 sm:$0xff]   ;;  %v6854_v55 = vld [vmem:[%s9669_s3 + $0x2a8] ss:$16 sps:$4 sm:$0xff]  }
  0x8d   :  { %v6859_v56 = vld [vmem:[%s9669_s3 + $0x2c4] ss:$16 sps:$4 sm:$0xff]   ;;  %v6862_v57 = vld [vmem:[%s9669_s3 + $0x2cc] ss:$16 sps:$4 sm:$0xff]   ;;  %v6857_v58 = vld [vmem:[%s9669_s3 + $0x2c0] ss:$16 sps:$4 sm:$0xff]  }
  0x8e   :  { %v6860_v59 = vld [vmem:[%s9669_s3 + $0x2c8] ss:$16 sps:$4 sm:$0xff]   ;;  %v6865_v60 = vld [vmem:[%s9669_s3 + $0x2e4] ss:$16 sps:$4 sm:$0xff]   ;;  %v6868_v61 = vld [vmem:[%s9669_s3 + $0x2ec] ss:$16 sps:$4 sm:$0xff]  }
  0x8f   :  { %v6863_v0 = vld [vmem:[%s9669_s3 + $0x2e0] ss:$16 sps:$4 sm:$0xff]   ;;  %v6866_v1 = vld [vmem:[%s9669_s3 + $0x2e8] ss:$16 sps:$4 sm:$0xff]   ;;  %v6871_v3 = vld [vmem:[%s9669_s3 + $0x304] ss:$16 sps:$4 sm:$0xff]  }
  0x90   :  { %v6874_v4 = vld [vmem:[%s9669_s3 + $0x30c] ss:$16 sps:$4 sm:$0xff]   ;;  %v6869_v8 = vld [vmem:[%s9669_s3 + $0x300] ss:$16 sps:$4 sm:$0xff]   ;;  %v6872_v9 = vld [vmem:[%s9669_s3 + $0x308] ss:$16 sps:$4 sm:$0xff]  }
  0xf8   :  { %v511_v16 = vpop.f32.mrb[0].mxu0  ;;  %v7810_v28 = vpop.f32.mrb[0].mxu1 }
  0xf9   :  { %v512_v18 = vadd.f32 %v511_v16, %v120_v14  ;;  %v513_v19 = vpop.f32.mrb[1].mxu0  ;;  %v554_v32 = vpop.f32.mrb[1].mxu1  ;;  %v6880_v16 = vld [vmem:[%s9669_s3 + $0x32c] ss:$16 sps:$4 sm:$0xff]  }
  0xfa   :  { %v514_v20 = vadd.f32 %v513_v19, %v124_v15  ;;  %v515_v5 = vpop.f32.mrb[2].mxu0  ;;  %v555_v33 = vadd.f32 %v554_v32, %v132_v24  ;;  %v556_v34 = vpop.f32.mrb[2].mxu1  ;;  %v6877_v15 = vld [vmem:[%s9669_s3 + $0x324] ss:$16 sps:$4 sm:$0xff]   ;;  %v6881_v24 = vld [vmem:[%s9669_s3 + $0x340] ss:$16 sps:$4 sm:$0xff]  }
  0xfb   :  { %v641_v21 = vmax.f32 %v512_v18, 0.0  ;;  %v516_v22 = vpop.f32.mrb[3].mxu0  ;;  %v557_v35 = vpop.f32.mrb[3].mxu1  ;;  %v6875_v5 = vld [vmem:[%s9669_s3 + $0x320] ss:$16 sps:$4 sm:$0xff]  }
  0xfc   :  { %v642_v23 = vmax.f32 %v514_v20, 0.0  ;;  %v644_v38 = vmax.f32 %v555_v33, 0.0  ;;  %v6883_v22 = vld [vmem:[%s9669_s3 + $0x344] ss:$16 sps:$4 sm:$0xff]   ;;  %v6898_v32 = vld [vmem:[%s9669_s3 + $0x38c] ss:$16 sps:$4 sm:$0xff]  }
  0xfd   :  { %v649_v29 = vpack.c.bf16 %v641_v21, %v641_v21  ;;  %v6878_v21 = vld [vmem:[%s9669_s3 + $0x328] ss:$16 sps:$4 sm:$0xff]   ;;  %v7959_v33 = vsub.s32 2, %v7782_v10  ;;  %v6893_v34 = vld [vmem:[%s9669_s3 + $0x380] ss:$16 sps:$4 sm:$0xff]  }
  0xfe   :  { %v650_v25 = vpack.c.bf16 %v642_v23, %v642_v23  ;;  %v652_v41 = vpack.c.bf16 %v644_v38, %v644_v38  ;;  %v6886_v23 = vld [vmem:[%s9669_s3 + $0x34c] ss:$16 sps:$4 sm:$0xff]   ;;  %v6896_v35 = vld [vmem:[%s9669_s3 + $0x388] ss:$16 sps:$4 sm:$0xff]   ;;  %v139_v38 = vsub.s32 5, %v7782_v10 }
 0x100   :  { %2247 = vmatprep.mubr.bf16.mxu0 %v650_v25  ;;  %2411 = vmatprep.mubr.bf16.mxu1 %v650_v25  ;;  %v6884_v25 = vld [vmem:[%s9669_s3 + $0x348] ss:$16 sps:$4 sm:$0xff]  }
 0x101   :  { %2248 = vmatmul.mubr.bf16.vlgmr.msra.gmra.mrb[8].mxu0 %v649_v29  ;;  %2412 = vmatmul.mubr.bf16.vlgmr.msra.gmra.mrb[8].mxu1 %v649_v29  ;;  %v6887_v29 = vld [vmem:[%s9669_s3 + $0x360] ss:$16 sps:$4 sm:$0xff]  }
 0x102   :  { %2257 = vmatpush1.bf16.msra.mxu0 %v6821_v26  ;;  %2421 = vmatpush1.bf16.msra.mxu1 %v6824_v27  ;;  %v6889_v26 = vld [vmem:[%s9669_s3 + $0x364] ss:$16 sps:$4 sm:$0xff]   ;;  %v6892_v27 = vld [vmem:[%s9669_s3 + $0x36c] ss:$16 sps:$4 sm:$0xff]  }
 0x103   :  { %2258 = vmatprep.subr.bf16.mxu0 %v6829_v30  ;;  %2422 = vmatprep.subr.bf16.mxu1 %v6832_v31  ;;  %v6890_v30 = vld [vmem:[%s9669_s3 + $0x368] ss:$16 sps:$4 sm:$0xff]   ;;  %v6895_v31 = vld [vmem:[%s9669_s3 + $0x384] ss:$16 sps:$4 sm:$0xff]  }
 0x104   :  { %2288 = vmatprep.mubr.bf16.mxu0 %v652_v41  ;;  %2452 = vmatprep.mubr.bf16.mxu1 %v652_v41  ;;  %v6902_v41 = vld [vmem:[%s9669_s3 + $0x3a8] ss:$16 sps:$4 sm:$0xff]  }
 0x106   :  { %2259 = vmatpush1.bf16.msra.mxu0 %v6827_v36  ;;  %2423 = vmatpush1.bf16.msra.mxu1 %v6830_v37  ;;  %v6901_v36 = vld [vmem:[%s9669_s3 + $0x3a4] ss:$16 sps:$4 sm:$0xff]   ;;  %v6904_v37 = vld [vmem:[%s9669_s3 + $0x3ac] ss:$16 sps:$4 sm:$0xff]  }
 0x107   :  { %2260 = vmatprep.subr.bf16.mxu0 %v6835_v39  ;;  %2424 = vmatprep.subr.bf16.mxu1 %v6838_v40  ;;  %v128_v39 = vrot.slane %v7790_v12, %v7959_v33  ;;  %v6899_v40 = vld [vmem:[%s9669_s3 + $0x3a0] ss:$16 sps:$4 sm:$0xff]  }
 0x10a   :  { %2261 = vmatpush1.bf16.msra.mxu0 %v6833_v42  ;;  %2425 = vmatpush1.bf16.msra.mxu1 %v6836_v43  ;;  %v6907_v42 = vld [vmem:[%s9669_s3 + $0x3c4] ss:$16 sps:$4 sm:$0xff]   ;;  %v6910_v43 = vld [vmem:[%s9669_s3 + $0x3cc] ss:$16 sps:$4 sm:$0xff]  }
 0x10b   :  { %2262 = vmatprep.subr.bf16.mxu0 %v6841_v44  ;;  %2426 = vmatprep.subr.bf16.mxu1 %v6844_v45  ;;  %v140_v44 = vrot.slane %v7790_v12, %v139_v38  ;;  %v553_v45 = vadd.f32 %v7810_v28, %v128_v39  ;;  %v6916_v28 = vld [vmem:[%s9669_s3 + $0x3ec] ss:$16 sps:$4 sm:$0xff]   ;;  %v6968_v39 = vld [vmem:[%s9669_s3 + $0x508] ss:$16 sps:$4 sm:$0xff]  }
 0x10e   :  { %2263 = vmatpush1.bf16.msra.mxu0 %v6839_v46  ;;  %2427 = vmatpush1.bf16.msra.mxu1 %v6842_v47  ;;  %v6905_v46 = vld [vmem:[%s9669_s3 + $0x3c0] ss:$16 sps:$4 sm:$0xff]   ;;  %v6908_v47 = vld [vmem:[%s9669_s3 + $0x3c8] ss:$16 sps:$4 sm:$0xff]  }
 0x10f   :  { %2264 = vmatprep.subr.bf16.mxu0 %v6847_v48  ;;  %2428 = vmatprep.subr.bf16.mxu1 %v6850_v49  ;;  %v6913_v48 = vld [vmem:[%s9669_s3 + $0x3e4] ss:$16 sps:$4 sm:$0xff]  }
 0x112   :  { %2265 = vmatpush1.bf16.msra.mxu0 %v6845_v50  ;;  %2429 = vmatpush1.bf16.msra.mxu1 %v6848_v51  ;;  %v643_v50 = vmax.f32 %v553_v45, 0.0  ;;  %v6911_v51 = vld [vmem:[%s9669_s3 + $0x3e0] ss:$16 sps:$4 sm:$0xff]   ;;  %v6982_v45 = vld [vmem:[%s9669_s3 + $0x54c] ss:$16 sps:$4 sm:$0xff]  }
 0x113   :  { %2266 = vmatprep.subr.bf16.mxu0 %v6853_v52  ;;  %2430 = vmatprep.subr.bf16.mxu1 %v6856_v53  ;;  %v6914_v52 = vld [vmem:[%s9669_s3 + $0x3e8] ss:$16 sps:$4 sm:$0xff]   ;;  %v6919_v53 = vld [vmem:[%s9669_s3 + $0x404] ss:$16 sps:$4 sm:$0xff]  }
 0x116   :  { %2267 = vmatpush1.bf16.msra.mxu0 %v6851_v54  ;;  %2431 = vmatpush1.bf16.msra.mxu1 %v6854_v55  ;;  %v6922_v54 = vld [vmem:[%s9669_s3 + $0x40c] ss:$16 sps:$4 sm:$0xff]  }
 0x117   :  { %2268 = vmatprep.subr.bf16.mxu0 %v6859_v56  ;;  %2432 = vmatprep.subr.bf16.mxu1 %v6862_v57  ;;  %v651_v56 = vpack.c.bf16 %v643_v50, %v643_v50  ;;  %v6917_v57 = vld [vmem:[%s9669_s3 + $0x400] ss:$16 sps:$4 sm:$0xff]   ;;  %v6986_v50 = vld [vmem:[%s9669_s3 + $0x568] ss:$16 sps:$4 sm:$0xff]  }
 0x118   :  { %v7890_v62 = vpop.f32.mrb[4].mxu0 }
 0x119   :  { %v7892_v63 = vpop.f32.mrb[5].mxu0  ;;  %v7912_v14 = vpop.f32.mrb[4].mxu1 }
 0x11a   :  { %2269 = vmatpush1.bf16.msra.mxu0 %v6857_v58  ;;  %2433 = vmatpush1.bf16.msra.mxu1 %v6860_v59  ;;  %v597_v2 = vpop.f32.mrb[6].mxu0  ;;  %v7920_v18 = vpop.f32.mrb[5].mxu1  ;;  %v596_v49 = vadd.f32 %v7892_v63, %v140_v44  ;;  %v6920_v58 = vld [vmem:[%s9669_s3 + $0x408] ss:$16 sps:$4 sm:$0xff]   ;;  %v6925_v59 = vld [vmem:[%s9669_s3 + $0x424] ss:$16 sps:$4 sm:$0xff]  }
 0x11b   :  { %2270 = vmatprep.subr.bf16.mxu0 %v6865_v60  ;;  %2434 = vmatprep.subr.bf16.mxu1 %v6868_v61  ;;  %v598_v7 = vpop.f32.mrb[7].mxu0  ;;  %v638_v19 = vpop.f32.mrb[6].mxu1  ;;  %v6928_v60 = vld [vmem:[%s9669_s3 + $0x42c] ss:$16 sps:$4 sm:$0xff]   ;;  %v6923_v63 = vld [vmem:[%s9669_s3 + $0x420] ss:$16 sps:$4 sm:$0xff]  }
 0x11c   :  { %v639_v20 = vpop.f32.mrb[7].mxu1  ;;  %v646_v55 = vmax.f32 %v596_v49, 0.0  ;;  %v6934_v2 = vld [vmem:[%s9669_s3 + $0x44c] ss:$16 sps:$4 sm:$0xff]   ;;  %v6937_v7 = vld [vmem:[%s9669_s3 + $0x464] ss:$16 sps:$4 sm:$0xff]  }
 0x11d   :  { %v6946_v19 = vld [vmem:[%s9669_s3 + $0x48c] ss:$16 sps:$4 sm:$0xff]   ;;  %v6941_v20 = vld [vmem:[%s9669_s3 + $0x480] ss:$16 sps:$4 sm:$0xff]   ;;  %v6979_v44 = vld [vmem:[%s9669_s3 + $0x544] ss:$16 sps:$4 sm:$0xff]  }
 0x11e   :  { %2271 = vmatpush1.bf16.msra.mxu0 %v6863_v0  ;;  %2435 = vmatpush1.bf16.msra.mxu1 %v6866_v1  ;;  %v654_v61 = vpack.c.bf16 %v646_v55, %v646_v55  ;;  %v6926_v0 = vld [vmem:[%s9669_s3 + $0x428] ss:$16 sps:$4 sm:$0xff]   ;;  %v6931_v1 = vld [vmem:[%s9669_s3 + $0x444] ss:$16 sps:$4 sm:$0xff]   ;;  %v6983_v49 = vld [vmem:[%s9669_s3 + $0x560] ss:$16 sps:$4 sm:$0xff]  }
 0x11f   :  { %2272 = vmatprep.subr.bf16.mxu0 %v6871_v3  ;;  %2436 = vmatprep.subr.bf16.mxu1 %v6874_v4  ;;  %v6929_v3 = vld [vmem:[%s9669_s3 + $0x440] ss:$16 sps:$4 sm:$0xff]   ;;  %v6932_v4 = vld [vmem:[%s9669_s3 + $0x448] ss:$16 sps:$4 sm:$0xff]  }
 0x120   :  { %v6992_v55 = vld [vmem:[%s9669_s3 + $0x588] ss:$16 sps:$4 sm:$0xff]  }
 0x122   :  { %2273 = vmatpush1.bf16.msra.mxu0 %v6869_v8  ;;  %2437 = vmatpush1.bf16.msra.mxu1 %v6872_v9  ;;  %v6940_v8 = vld [vmem:[%s9669_s3 + $0x46c] ss:$16 sps:$4 sm:$0xff]   ;;  %v6935_v9 = vld [vmem:[%s9669_s3 + $0x460] ss:$16 sps:$4 sm:$0xff]  }
 0x123   :  { %2274 = vmatprep.subr.bf16.mxu0 %v6877_v15  ;;  %2438 = vmatprep.subr.bf16.mxu1 %v6880_v16  ;;  %v6938_v15 = vld [vmem:[%s9669_s3 + $0x468] ss:$16 sps:$4 sm:$0xff]   ;;  %v6943_v16 = vld [vmem:[%s9669_s3 + $0x484] ss:$16 sps:$4 sm:$0xff]  }
 0x126   :  { %2275 = vmatpush1.bf16.msra.mxu0 %v6875_v5  ;;  %2439 = vmatpush1.bf16.msra.mxu1 %v6878_v21  ;;  %v6944_v5 = vld [vmem:[%s9669_s3 + $0x488] ss:$16 sps:$4 sm:$0xff]   ;;  %v6949_v21 = vld [vmem:[%s9669_s3 + $0x4a4] ss:$16 sps:$4 sm:$0xff]  }
 0x127   :  { %2276 = vmatprep.subr.bf16.mxu0 %v6883_v22  ;;  %2440 = vmatprep.subr.bf16.mxu1 %v6886_v23  ;;  %v6952_v22 = vld [vmem:[%s9669_s3 + $0x4ac] ss:$16 sps:$4 sm:$0xff]   ;;  %v6947_v23 = vld [vmem:[%s9669_s3 + $0x4a0] ss:$16 sps:$4 sm:$0xff]  }
 0x12a   :  { %2277 = vmatpush1.bf16.msra.mxu0 %v6881_v24  ;;  %2441 = vmatpush1.bf16.msra.mxu1 %v6884_v25  ;;  %v6950_v24 = vld [vmem:[%s9669_s3 + $0x4a8] ss:$16 sps:$4 sm:$0xff]   ;;  %v6955_v25 = vld [vmem:[%s9669_s3 + $0x4c4] ss:$16 sps:$4 sm:$0xff]  }
 0x12b   :  { %2278 = vmatprep.subr.bf16.mxu0 %v6889_v26  ;;  %2442 = vmatprep.subr.bf16.mxu1 %v6892_v27  ;;  %v6958_v26 = vld [vmem:[%s9669_s3 + $0x4cc] ss:$16 sps:$4 sm:$0xff]   ;;  %v6953_v27 = vld [vmem:[%s9669_s3 + $0x4c0] ss:$16 sps:$4 sm:$0xff]  }
 0x12e   :  { %2279 = vmatpush1.bf16.msra.mxu0 %v6887_v29  ;;  %2443 = vmatpush1.bf16.msra.mxu1 %v6890_v30  ;;  %v6956_v29 = vld [vmem:[%s9669_s3 + $0x4c8] ss:$16 sps:$4 sm:$0xff]   ;;  %v6961_v30 = vld [vmem:[%s9669_s3 + $0x4e4] ss:$16 sps:$4 sm:$0xff]  }
 0x12f   :  { %2280 = vmatprep.subr.bf16.mxu0 %v6895_v31  ;;  %2444 = vmatprep.subr.bf16.mxu1 %v6898_v32  ;;  %v6964_v31 = vld [vmem:[%s9669_s3 + $0x4ec] ss:$16 sps:$4 sm:$0xff]   ;;  %v6959_v32 = vld [vmem:[%s9669_s3 + $0x4e0] ss:$16 sps:$4 sm:$0xff]  }
 0x132   :  { %2281 = vmatpush1.bf16.msra.mxu0 %v6893_v34  ;;  %2445 = vmatpush1.bf16.msra.mxu1 %v6896_v35  ;;  %v6962_v34 = vld [vmem:[%s9669_s3 + $0x4e8] ss:$16 sps:$4 sm:$0xff]   ;;  %v6967_v35 = vld [vmem:[%s9669_s3 + $0x504] ss:$16 sps:$4 sm:$0xff]  }
 0x133   :  { %2282 = vmatprep.subr.bf16.mxu0 %v6901_v36  ;;  %2446 = vmatprep.subr.bf16.mxu1 %v6904_v37  ;;  %v6970_v36 = vld [vmem:[%s9669_s3 + $0x50c] ss:$16 sps:$4 sm:$0xff]   ;;  %v6965_v37 = vld [vmem:[%s9669_s3 + $0x500] ss:$16 sps:$4 sm:$0xff]  }
 0x136   :  { %2283 = vmatpush1.bf16.msra.mxu0 %v6899_v40  ;;  %2447 = vmatpush1.bf16.msra.mxu1 %v6902_v41  ;;  %v6973_v40 = vld [vmem:[%s9669_s3 + $0x524] ss:$16 sps:$4 sm:$0xff]   ;;  %v6976_v41 = vld [vmem:[%s9669_s3 + $0x52c] ss:$16 sps:$4 sm:$0xff]  }
 0x137   :  { %2284 = vmatprep.subr.bf16.mxu0 %v6907_v42  ;;  %2448 = vmatprep.subr.bf16.mxu1 %v6910_v43  ;;  %v6971_v42 = vld [vmem:[%s9669_s3 + $0x520] ss:$16 sps:$4 sm:$0xff]   ;;  %v6974_v43 = vld [vmem:[%s9669_s3 + $0x528] ss:$16 sps:$4 sm:$0xff]  }
 0x13a   :  { %2285 = vmatpush1.bf16.msra.mxu0 %v6905_v46  ;;  %2449 = vmatpush1.bf16.msra.mxu1 %v6908_v47  ;;  %v6977_v46 = vld [vmem:[%s9669_s3 + $0x540] ss:$16 sps:$4 sm:$0xff]   ;;  %v6980_v47 = vld [vmem:[%s9669_s3 + $0x548] ss:$16 sps:$4 sm:$0xff]  }
 0x13b   :  { %2286 = vmatprep.subr.bf16.mxu0 %v6913_v48  ;;  %2450 = vmatprep.subr.bf16.mxu1 %v6916_v28  ;;  %v6985_v48 = vld [vmem:[%s9669_s3 + $0x564] ss:$16 sps:$4 sm:$0xff]   ;;  %v6988_v28 = vld [vmem:[%s9669_s3 + $0x56c] ss:$16 sps:$4 sm:$0xff]  }
 0x13e   :  { %2287 = vmatpush1.bf16.msra.mxu0 %v6911_v51  ;;  %2451 = vmatpush1.bf16.msra.mxu1 %v6914_v52  ;;  %v6991_v51 = vld [vmem:[%s9669_s3 + $0x584] ss:$16 sps:$4 sm:$0xff]   ;;  %v6994_v52 = vld [vmem:[%s9669_s3 + $0x58c] ss:$16 sps:$4 sm:$0xff]  }
 0x13f   :  { %2297 = vmatprep.subr.bf16.mxu0 %v6919_v53  ;;  %2461 = vmatprep.subr.bf16.mxu1 %v6922_v54  ;;  %v135_v53 = vsub.s32 4, %v7782_v10  ;;  %v6989_v54 = vld [vmem:[%s9669_s3 + $0x580] ss:$16 sps:$4 sm:$0xff]  }
 0x141   :  { %2289 = vmatmul.mubr.bf16.vlgmr.msra.gmra.mrb[8].mxu0 %v651_v56  ;;  %2453 = vmatmul.mubr.bf16.vlgmr.msra.gmra.mrb[8].mxu1 %v651_v56  ;;  %v6997_v56 = vld [vmem:[%s9669_s3 + $0x5a4] ss:$16 sps:$4 sm:$0xff]  }
 0x142   :  { %2298 = vmatpush1.bf16.msra.mxu0 %v6917_v57  ;;  %2462 = vmatpush1.bf16.msra.mxu1 %v6920_v58  ;;  %v7000_v57 = vld [vmem:[%s9669_s3 + $0x5ac] ss:$16 sps:$4 sm:$0xff]   ;;  %v147_v58 = vsub.s32 7, %v7782_v10 }
 0x143   :  { %2299 = vmatprep.subr.bf16.mxu0 %v6925_v59  ;;  %2463 = vmatprep.subr.bf16.mxu1 %v6928_v60  ;;  %v136_v59 = vrot.slane %v7790_v12, %v135_v53  ;;  %v6995_v60 = vld [vmem:[%s9669_s3 + $0x5a0] ss:$16 sps:$4 sm:$0xff]  }
 0x144   :  { %2329 = vmatprep.mubr.bf16.mxu0 %v654_v61  ;;  %2493 = vmatprep.mubr.bf16.mxu1 %v654_v61  ;;  %v6998_v61 = vld [vmem:[%s9669_s3 + $0x5a8] ss:$16 sps:$4 sm:$0xff]  }
 0x146   :  { %2300 = vmatpush1.bf16.msra.mxu0 %v6923_v63  ;;  %2464 = vmatpush1.bf16.msra.mxu1 %v6926_v0  ;;  %v7003_v63 = vld [vmem:[%s9669_s3 + $0x5c4] ss:$16 sps:$4 sm:$0xff]   ;;  %v7006_v0 = vld [vmem:[%s9669_s3 + $0x5cc] ss:$16 sps:$4 sm:$0xff]  }
 0x147   :  { %2301 = vmatprep.subr.bf16.mxu0 %v6931_v1  ;;  %2465 = vmatprep.subr.bf16.mxu1 %v6934_v2  ;;  %v148_v1 = vrot.slane %v7790_v12, %v147_v58  ;;  %v594_v2 = vadd.f32 %v7890_v62, %v136_v59  ;;  %v7012_v62 = vld [vmem:[%s9669_s3 + $0x5ec] ss:$16 sps:$4 sm:$0xff]   ;;  %v7064_v59 = vld [vmem:[%s9669_s3 + $0x708] ss:$16 sps:$4 sm:$0xff]  }
 0x14a   :  { %2302 = vmatpush1.bf16.msra.mxu0 %v6929_v3  ;;  %2466 = vmatpush1.bf16.msra.mxu1 %v6932_v4  ;;  %v7001_v3 = vld [vmem:[%s9669_s3 + $0x5c0] ss:$16 sps:$4 sm:$0xff]   ;;  %v7004_v4 = vld [vmem:[%s9669_s3 + $0x5c8] ss:$16 sps:$4 sm:$0xff]  }
 0x14b   :  { %2303 = vmatprep.subr.bf16.mxu0 %v6937_v7  ;;  %2467 = vmatprep.subr.bf16.mxu1 %v6940_v8  ;;  %v7009_v7 = vld [vmem:[%s9669_s3 + $0x5e4] ss:$16 sps:$4 sm:$0xff]   ;;  %v637_v8 = vadd.f32 %v7920_v18, %v148_v1  ;;  %v7018_v18 = vld [vmem:[%s9669_s3 + $0x60c] ss:$16 sps:$4 sm:$0xff]  }
 0x14c   :  { %v7075_v1 = vld [vmem:[%s9669_s3 + $0x744] ss:$16 sps:$4 sm:$0xff]  }
 0x14e   :  { %2304 = vmatpush1.bf16.msra.mxu0 %v6935_v9  ;;  %2468 = vmatpush1.bf16.msra.mxu1 %v6938_v15  ;;  %v645_v9 = vmax.f32 %v594_v2, 0.0  ;;  %v7007_v15 = vld [vmem:[%s9669_s3 + $0x5e0] ss:$16 sps:$4 sm:$0xff]   ;;  %v7078_v2 = vld [vmem:[%s9669_s3 + $0x74c] ss:$16 sps:$4 sm:$0xff]  }
 0x14f   :  { %2305 = vmatprep.subr.bf16.mxu0 %v6943_v16  ;;  %2469 = vmatprep.subr.bf16.mxu1 %v6946_v19  ;;  %v7010_v16 = vld [vmem:[%s9669_s3 + $0x5e8] ss:$16 sps:$4 sm:$0xff]   ;;  %v7015_v19 = vld [vmem:[%s9669_s3 + $0x604] ss:$16 sps:$4 sm:$0xff]  }
 0x152   :  { %2306 = vmatpush1.bf16.msra.mxu0 %v6941_v20  ;;  %2470 = vmatpush1.bf16.msra.mxu1 %v6944_v5  ;;  %v648_v20 = vmax.f32 %v637_v8, 0.0  ;;  %v653_v5 = vpack.c.bf16 %v645_v9, %v645_v9  ;;  %v7079_v8 = vld [vmem:[%s9669_s3 + $0x760] ss:$16 sps:$4 sm:$0xff]   ;;  %v7082_v9 = vld [vmem:[%s9669_s3 + $0x768] ss:$16 sps:$4 sm:$0xff]  }
 0x153   :  { %2307 = vmatprep.subr.bf16.mxu0 %v6949_v21  ;;  %2471 = vmatprep.subr.bf16.mxu1 %v6952_v22  ;;  %v7013_v21 = vld [vmem:[%s9669_s3 + $0x600] ss:$16 sps:$4 sm:$0xff]   ;;  %v7016_v22 = vld [vmem:[%s9669_s3 + $0x608] ss:$16 sps:$4 sm:$0xff]  }
 0x156   :  { %2308 = vmatpush1.bf16.msra.mxu0 %v6947_v23  ;;  %2472 = vmatpush1.bf16.msra.mxu1 %v6950_v24  ;;  %v7021_v23 = vld [vmem:[%s9669_s3 + $0x624] ss:$16 sps:$4 sm:$0xff]   ;;  %v7024_v24 = vld [vmem:[%s9669_s3 + $0x62c] ss:$16 sps:$4 sm:$0xff]  }
 0x157   :  { %2309 = vmatprep.subr.bf16.mxu0 %v6955_v25  ;;  %2473 = vmatprep.subr.bf16.mxu1 %v6958_v26  ;;  %v656_v25 = vpack.c.bf16 %v648_v20, %v648_v20  ;;  %v7019_v26 = vld [vmem:[%s9669_s3 + $0x620] ss:$16 sps:$4 sm:$0xff]   ;;  %v143_v20 = vsub.s32 6, %v7782_v10 }
 0x15a   :  { %2310 = vmatpush1.bf16.msra.mxu0 %v6953_v27  ;;  %2474 = vmatpush1.bf16.msra.mxu1 %v6956_v29  ;;  %v7022_v27 = vld [vmem:[%s9669_s3 + $0x628] ss:$16 sps:$4 sm:$0xff]   ;;  %v7027_v29 = vld [vmem:[%s9669_s3 + $0x644] ss:$16 sps:$4 sm:$0xff]  }
 0x15b   :  { %2311 = vmatprep.subr.bf16.mxu0 %v6961_v30  ;;  %2475 = vmatprep.subr.bf16.mxu1 %v6964_v31  ;;  %v7030_v30 = vld [vmem:[%s9669_s3 + $0x64c] ss:$16 sps:$4 sm:$0xff]   ;;  %v7025_v31 = vld [vmem:[%s9669_s3 + $0x640] ss:$16 sps:$4 sm:$0xff]  }
 0x15e   :  { %2312 = vmatpush1.bf16.msra.mxu0 %v6959_v32  ;;  %2476 = vmatpush1.bf16.msra.mxu1 %v6962_v34  ;;  %v7028_v32 = vld [vmem:[%s9669_s3 + $0x648] ss:$16 sps:$4 sm:$0xff]   ;;  %v7033_v34 = vld [vmem:[%s9669_s3 + $0x664] ss:$16 sps:$4 sm:$0xff]  }
 0x15f   :  { %2313 = vmatprep.subr.bf16.mxu0 %v6967_v35  ;;  %2477 = vmatprep.subr.bf16.mxu1 %v6970_v36  ;;  %v7036_v35 = vld [vmem:[%s9669_s3 + $0x66c] ss:$16 sps:$4 sm:$0xff]   ;;  %v7031_v36 = vld [vmem:[%s9669_s3 + $0x660] ss:$16 sps:$4 sm:$0xff]  }
 0x162   :  { %2314 = vmatpush1.bf16.msra.mxu0 %v6965_v37  ;;  %2478 = vmatpush1.bf16.msra.mxu1 %v6968_v39  ;;  %v7034_v37 = vld [vmem:[%s9669_s3 + $0x668] ss:$16 sps:$4 sm:$0xff]   ;;  %v7039_v39 = vld [vmem:[%s9669_s3 + $0x684] ss:$16 sps:$4 sm:$0xff]  }
 0x163   :  { %2315 = vmatprep.subr.bf16.mxu0 %v6973_v40  ;;  %2479 = vmatprep.subr.bf16.mxu1 %v6976_v41  ;;  %v7042_v40 = vld [vmem:[%s9669_s3 + $0x68c] ss:$16 sps:$4 sm:$0xff]   ;;  %v7037_v41 = vld [vmem:[%s9669_s3 + $0x680] ss:$16 sps:$4 sm:$0xff]  }
 0x166   :  { %2316 = vmatpush1.bf16.msra.mxu0 %v6971_v42  ;;  %2480 = vmatpush1.bf16.msra.mxu1 %v6974_v43  ;;  %v7040_v42 = vld [vmem:[%s9669_s3 + $0x688] ss:$16 sps:$4 sm:$0xff]   ;;  %v7045_v43 = vld [vmem:[%s9669_s3 + $0x6a4] ss:$16 sps:$4 sm:$0xff]  }
 0x167   :  { %2317 = vmatprep.subr.bf16.mxu0 %v6979_v44  ;;  %2481 = vmatprep.subr.bf16.mxu1 %v6982_v45  ;;  %v7048_v44 = vld [vmem:[%s9669_s3 + $0x6ac] ss:$16 sps:$4 sm:$0xff]   ;;  %v7043_v45 = vld [vmem:[%s9669_s3 + $0x6a0] ss:$16 sps:$4 sm:$0xff]  }
 0x16a   :  { %2318 = vmatpush1.bf16.msra.mxu0 %v6977_v46  ;;  %2482 = vmatpush1.bf16.msra.mxu1 %v6980_v47  ;;  %v7046_v46 = vld [vmem:[%s9669_s3 + $0x6a8] ss:$16 sps:$4 sm:$0xff]   ;;  %v7051_v47 = vld [vmem:[%s9669_s3 + $0x6c4] ss:$16 sps:$4 sm:$0xff]  }
 0x16b   :  { %2319 = vmatprep.subr.bf16.mxu0 %v6985_v48  ;;  %2483 = vmatprep.subr.bf16.mxu1 %v6988_v28  ;;  %v7054_v48 = vld [vmem:[%s9669_s3 + $0x6cc] ss:$16 sps:$4 sm:$0xff]   ;;  %v7049_v28 = vld [vmem:[%s9669_s3 + $0x6c0] ss:$16 sps:$4 sm:$0xff]  }
 0x16e   :  { %2320 = vmatpush1.bf16.msra.mxu0 %v6983_v49  ;;  %2484 = vmatpush1.bf16.msra.mxu1 %v6986_v50  ;;  %v7052_v49 = vld [vmem:[%s9669_s3 + $0x6c8] ss:$16 sps:$4 sm:$0xff]   ;;  %v7057_v50 = vld [vmem:[%s9669_s3 + $0x6e4] ss:$16 sps:$4 sm:$0xff]  }
 0x16f   :  { %2321 = vmatprep.subr.bf16.mxu0 %v6991_v51  ;;  %2485 = vmatprep.subr.bf16.mxu1 %v6994_v52  ;;  %v7060_v51 = vld [vmem:[%s9669_s3 + $0x6ec] ss:$16 sps:$4 sm:$0xff]   ;;  %v7055_v52 = vld [vmem:[%s9669_s3 + $0x6e0] ss:$16 sps:$4 sm:$0xff]  }
 0x172   :  { %2322 = vmatpush1.bf16.msra.mxu0 %v6989_v54  ;;  %2486 = vmatpush1.bf16.msra.mxu1 %v6992_v55  ;;  %v7058_v54 = vld [vmem:[%s9669_s3 + $0x6e8] ss:$16 sps:$4 sm:$0xff]   ;;  %v7063_v55 = vld [vmem:[%s9669_s3 + $0x704] ss:$16 sps:$4 sm:$0xff]  }
 0x173   :  { %2323 = vmatprep.subr.bf16.mxu0 %v6997_v56  ;;  %2487 = vmatprep.subr.bf16.mxu1 %v7000_v57  ;;  %v7066_v56 = vld [vmem:[%s9669_s3 + $0x70c] ss:$16 sps:$4 sm:$0xff]   ;;  %v7061_v57 = vld [vmem:[%s9669_s3 + $0x700] ss:$16 sps:$4 sm:$0xff]  }
 0x176   :  { %2324 = vmatpush1.bf16.msra.mxu0 %v6995_v60  ;;  %2488 = vmatpush1.bf16.msra.mxu1 %v6998_v61  ;;  %v7069_v60 = vld [vmem:[%s9669_s3 + $0x724] ss:$16 sps:$4 sm:$0xff]   ;;  %v7072_v61 = vld [vmem:[%s9669_s3 + $0x72c] ss:$16 sps:$4 sm:$0xff]  }
 0x177   :  { %2325 = vmatprep.subr.bf16.mxu0 %v7003_v63  ;;  %2489 = vmatprep.subr.bf16.mxu1 %v7006_v0  ;;  %v7067_v63 = vld [vmem:[%s9669_s3 + $0x720] ss:$16 sps:$4 sm:$0xff]   ;;  %v7070_v0 = vld [vmem:[%s9669_s3 + $0x728] ss:$16 sps:$4 sm:$0xff]  }
 0x17a   :  { %2326 = vmatpush1.bf16.msra.mxu0 %v7001_v3  ;;  %2490 = vmatpush1.bf16.msra.mxu1 %v7004_v4  ;;  %v7073_v3 = vld [vmem:[%s9669_s3 + $0x740] ss:$16 sps:$4 sm:$0xff]   ;;  %v7076_v4 = vld [vmem:[%s9669_s3 + $0x748] ss:$16 sps:$4 sm:$0xff]  }
 0x17b   :  { %2327 = vmatprep.subr.bf16.mxu0 %v7009_v7  ;;  %2491 = vmatprep.subr.bf16.mxu1 %v7012_v62  ;;  %v7081_v7 = vld [vmem:[%s9669_s3 + $0x764] ss:$16 sps:$4 sm:$0xff]   ;;  %v7084_v62 = vld [vmem:[%s9669_s3 + $0x76c] ss:$16 sps:$4 sm:$0xff]  }
 0x17e   :  { %2328 = vmatpush1.bf16.msra.mxu0 %v7007_v15  ;;  %2492 = vmatpush1.bf16.msra.mxu1 %v7010_v16  ;;  %v7087_v15 = vld [vmem:[%s9669_s3 + $0x784] ss:$16 sps:$4 sm:$0xff]   ;;  %v7090_v16 = vld [vmem:[%s9669_s3 + $0x78c] ss:$16 sps:$4 sm:$0xff]  }
 0x17f   :  { %2338 = vmatprep.subr.bf16.mxu0 %v7015_v19  ;;  %2502 = vmatprep.subr.bf16.mxu1 %v7018_v18  ;;  %v7085_v19 = vld [vmem:[%s9669_s3 + $0x780] ss:$16 sps:$4 sm:$0xff]   ;;  %v7088_v18 = vld [vmem:[%s9669_s3 + $0x788] ss:$16 sps:$4 sm:$0xff]  }
 0x181   :  { %2330 = vmatmul.mubr.bf16.vlgmr.msra.gmra.mrb[8].mxu0 %v653_v5  ;;  %2494 = vmatmul.mubr.bf16.vlgmr.msra.gmra.mrb[8].mxu1 %v653_v5  ;;  %v7093_v5 = vld [vmem:[%s9669_s3 + $0x7a4] ss:$16 sps:$4 sm:$0xff]  }
 0x182   :  { %2339 = vmatpush1.bf16.msra.mxu0 %v7013_v21  ;;  %2503 = vmatpush1.bf16.msra.mxu1 %v7016_v22  ;;  %v7096_v21 = vld [vmem:[%s9669_s3 + $0x7ac] ss:$16 sps:$4 sm:$0xff]   ;;  %v7091_v22 = vld [vmem:[%s9669_s3 + $0x7a0] ss:$16 sps:$4 sm:$0xff]  }
 0x183   :  { %2340 = vmatprep.subr.bf16.mxu0 %v7021_v23  ;;  %2504 = vmatprep.subr.bf16.mxu1 %v7024_v24  ;;  %v7094_v23 = vld [vmem:[%s9669_s3 + $0x7a8] ss:$16 sps:$4 sm:$0xff]   ;;  %v144_v24 = vrot.slane %v7790_v12, %v143_v20 }
 0x184   :  { %2370 = vmatprep.mubr.bf16.mxu0 %v656_v25  ;;  %2534 = vmatprep.mubr.bf16.mxu1 %v656_v25  ;;  %v7099_v25 = vld [vmem:[%s9669_s3 + $0x7c4] ss:$16 sps:$4 sm:$0xff]   ;;  %v7100_v12 = vld [vmem:[%s9669_s3 + $0x7c8] ss:$16 sps:$4 sm:$0xff]  }
 0x186   :  { %2341 = vmatpush1.bf16.msra.mxu0 %v7019_v26  ;;  %2505 = vmatpush1.bf16.msra.mxu1 %v7022_v27  ;;  %v7102_v26 = vld [vmem:[%s9669_s3 + $0x7cc] ss:$16 sps:$4 sm:$0xff]   ;;  %v7097_v27 = vld [vmem:[%s9669_s3 + $0x7c0] ss:$16 sps:$4 sm:$0xff]  }
 0x187   :  { %2342 = vmatprep.subr.bf16.mxu0 %v7027_v29  ;;  %2506 = vmatprep.subr.bf16.mxu1 %v7030_v30  ;;  %v635_v29 = vadd.f32 %v7912_v14, %v144_v24  ;;  %v7105_v30 = vld [vmem:[%s9669_s3 + $0x7e4] ss:$16 sps:$4 sm:$0xff]   ;;  %v7106_v14 = vld [vmem:[%s9669_s3 + $0x7e8] ss:$16 sps:$4 sm:$0xff]  }
 0x18a   :  { %2343 = vmatpush1.bf16.msra.mxu0 %v7025_v31  ;;  %2507 = vmatpush1.bf16.msra.mxu1 %v7028_v32  ;;  %v7108_v31 = vld [vmem:[%s9669_s3 + $0x7ec] ss:$16 sps:$4 sm:$0xff]   ;;  %v7103_v32 = vld [vmem:[%s9669_s3 + $0x7e0] ss:$16 sps:$4 sm:$0xff]  }
 0x18b   :  { %2344 = vmatprep.subr.bf16.mxu0 %v7033_v34  ;;  %2508 = vmatprep.subr.bf16.mxu1 %v7036_v35  ;;  %v647_v34 = vmax.f32 %v635_v29, 0.0  ;;  %v7109_v35 = vld [vmem:[%s9671_s5 + $0x40] sm:$0xff]  }
 0x18e   :  { %2345 = vmatpush1.bf16.msra.mxu0 %v7031_v36  ;;  %2509 = vmatpush1.bf16.msra.mxu1 %v7034_v37  ;;  %v7110_v36 = vld [vmem:[%s9671_s5 + $0xc0] sm:$0xff]  }
 0x18f   :  { %2346 = vmatprep.subr.bf16.mxu0 %v7039_v39  ;;  %2510 = vmatprep.subr.bf16.mxu1 %v7042_v40  ;;  %v7111_v37 = vld [vmem:[%s9671_s5] sm:$0xff]   ;;  %v655_v40 = vpack.c.bf16 %v647_v34, %v647_v34 }
 0x190   :  { %v7112_v39 = vld [vmem:[%s9671_s5 + $0x80] sm:$0xff]  }
 0x192   :  { %2347 = vmatpush1.bf16.msra.mxu0 %v7037_v41  ;;  %2511 = vmatpush1.bf16.msra.mxu1 %v7040_v42  ;;  %v7113_v41 = vld [vmem:[%s9671_s5 + $0x48] sm:$0xff]  }
 0x193   :  { %2348 = vmatprep.subr.bf16.mxu0 %v7045_v43  ;;  %2512 = vmatprep.subr.bf16.mxu1 %v7048_v44  ;;  %v7114_v42 = vld [vmem:[%s9671_s5 + $0xc8] sm:$0xff]  }
 0x194   :  { %v7115_v43 = vld [vmem:[%s9671_s5 + $0x8] sm:$0xff]  }
 0x195   :  { %v7116_v44 = vld [vmem:[%s9671_s5 + $0x88] sm:$0xff]  }
 0x196   :  { %2349 = vmatpush1.bf16.msra.mxu0 %v7043_v45  ;;  %2513 = vmatpush1.bf16.msra.mxu1 %v7046_v46  ;;  %v7117_v45 = vld [vmem:[%s9671_s5 + $0x50] sm:$0xff]  }
 0x197   :  { %2350 = vmatprep.subr.bf16.mxu0 %v7051_v47  ;;  %2514 = vmatprep.subr.bf16.mxu1 %v7054_v48  ;;  %v7118_v46 = vld [vmem:[%s9671_s5 + $0xd0] sm:$0xff]  }
 0x198   :  { %v7119_v47 = vld [vmem:[%s9671_s5 + $0x10] sm:$0xff]  }
 0x199   :  { %v7120_v48 = vld [vmem:[%s9671_s5 + $0x90] sm:$0xff]  }
 0x19a   :  { %2351 = vmatpush1.bf16.msra.mxu0 %v7049_v28  ;;  %2515 = vmatpush1.bf16.msra.mxu1 %v7052_v49  ;;  %v7121_v28 = vld [vmem:[%s9671_s5 + $0x58] sm:$0xff]  }
 0x19b   :  { %2352 = vmatprep.subr.bf16.mxu0 %v7057_v50  ;;  %2516 = vmatprep.subr.bf16.mxu1 %v7060_v51  ;;  %v7122_v49 = vld [vmem:[%s9671_s5 + $0xd8] sm:$0xff]  }
 0x19c   :  { %v7123_v50 = vld [vmem:[%s9671_s5 + $0x18] sm:$0xff]  }
 0x19d   :  { %v7124_v51 = vld [vmem:[%s9671_s5 + $0x98] sm:$0xff]  }
 0x19e   :  { %2353 = vmatpush1.bf16.msra.mxu0 %v7055_v52  ;;  %2517 = vmatpush1.bf16.msra.mxu1 %v7058_v54  ;;  %v7125_v52 = vld [vmem:[%s9671_s5 + $0x60] sm:$0xff]  }
 0x19f   :  { %2354 = vmatprep.subr.bf16.mxu0 %v7063_v55  ;;  %2518 = vmatprep.subr.bf16.mxu1 %v7066_v56  ;;  %v7126_v54 = vld [vmem:[%s9671_s5 + $0xe0] sm:$0xff]  }
 0x1a0   :  { %v7127_v55 = vld [vmem:[%s9671_s5 + $0x20] sm:$0xff]  }
 0x1a1   :  { %v7128_v56 = vld [vmem:[%s9671_s5 + $0xa0] sm:$0xff]  }
 0x1a2   :  { %2355 = vmatpush1.bf16.msra.mxu0 %v7061_v57  ;;  %2519 = vmatpush1.bf16.msra.mxu1 %v7064_v59  ;;  %v7129_v57 = vld [vmem:[%s9671_s5 + $0x68] sm:$0xff]  }
 0x1a3   :  { %2356 = vmatprep.subr.bf16.mxu0 %v7069_v60  ;;  %2520 = vmatprep.subr.bf16.mxu1 %v7072_v61  ;;  %v7130_v59 = vld [vmem:[%s9671_s5 + $0xe8] sm:$0xff]  }
 0x1a4   :  { %v7131_v60 = vld [vmem:[%s9671_s5 + $0x28] sm:$0xff]  }
 0x1a5   :  { %v7132_v61 = vld [vmem:[%s9671_s5 + $0xa8] sm:$0xff]  }
 0x1a6   :  { %2357 = vmatpush1.bf16.msra.mxu0 %v7067_v63  ;;  %2521 = vmatpush1.bf16.msra.mxu1 %v7070_v0  ;;  %v7133_v63 = vld [vmem:[%s9671_s5 + $0x70] sm:$0xff]  }
 0x1a7   :  { %2358 = vmatprep.subr.bf16.mxu0 %v7075_v1  ;;  %2522 = vmatprep.subr.bf16.mxu1 %v7078_v2  ;;  %v7134_v0 = vld [vmem:[%s9671_s5 + $0xf0] sm:$0xff]  }
 0x1a8   :  { %v7135_v1 = vld [vmem:[%s9671_s5 + $0x30] sm:$0xff]  }
 0x1a9   :  { %v7136_v2 = vld [vmem:[%s9671_s5 + $0xb0] sm:$0xff]  }
 0x1aa   :  { %2359 = vmatpush1.bf16.msra.mxu0 %v7073_v3  ;;  %2523 = vmatpush1.bf16.msra.mxu1 %v7076_v4  ;;  %v7137_v3 = vld [vmem:[%s9671_s5 + $0x78] sm:$0xff]  }
 0x1ab   :  { %2360 = vmatprep.subr.bf16.mxu0 %v7081_v7  ;;  %2524 = vmatprep.subr.bf16.mxu1 %v7084_v62  ;;  %v7138_v4 = vld [vmem:[%s9671_s5 + $0xf8] sm:$0xff]  }
 0x1ac   :  { %v7139_v7 = vld [vmem:[%s9671_s5 + $0x38] sm:$0xff]  }
 0x1ad   :  { %v7140_v62 = vld [vmem:[%s9671_s5 + $0xb8] sm:$0xff]  }
 0x1ae   :  { %2361 = vmatpush1.bf16.msra.mxu0 %v7079_v8  ;;  %2525 = vmatpush1.bf16.msra.mxu1 %v7082_v9  ;;  %v7143_v8 = vld [vmem:[%s9673_s7 + $0x4] ss:$16 sps:$4 sm:$0xff]   ;;  %v7146_v9 = vld [vmem:[%s9673_s7 + $0xc] ss:$16 sps:$4 sm:$0xff]  }
 0x1af   :  { %2362 = vmatprep.subr.bf16.mxu0 %v7087_v15  ;;  %2526 = vmatprep.subr.bf16.mxu1 %v7090_v16  ;;  %v913_v15 = vld [vmem:[%s9670_s4] sm:$0xf] }
 0x1b0   :  { %v918_v16 = vrot.slane %v913_v15, %v7785_v11 }
 0x1b2   :  { %2363 = vmatpush1.bf16.msra.mxu0 %v7085_v19  ;;  %2527 = vmatpush1.bf16.msra.mxu1 %v7088_v18  ;;  %v926_v19 = vrot.slane %v913_v15, %v7959_v33  ;;  %v922_v18 = vrot.slane %v913_v15, %v7793_v13 }
 0x1b3   :  { %2364 = vmatprep.subr.bf16.mxu0 %v7093_v5  ;;  %2528 = vmatprep.subr.bf16.mxu1 %v7096_v21  ;;  %v930_v5 = vrot.slane %v913_v15, %v7800_v17  ;;  %v3201_v15 = vld [vmem:[%s9675_s9] sm:$0xff] }
 0x1b6   :  { %2365 = vmatpush1.bf16.msra.mxu0 %v7091_v22  ;;  %2529 = vmatpush1.bf16.msra.mxu1 %v7094_v23 }
 0x1b7   :  { %2366 = vmatprep.subr.bf16.mxu0 %v7099_v25  ;;  %2530 = vmatprep.subr.bf16.mxu1 %v7102_v26 }
 0x1ba   :  { %2367 = vmatpush1.bf16.msra.mxu0 %v7097_v27  ;;  %2531 = vmatpush1.bf16.msra.mxu1 %v7100_v12 }
 0x1bb   :  { %2368 = vmatprep.subr.bf16.mxu0 %v7105_v30  ;;  %2532 = vmatprep.subr.bf16.mxu1 %v7108_v31 }
 0x1be   :  { %2369 = vmatpush1.bf16.msra.mxu0 %v7103_v32  ;;  %2533 = vmatpush1.bf16.msra.mxu1 %v7106_v14 }
 0x1bf   :  { %6538 = vmatprep.subr.bf16.mxu0 %v7109_v35  ;;  %6560 = vmatprep.subr.bf16.mxu1 %v7110_v36 }
 0x1c1   :  { %2371 = vmatmul.mubr.bf16.vlgmr.msra.gmra.mrb[8].mxu0 %v655_v40  ;;  %2535 = vmatmul.mubr.bf16.vlgmr.msra.gmra.mrb[8].mxu1 %v655_v40  ;;  %v7141_v40 = vld [vmem:[%s9673_s7] ss:$16 sps:$4 sm:$0xff]  }
 0x1c2   :  { %6539 = vmatpush3.bf16.msra.mxu0 %v7111_v37  ;;  %6561 = vmatpush3.bf16.msra.mxu1 %v7112_v39 }
 0x1c3   :  { %6540 = vmatprep.subr.bf16.mxu0 %v7113_v41  ;;  %6562 = vmatprep.subr.bf16.mxu1 %v7114_v42  ;;  %v7144_v41 = vld [vmem:[%s9673_s7 + $0x8] ss:$16 sps:$4 sm:$0xff]  }
 0x1c6   :  { %6541 = vmatpush3.bf16.msra.mxu0 %v7115_v43  ;;  %6563 = vmatpush3.bf16.msra.mxu1 %v7116_v44  ;;  %v7149_v44 = vld [vmem:[%s9673_s7 + $0x24] ss:$16 sps:$4 sm:$0xff]  }
 0x1c7   :  { %6542 = vmatprep.subr.bf16.mxu0 %v7117_v45  ;;  %6564 = vmatprep.subr.bf16.mxu1 %v7118_v46  ;;  %v7152_v45 = vld [vmem:[%s9673_s7 + $0x2c] ss:$16 sps:$4 sm:$0xff]   ;;  %v7147_v46 = vld [vmem:[%s9673_s7 + $0x20] ss:$16 sps:$4 sm:$0xff]  }
 0x1ca   :  { %6543 = vmatpush3.bf16.msra.mxu0 %v7119_v47  ;;  %6565 = vmatpush3.bf16.msra.mxu1 %v7120_v48  ;;  %v7150_v47 = vld [vmem:[%s9673_s7 + $0x28] ss:$16 sps:$4 sm:$0xff]   ;;  %v7155_v48 = vld [vmem:[%s9673_s7 + $0x44] ss:$16 sps:$4 sm:$0xff]  }
 0x1cb   :  { %6544 = vmatprep.subr.bf16.mxu0 %v7121_v28  ;;  %6566 = vmatprep.subr.bf16.mxu1 %v7122_v49  ;;  %v7158_v28 = vld [vmem:[%s9673_s7 + $0x4c] ss:$16 sps:$4 sm:$0xff]   ;;  %v7153_v49 = vld [vmem:[%s9673_s7 + $0x40] ss:$16 sps:$4 sm:$0xff]  }
 0x1ce   :  { %6545 = vmatpush3.bf16.msra.mxu0 %v7123_v50  ;;  %6567 = vmatpush3.bf16.msra.mxu1 %v7124_v51  ;;  %v7156_v50 = vld [vmem:[%s9673_s7 + $0x48] ss:$16 sps:$4 sm:$0xff]   ;;  %v7161_v51 = vld [vmem:[%s9673_s7 + $0x64] ss:$16 sps:$4 sm:$0xff]  }
 0x1cf   :  { %6546 = vmatprep.subr.bf16.mxu0 %v7125_v52  ;;  %6568 = vmatprep.subr.bf16.mxu1 %v7126_v54  ;;  %v7159_v52 = vld [vmem:[%s9673_s7 + $0x60] ss:$16 sps:$4 sm:$0xff]   ;;  %v7162_v54 = vld [vmem:[%s9673_s7 + $0x68] ss:$16 sps:$4 sm:$0xff]  }
 0x1d2   :  { %6547 = vmatpush3.bf16.msra.mxu0 %v7127_v55  ;;  %6569 = vmatpush3.bf16.msra.mxu1 %v7128_v56  ;;  %v7167_v55 = vld [vmem:[%s9673_s7 + $0x84] ss:$16 sps:$4 sm:$0xff]   ;;  %v7170_v56 = vld [vmem:[%s9673_s7 + $0x8c] ss:$16 sps:$4 sm:$0xff]  }
 0x1d3   :  { %6548 = vmatprep.subr.bf16.mxu0 %v7129_v57  ;;  %6570 = vmatprep.subr.bf16.mxu1 %v7130_v59  ;;  %v7165_v57 = vld [vmem:[%s9673_s7 + $0x80] ss:$16 sps:$4 sm:$0xff]   ;;  %v7168_v59 = vld [vmem:[%s9673_s7 + $0x88] ss:$16 sps:$4 sm:$0xff]  }
 0x1d6   :  { %6549 = vmatpush3.bf16.msra.mxu0 %v7131_v60  ;;  %6571 = vmatpush3.bf16.msra.mxu1 %v7132_v61  ;;  %v7173_v60 = vld [vmem:[%s9673_s7 + $0xa4] ss:$16 sps:$4 sm:$0xff]   ;;  %v7176_v61 = vld [vmem:[%s9673_s7 + $0xac] ss:$16 sps:$4 sm:$0xff]  }
 0x1d7   :  { %6550 = vmatprep.subr.bf16.mxu0 %v7133_v63  ;;  %6572 = vmatprep.subr.bf16.mxu1 %v7134_v0  ;;  %v7171_v63 = vld [vmem:[%s9673_s7 + $0xa0] ss:$16 sps:$4 sm:$0xff]   ;;  %v7174_v0 = vld [vmem:[%s9673_s7 + $0xa8] ss:$16 sps:$4 sm:$0xff]  }
 0x1da   :  { %6551 = vmatpush3.bf16.msra.mxu0 %v7135_v1  ;;  %6573 = vmatpush3.bf16.msra.mxu1 %v7136_v2  ;;  %v7179_v1 = vld [vmem:[%s9673_s7 + $0xc4] ss:$16 sps:$4 sm:$0xff]   ;;  %v7182_v2 = vld [vmem:[%s9673_s7 + $0xcc] ss:$16 sps:$4 sm:$0xff]  }
 0x1db   :  { %6552 = vmatprep.subr.bf16.mxu0 %v7137_v3  ;;  %6574 = vmatprep.subr.bf16.mxu1 %v7138_v4  ;;  %v7177_v3 = vld [vmem:[%s9673_s7 + $0xc0] ss:$16 sps:$4 sm:$0xff]   ;;  %v7180_v4 = vld [vmem:[%s9673_s7 + $0xc8] ss:$16 sps:$4 sm:$0xff]  }
 0x1de   :  { %6553 = vmatpush3.bf16.msra.mxu0 %v7139_v7  ;;  %6575 = vmatpush3.bf16.msra.mxu1 %v7140_v62  ;;  %v7185_v7 = vld [vmem:[%s9673_s7 + $0xe4] ss:$16 sps:$4 sm:$0xff]   ;;  %v7188_v62 = vld [vmem:[%s9673_s7 + $0xec] ss:$16 sps:$4 sm:$0xff]  }
 0x1df   :  { %3111 = vmatprep.subr.bf16.mxu0 %v7143_v8  ;;  %3152 = vmatprep.subr.bf16.mxu1 %v7146_v9  ;;  %v7183_v8 = vld [vmem:[%s9673_s7 + $0xe0] ss:$16 sps:$4 sm:$0xff]   ;;  %v7186_v9 = vld [vmem:[%s9673_s7 + $0xe8] ss:$16 sps:$4 sm:$0xff]  }
 0x294   :  { %v2372_v21 = vpop.f32.mrb[8].mxu0  ;;  %v2536_v22 = vpop.f32.mrb[8].mxu1 }
 0x295   :  { %v6670_v23 = vadd.f32 %v2372_v21, %v918_v16  ;;  %v6672_v24 = vadd.f32 %v2536_v22, %v926_v19  ;;  %v2374_v25 = vpop.f32.mrb[9].mxu0  ;;  %v2538_v26 = vpop.f32.mrb[9].mxu1  ;;  %v3205_v16 = vld [vmem:[%s9675_s9 + $0x20] sm:$0xff]  ;;  %v3202_v19 = vld [vmem:[%s9675_s9 + $0x8] sm:$0xff] }
 0x296   :  { %v6671_v27 = vadd.f32 %v2374_v25, %v922_v18  ;;  %v6673_v12 = vadd.f32 %v2538_v26, %v930_v5  ;;  %v2376_v29 = vpop.f32.mrb[10].mxu0  ;;  %v2540_v30 = vpop.f32.mrb[10].mxu1  ;;  %v6217_v18 = vcombine.low %v3201_v15, %v3205_v16  ;;  %v6218_v5 = vcombine.high %v3201_v15, %v3205_v16  ;;  %v3206_v21 = vld [vmem:[%s9675_s9 + $0x28] sm:$0xff]  ;;  %v6152_v26 = vld [vmem:[%s9672_s6] ss:$0 sm:$0xff] }
 0x297   :  { %v2543_v31 = vmax.f32 %v6670_v23, 0.0  ;;  %v2545_v32 = vmax.f32 %v6672_v24, 0.0  ;;  %v2377_v14 = vpop.f32.mrb[11].mxu0  ;;  %v2541_v34 = vpop.f32.mrb[11].mxu1  ;;  %v6219_v22 = vcombine.low %v3202_v19, %v3206_v21  ;;  %v6220_v23 = vcombine.high %v3202_v19, %v3206_v21  ;;  %v3242_v15 = vld [vmem:[%s9675_s9 + $0x148] sm:$0xff] }
 0x298   :  { %v2544_v35 = vmax.f32 %v6671_v27, 0.0  ;;  %v2546_v36 = vmax.f32 %v6673_v12, 0.0  ;;  %v3246_v16 = vld [vmem:[%s9675_s9 + $0x168] sm:$0xff] }
 0x299   :  { %v2547_v42 = vpack.c.bf16 %v2543_v31, %v2543_v31  ;;  %v2549_v43 = vpack.c.bf16 %v2545_v32, %v2545_v32  ;;  %v6260_v21 = vcombine.high %v3242_v15, %v3246_v16 }
 0x29a   :  { %v2548_v37 = vpack.c.bf16 %v2544_v35, %v2544_v35  ;;  %v2550_v39 = vpack.c.bf16 %v2546_v36, %v2546_v36 }
 0x29c   :  { %2846 = vmatprep.mubr.bf16.mxu0 %v2548_v37  ;;  %2886 = vmatprep.mubr.bf16.mxu1 %v2550_v39  ;;  %v3209_v37 = vld [vmem:[%s9675_s9 + $0x40] sm:$0xff] }
 0x29d   :  { %2847 = vmatmul.mubr.bf16.vlgmr.msra.gmra.mrb[12].mxu0 %v2547_v42  ;;  %2887 = vmatmul.mubr.bf16.vlgmr.msra.gmra.mrb[12].mxu1 %v2549_v43  ;;  %v3213_v39 = vld [vmem:[%s9675_s9 + $0x60] sm:$0xff] }
 0x29e   :  { %3112 = vmatpush1.bf16.msra.mxu0 %v7141_v40  ;;  %3153 = vmatpush1.bf16.msra.mxu1 %v7144_v41  ;;  %v3210_v40 = vld [vmem:[%s9675_s9 + $0x48] sm:$0xff] }
 0x29f   :  { %3113 = vmatprep.subr.bf16.mxu0 %v7149_v44  ;;  %3154 = vmatprep.subr.bf16.mxu1 %v7152_v45  ;;  %v3214_v41 = vld [vmem:[%s9675_s9 + $0x68] sm:$0xff]  ;;  %v6226_v44 = vcombine.high %v3209_v37, %v3213_v39 }
 0x2a0   :  { %3143 = vmatprep.mubr.bf16.mxu0 %v7301_v6  ;;  %3184 = vmatprep.mubr.bf16.mxu1 %v7301_v6  ;;  %v7164_v6 = vld [vmem:[%s9673_s7 + $0x6c] ss:$16 sps:$4 sm:$0xff]   ;;  %v6228_v45 = vcombine.high %v3210_v40, %v3214_v41 }
 0x2a2   :  { %3114 = vmatpush1.bf16.msra.mxu0 %v7147_v46  ;;  %3155 = vmatpush1.bf16.msra.mxu1 %v7150_v47  ;;  %v3217_v46 = vld [vmem:[%s9675_s9 + $0x80] sm:$0xff] }
 0x2a3   :  { %3115 = vmatprep.subr.bf16.mxu0 %v7155_v48  ;;  %3156 = vmatprep.subr.bf16.mxu1 %v7158_v28  ;;  %v3221_v47 = vld [vmem:[%s9675_s9 + $0xa0] sm:$0xff]  ;;  %v3218_v48 = vld [vmem:[%s9675_s9 + $0x88] sm:$0xff] }
 0x2a4   :  { %v3222_v28 = vld [vmem:[%s9675_s9 + $0xa8] sm:$0xff] }
 0x2a6   :  { %3116 = vmatpush1.bf16.msra.mxu0 %v7153_v49  ;;  %3157 = vmatpush1.bf16.msra.mxu1 %v7156_v50  ;;  %v6225_v49 = vcombine.low %v3209_v37, %v3213_v39  ;;  %v6227_v50 = vcombine.low %v3210_v40, %v3214_v41  ;;  %v3265_v39 = vld [vmem:[%s9675_s9 + $0x200] sm:$0xff]  ;;  %v3266_v41 = vld [vmem:[%s9675_s9 + $0x208] sm:$0xff] }
 0x2a7   :  { %3117 = vmatprep.subr.bf16.mxu0 %v7161_v51  ;;  %3158 = vmatprep.subr.bf16.mxu1 %v7164_v6  ;;  %v6234_v51 = vcombine.high %v3217_v46, %v3221_v47  ;;  %v6236_v6 = vcombine.high %v3218_v48, %v3222_v28  ;;  %v3269_v40 = vld [vmem:[%s9675_s9 + $0x220] sm:$0xff] }
 0x2aa   :  { %3118 = vmatpush1.bf16.msra.mxu0 %v7159_v52  ;;  %3159 = vmatpush1.bf16.msra.mxu1 %v7162_v54  ;;  %v3225_v52 = vld [vmem:[%s9675_s9 + $0xc0] sm:$0xff] }
 0x2ab   :  { %3119 = vmatprep.subr.bf16.mxu0 %v7167_v55  ;;  %3160 = vmatprep.subr.bf16.mxu1 %v7170_v56  ;;  %v3229_v54 = vld [vmem:[%s9675_s9 + $0xe0] sm:$0xff]  ;;  %v3226_v55 = vld [vmem:[%s9675_s9 + $0xc8] sm:$0xff] }
 0x2ac   :  { %v3230_v56 = vld [vmem:[%s9675_s9 + $0xe8] sm:$0xff] }
 0x2ae   :  { %3120 = vmatpush1.bf16.msra.mxu0 %v7165_v57  ;;  %3161 = vmatpush1.bf16.msra.mxu1 %v7168_v59  ;;  %v6233_v57 = vcombine.low %v3217_v46, %v3221_v47  ;;  %v6235_v59 = vcombine.low %v3218_v48, %v3222_v28  ;;  %v3273_v47 = vld [vmem:[%s9675_s9 + $0x240] sm:$0xff]  ;;  %v3274_v28 = vld [vmem:[%s9675_s9 + $0x248] sm:$0xff] }
 0x2af   :  { %3121 = vmatprep.subr.bf16.mxu0 %v7173_v60  ;;  %3162 = vmatprep.subr.bf16.mxu1 %v7176_v61  ;;  %v6242_v60 = vcombine.high %v3225_v52, %v3229_v54  ;;  %v6244_v61 = vcombine.high %v3226_v55, %v3230_v56  ;;  %v3277_v48 = vld [vmem:[%s9675_s9 + $0x260] sm:$0xff] }
 0x2b2   :  { %3122 = vmatpush1.bf16.msra.mxu0 %v7171_v63  ;;  %3163 = vmatpush1.bf16.msra.mxu1 %v7174_v0  ;;  %v3233_v63 = vld [vmem:[%s9675_s9 + $0x100] sm:$0xff] }
 0x2b3   :  { %3123 = vmatprep.subr.bf16.mxu0 %v7179_v1  ;;  %3164 = vmatprep.subr.bf16.mxu1 %v7182_v2  ;;  %v3237_v0 = vld [vmem:[%s9675_s9 + $0x120] sm:$0xff]  ;;  %v3234_v1 = vld [vmem:[%s9675_s9 + $0x108] sm:$0xff] }
 0x2b4   :  { %v3238_v2 = vld [vmem:[%s9675_s9 + $0x128] sm:$0xff]  ;;  %v6249_v19 = vcombine.low %v3233_v63, %v3237_v0 }
 0x2b6   :  { %3124 = vmatpush1.bf16.msra.mxu0 %v7177_v3  ;;  %3165 = vmatpush1.bf16.msra.mxu1 %v7180_v4  ;;  %v6241_v3 = vcombine.low %v3225_v52, %v3229_v54  ;;  %v6243_v4 = vcombine.low %v3226_v55, %v3230_v56  ;;  %v3281_v54 = vld [vmem:[%s9675_s9 + $0x280] sm:$0xff]  ;;  %v3282_v56 = vld [vmem:[%s9675_s9 + $0x288] sm:$0xff] }
 0x2b7   :  { %3125 = vmatprep.subr.bf16.mxu0 %v7185_v7  ;;  %3166 = vmatprep.subr.bf16.mxu1 %v7188_v62  ;;  %v6250_v7 = vcombine.high %v3233_v63, %v3237_v0  ;;  %v6252_v62 = vcombine.high %v3234_v1, %v3238_v2  ;;  %v3285_v55 = vld [vmem:[%s9675_s9 + $0x2a0] sm:$0xff] }
 0x2b8   :  { %v3289_v0 = vld [vmem:[%s9675_s9 + $0x2c0] sm:$0xff] }
 0x2ba   :  { %3126 = vmatpush1.bf16.msra.mxu0 %v7183_v8  ;;  %3167 = vmatpush1.bf16.msra.mxu1 %v7186_v9  ;;  %v3241_v8 = vld [vmem:[%s9675_s9 + $0x140] sm:$0xff] }
 0x2bb   :  { %4779 = vmatprep.subr.bf16.mxu0 %v6218_v5  ;;  %4861 = vmatprep.subr.bf16.mxu1 %v6220_v23  ;;  %v3245_v9 = vld [vmem:[%s9675_s9 + $0x160] sm:$0xff] }
 0x2bc   :  { %v6258_v5 = vcombine.high %v3241_v8, %v3245_v9  ;;  %v3253_v23 = vld [vmem:[%s9675_s9 + $0x1a0] sm:$0xff] }
 0x370   :  { %v6554_v24 = vpop.f32.mrb[12].mxu0  ;;  %v6576_v25 = vpop.f32.mrb[12].mxu1 }
 0x371   :  { %v6555_v27 = vpop.f32.mrb[13].mxu0  ;;  %v6577_v12 = vpop.f32.mrb[13].mxu1 }
 0x372   :  { %v6556_v29 = vadd.f32 %v6555_v27, %v6554_v24  ;;  %v6578_v30 = vadd.f32 %v6577_v12, %v6576_v25  ;;  %v6557_v31 = vpop.f32.mrb[14].mxu0  ;;  %v6579_v32 = vpop.f32.mrb[14].mxu1  ;;  %v3250_v24 = vld [vmem:[%s9675_s9 + $0x188] sm:$0xff]  ;;  %v6259_v27 = vcombine.low %v3242_v15, %v3246_v16  ;;  %v3301_v15 = vld [vmem:[%s9675_s9 + $0x320] sm:$0xff] }
 0x373   :  { %v6558_v14 = vpop.f32.mrb[15].mxu0  ;;  %v6580_v34 = vpop.f32.mrb[15].mxu1  ;;  %v3254_v25 = vld [vmem:[%s9675_s9 + $0x1a8] sm:$0xff]  ;;  %v3261_v31 = vld [vmem:[%s9675_s9 + $0x1e0] sm:$0xff] }
 0x374   :  { %v2849_v35 = vadd.f32 %v6556_v29, %v6152_v26  ;;  %v6257_v26 = vcombine.low %v3241_v8, %v3245_v9  ;;  %v6268_v29 = vcombine.high %v3250_v24, %v3254_v25  ;;  %v3258_v32 = vld [vmem:[%s9675_s9 + $0x1c8] sm:$0xff]  ;;  %v3297_v9 = vld [vmem:[%s9675_s9 + $0x300] sm:$0xff] }
 0x375   :  { %v3262_v14 = vld [vmem:[%s9675_s9 + $0x1e8] sm:$0xff] }
 0x376   :  { %v2889_v36 = vadd.f32 %v6578_v30, %v2849_v35  ;;  %v3257_v30 = vld [vmem:[%s9675_s9 + $0x1c0] sm:$0xff]  ;;  %v6267_v35 = vcombine.low %v3250_v24, %v3254_v25  ;;  %v6276_v37 = vcombine.high %v3258_v32, %v3262_v14  ;;  %v3298_v16 = vld [vmem:[%s9675_s9 + $0x308] sm:$0xff] }
 0x377   :  { %v3309_v24 = vld [vmem:[%s9675_s9 + $0x360] sm:$0xff]  ;;  %v3306_v25 = vld [vmem:[%s9675_s9 + $0x348] sm:$0xff] }
 0x378   :  { %v2894_v42 = vmax.f32 %v2889_v36, 0.0  ;;  %v6274_v36 = vcombine.high %v3257_v30, %v3261_v31 }
 0x37a   :  { %v2896_v43 = vpack.c.bf16 %v2894_v42, %v2894_v42  ;;  %2895 = vst [vmem:[#allocation2] sm:$0xff] %v2894_v42  ;;  %v3270_v42 = vld [vmem:[%s9675_s9 + $0x228] sm:$0xff] }
 0x37b   :  { %v6284_v46 = vcombine.high %v3266_v41, %v3270_v42 }
 0x37c   :  { %3144 = vmatmul.mubr.bf16.vlgmr.msra.gmra.mrb[16].mxu0 %v2896_v43  ;;  %3185 = vmatmul.mubr.bf16.vlgmr.msra.gmra.mrb[16].mxu1 %v2896_v43  ;;  %v6273_v43 = vcombine.low %v3257_v30, %v3261_v31 }
 0x37d   :  { %4780 = vmatpush1.bf16.msra.mxu0 %v6217_v18  ;;  %4862 = vmatpush1.bf16.msra.mxu1 %v6219_v22  ;;  %v6251_v18 = vcombine.low %v3234_v1, %v3238_v2  ;;  %v3249_v22 = vld [vmem:[%s9675_s9 + $0x180] sm:$0xff]  ;;  %v3290_v2 = vld [vmem:[%s9675_s9 + $0x2c8] sm:$0xff] }
 0x37e   :  { %4781 = vmatprep.subr.bf16.mxu0 %v6226_v44  ;;  %4863 = vmatprep.subr.bf16.mxu1 %v6228_v45  ;;  %v6266_v12 = vcombine.high %v3249_v22, %v3253_v23  ;;  %v6265_v34 = vcombine.low %v3249_v22, %v3253_v23  ;;  %v6275_v44 = vcombine.low %v3258_v32, %v3262_v14  ;;  %v3293_v1 = vld [vmem:[%s9675_s9 + $0x2e0] sm:$0xff] }
 0x37f   :  { %v6282_v45 = vcombine.high %v3265_v39, %v3269_v40  ;;  %v3305_v23 = vld [vmem:[%s9675_s9 + $0x340] sm:$0xff] }
 0x380   :  { %v6321_v31 = vcombine.low %v3305_v23, %v3309_v24  ;;  %v3313_v14 = vld [vmem:[%s9675_s9 + $0x380] sm:$0xff] }
 0x381   :  { %4782 = vmatpush1.bf16.msra.mxu0 %v6225_v49  ;;  %4864 = vmatpush1.bf16.msra.mxu1 %v6227_v50  ;;  %v3278_v49 = vld [vmem:[%s9675_s9 + $0x268] sm:$0xff]  ;;  %v6281_v50 = vcombine.low %v3265_v39, %v3269_v40 }
 0x382   :  { %4783 = vmatprep.subr.bf16.mxu0 %v6234_v51  ;;  %4865 = vmatprep.subr.bf16.mxu1 %v6236_v6  ;;  %v6283_v51 = vcombine.low %v3266_v41, %v3270_v42  ;;  %v6290_v6 = vcombine.high %v3273_v47, %v3277_v48  ;;  %v6292_v52 = vcombine.high %v3274_v28, %v3278_v49  ;;  %v3321_v42 = vld [vmem:[%s9675_s9 + $0x3c0] sm:$0xff] }
 0x385   :  { %4784 = vmatpush1.bf16.msra.mxu0 %v6233_v57  ;;  %4866 = vmatpush1.bf16.msra.mxu1 %v6235_v59  ;;  %v3286_v57 = vld [vmem:[%s9675_s9 + $0x2a8] sm:$0xff]  ;;  %v6289_v59 = vcombine.low %v3273_v47, %v3277_v48 }
 0x386   :  { %4785 = vmatprep.subr.bf16.mxu0 %v6242_v60  ;;  %4867 = vmatprep.subr.bf16.mxu1 %v6244_v61  ;;  %v6291_v60 = vcombine.low %v3274_v28, %v3278_v49  ;;  %v6298_v61 = vcombine.high %v3281_v54, %v3285_v55  ;;  %v6300_v63 = vcombine.high %v3282_v56, %v3286_v57  ;;  %v3329_v49 = vld [vmem:[%s9675_s9 + $0x400] sm:$0xff] }
 0x389   :  { %4786 = vmatpush1.bf16.msra.mxu0 %v6241_v3  ;;  %4868 = vmatpush1.bf16.msra.mxu1 %v6243_v4  ;;  %v3294_v3 = vld [vmem:[%s9675_s9 + $0x2e8] sm:$0xff]  ;;  %v6297_v4 = vcombine.low %v3281_v54, %v3285_v55 }
 0x38a   :  { %4787 = vmatprep.subr.bf16.mxu0 %v6250_v7  ;;  %4869 = vmatprep.subr.bf16.mxu1 %v6252_v62  ;;  %v6299_v7 = vcombine.low %v3282_v56, %v3286_v57  ;;  %v6306_v62 = vcombine.high %v3289_v0, %v3293_v1  ;;  %v6308_v8 = vcombine.high %v3290_v2, %v3294_v3  ;;  %v8821_v57 = vld [vmem:[%s9674_s8] sm:$0xf]  ;;  %s5810_s8 = sshll.u32 %s7302_s17, 4  ;;  %s5811_s8 = int_to_ptr.vmem [resolvable:$true] %s5810_s8 }
 0x38b   :  { %s7253_s2 = scalar_lea.vmem %s5811_s8, 128  ;;  %p7258_p1 = scmp.lt.s32.totalorder %s5811_s8, %s5811_s8 }
 0x38c   :  { %p7254_p0 = scmp.ne.s32.totalorder %s5811_s8, %s7253_s2  ;;  %p7259_p2 = scmp.lt.s32.totalorder %s7253_s2, %s7253_s2 }
 0x38d   :  { %4788 = vmatpush1.bf16.msra.mxu0 %v6249_v19  ;;  %4870 = vmatpush1.bf16.msra.mxu1 %v6251_v18  ;;  %v3302_v19 = vld [vmem:[%s9675_s9 + $0x328] sm:$0xff]  ;;  %v6305_v18 = vcombine.low %v3289_v0, %v3293_v1 }
 0x38e   :  { %4789 = vmatprep.subr.bf16.mxu0 %v6258_v5  ;;  %4871 = vmatprep.subr.bf16.mxu1 %v6260_v21  ;;  %v6307_v5 = vcombine.low %v3290_v2, %v3294_v3  ;;  %v6314_v21 = vcombine.high %v3297_v9, %v3301_v15  ;;  %v6316_v22 = vcombine.high %v3298_v16, %v3302_v19  ;;  %p7260_p3 = por %p7259_p2, %p7258_p1 }
 0x390   :  { %p7261_p4 = pnand %p7260_p3, %p7254_p0 }
 0x391   :  { %4790 = vmatpush1.bf16.msra.mxu0 %v6257_v26  ;;  %4872 = vmatpush1.bf16.msra.mxu1 %v6259_v27  ;;  %v3310_v26 = vld [vmem:[%s9675_s9 + $0x368] sm:$0xff]  ;;  %v6313_v27 = vcombine.low %v3297_v9, %v3301_v15 }
 0x392   :  { %4791 = vmatprep.subr.bf16.mxu0 %v6266_v12  ;;  %4873 = vmatprep.subr.bf16.mxu1 %v6268_v29  ;;  %v6315_v12 = vcombine.low %v3298_v16, %v3302_v19  ;;  %v6322_v29 = vcombine.high %v3305_v23, %v3309_v24  ;;  %v6324_v30 = vcombine.high %v3306_v25, %v3310_v26  ;;  %v3342_v23 = vld [vmem:[%s9675_s9 + $0x468] sm:$0xff] }
 0x393   :  { %v6323_v32 = vcombine.low %v3306_v25, %v3310_v26  ;;  %v3345_v26 = vld [vmem:[%s9675_s9 + $0x480] sm:$0xff] }
 0x395   :  { %4792 = vmatpush1.bf16.msra.mxu0 %v6265_v34  ;;  %4874 = vmatpush1.bf16.msra.mxu1 %v6267_v35  ;;  %v3317_v34 = vld [vmem:[%s9675_s9 + $0x3a0] sm:$0xff]  ;;  %v3314_v35 = vld [vmem:[%s9675_s9 + $0x388] sm:$0xff] }
 0x396   :  { %4793 = vmatprep.subr.bf16.mxu0 %v6274_v36  ;;  %4875 = vmatprep.subr.bf16.mxu1 %v6276_v37  ;;  %v6330_v36 = vcombine.high %v3313_v14, %v3317_v34  ;;  %v3318_v37 = vld [vmem:[%s9675_s9 + $0x3a8] sm:$0xff]  ;;  %v6329_v39 = vcombine.low %v3313_v14, %v3317_v34 }
 0x397   :  { %v6331_v40 = vcombine.low %v3314_v35, %v3318_v37  ;;  %v6332_v41 = vcombine.high %v3314_v35, %v3318_v37  ;;  %v3353_v37 = vld [vmem:[%s9675_s9 + $0x4c0] sm:$0xff] }
 0x399   :  { %4794 = vmatpush1.bf16.msra.mxu0 %v6273_v43  ;;  %4876 = vmatpush1.bf16.msra.mxu1 %v6275_v44  ;;  %v3325_v43 = vld [vmem:[%s9675_s9 + $0x3e0] sm:$0xff]  ;;  %v3322_v44 = vld [vmem:[%s9675_s9 + $0x3c8] sm:$0xff] }
 0x39a   :  { %4795 = vmatprep.subr.bf16.mxu0 %v6282_v45  ;;  %4877 = vmatprep.subr.bf16.mxu1 %v6284_v46  ;;  %v6338_v45 = vcombine.high %v3321_v42, %v3325_v43  ;;  %v3326_v46 = vld [vmem:[%s9675_s9 + $0x3e8] sm:$0xff]  ;;  %v6337_v47 = vcombine.low %v3321_v42, %v3325_v43 }
 0x39b   :  { %v6339_v48 = vcombine.low %v3322_v44, %v3326_v46  ;;  %v6340_v28 = vcombine.high %v3322_v44, %v3326_v46  ;;  %v3361_v46 = vld [vmem:[%s9675_s9 + $0x500] sm:$0xff] }
 0x39d   :  { %4796 = vmatpush1.bf16.msra.mxu0 %v6281_v50  ;;  %4878 = vmatpush1.bf16.msra.mxu1 %v6283_v51  ;;  %v3333_v50 = vld [vmem:[%s9675_s9 + $0x420] sm:$0xff]  ;;  %v3330_v51 = vld [vmem:[%s9675_s9 + $0x408] sm:$0xff] }
 0x39e   :  { %4797 = vmatprep.subr.bf16.mxu0 %v6290_v6  ;;  %4879 = vmatprep.subr.bf16.mxu1 %v6292_v52  ;;  %v6346_v6 = vcombine.high %v3329_v49, %v3333_v50  ;;  %v3334_v52 = vld [vmem:[%s9675_s9 + $0x428] sm:$0xff]  ;;  %v6345_v54 = vcombine.low %v3329_v49, %v3333_v50 }
 0x39f   :  { %v6347_v55 = vcombine.low %v3330_v51, %v3334_v52  ;;  %v6348_v56 = vcombine.high %v3330_v51, %v3334_v52  ;;  %v3369_v52 = vld [vmem:[%s9675_s9 + $0x540] sm:$0xff] }
 0x3a1   :  { %4798 = vmatpush1.bf16.msra.mxu0 %v6289_v59  ;;  %4880 = vmatpush1.bf16.msra.mxu1 %v6291_v60  ;;  %v2934_v59 = vrot.slane %v8821_v57, %v7785_v11  ;;  %v2938_v60 = vrot.slane %v8821_v57, %v7793_v13 }
 0x3a2   :  { %4799 = vmatprep.subr.bf16.mxu0 %v6298_v61  ;;  %4881 = vmatprep.subr.bf16.mxu1 %v6300_v63  ;;  %v2946_v61 = vrot.slane %v8821_v57, %v7800_v17 }
 0x3a5   :  { %4800 = vmatpush1.bf16.msra.mxu0 %v6297_v4  ;;  %4882 = vmatpush1.bf16.msra.mxu1 %v6299_v7 }
 0x3a6   :  { %4801 = vmatprep.subr.bf16.mxu0 %v6306_v62  ;;  %4883 = vmatprep.subr.bf16.mxu1 %v6308_v8 }
 0x3a9   :  { %4802 = vmatpush1.bf16.msra.mxu0 %v6305_v18  ;;  %4884 = vmatpush1.bf16.msra.mxu1 %v6307_v5  ;;  %v3337_v18 = vld [vmem:[%s9675_s9 + $0x440] sm:$0xff] }
 0x3aa   :  { %4803 = vmatprep.subr.bf16.mxu0 %v6314_v21  ;;  %4885 = vmatprep.subr.bf16.mxu1 %v6316_v22  ;;  %v3341_v21 = vld [vmem:[%s9675_s9 + $0x460] sm:$0xff]  ;;  %v3338_v22 = vld [vmem:[%s9675_s9 + $0x448] sm:$0xff] }
 0x3ab   :  { %v6353_v14 = vcombine.low %v3337_v18, %v3341_v21  ;;  %v6355_v34 = vcombine.low %v3338_v22, %v3342_v23 }
 0x3ad   :  { %4804 = vmatpush1.bf16.msra.mxu0 %v6313_v27  ;;  %4886 = vmatpush1.bf16.msra.mxu1 %v6315_v12  ;;  %v6354_v27 = vcombine.high %v3337_v18, %v3341_v21  ;;  %v6356_v12 = vcombine.high %v3338_v22, %v3342_v23  ;;  %v3390_v18 = vld [vmem:[%s9675_s9 + $0x5e8] sm:$0xff] }
 0x3ae   :  { %4805 = vmatprep.subr.bf16.mxu0 %v6322_v29  ;;  %4887 = vmatprep.subr.bf16.mxu1 %v6324_v30  ;;  %v3349_v29 = vld [vmem:[%s9675_s9 + $0x4a0] sm:$0xff]  ;;  %v3346_v30 = vld [vmem:[%s9675_s9 + $0x488] sm:$0xff] }
 0x3af   :  { %v6362_v35 = vcombine.high %v3345_v26, %v3349_v29  ;;  %v6361_v42 = vcombine.low %v3345_v26, %v3349_v29  ;;  %v3393_v26 = vld [vmem:[%s9675_s9 + $0x600] sm:$0xff]  ;;  %v3398_v29 = vld [vmem:[%s9675_s9 + $0x628] sm:$0xff] }
 0x3b1   :  { %4806 = vmatpush1.bf16.msra.mxu0 %v6321_v31  ;;  %4888 = vmatpush1.bf16.msra.mxu1 %v6323_v32  ;;  %v3350_v31 = vld [vmem:[%s9675_s9 + $0x4a8] sm:$0xff] }
 0x3b2   :  { %4807 = vmatprep.subr.bf16.mxu0 %v6330_v36  ;;  %4889 = vmatprep.subr.bf16.mxu1 %v6332_v41  ;;  %v6364_v36 = vcombine.high %v3346_v30, %v3350_v31  ;;  %v3358_v41 = vld [vmem:[%s9675_s9 + $0x4e8] sm:$0xff]  ;;  %v6363_v43 = vcombine.low %v3346_v30, %v3350_v31 }
 0x3b5   :  { %4808 = vmatpush1.bf16.msra.mxu0 %v6329_v39  ;;  %4890 = vmatpush1.bf16.msra.mxu1 %v6331_v40  ;;  %v3357_v39 = vld [vmem:[%s9675_s9 + $0x4e0] sm:$0xff]  ;;  %v3354_v40 = vld [vmem:[%s9675_s9 + $0x4c8] sm:$0xff] }
 0x3b6   :  { %4809 = vmatprep.subr.bf16.mxu0 %v6338_v45  ;;  %4891 = vmatprep.subr.bf16.mxu1 %v6340_v28  ;;  %v6370_v44 = vcombine.high %v3353_v37, %v3357_v39  ;;  %v6372_v45 = vcombine.high %v3354_v40, %v3358_v41  ;;  %v3366_v28 = vld [vmem:[%s9675_s9 + $0x528] sm:$0xff]  ;;  %v6369_v49 = vcombine.low %v3353_v37, %v3357_v39 }
 0x3b7   :  { %v6371_v50 = vcombine.low %v3354_v40, %v3358_v41  ;;  %v3402_v37 = vld [vmem:[%s9675_s9 + $0x648] sm:$0xff] }
 0x3b8   :  { %v3406_v39 = vld [vmem:[%s9675_s9 + $0x668] sm:$0xff] }
 0x3b9   :  { %4810 = vmatpush1.bf16.msra.mxu0 %v6337_v47  ;;  %4892 = vmatpush1.bf16.msra.mxu1 %v6339_v48  ;;  %v3365_v47 = vld [vmem:[%s9675_s9 + $0x520] sm:$0xff]  ;;  %v3362_v48 = vld [vmem:[%s9675_s9 + $0x508] sm:$0xff] }
 0x3ba   :  { %4820 = vmatprep.subr.bf16.mxu0 %v6346_v6  ;;  %4902 = vmatprep.subr.bf16.mxu1 %v6348_v56  ;;  %v6378_v51 = vcombine.high %v3361_v46, %v3365_v47  ;;  %v6380_v6 = vcombine.high %v3362_v48, %v3366_v28  ;;  %v3374_v56 = vld [vmem:[%s9675_s9 + $0x568] sm:$0xff] }
 0x44f   :  { %v3145_v63 = vpop.f32.mrb[16].mxu0  ;;  %v8829_v0 = vpop.f32.mrb[16].mxu1 }
 0x450   :  { %v3146_v1 = vadd.f32 %v3145_v63, %v2934_v59  ;;  %v3147_v2 = vpop.f32.mrb[17].mxu0  ;;  %v3188_v3 = vpop.f32.mrb[17].mxu1  ;;  %v6377_v59 = vcombine.low %v3361_v46, %v3365_v47  ;;  %v3410_v46 = vld [vmem:[%s9675_s9 + $0x688] sm:$0xff] }
 0x451   :  { %v3148_v4 = vadd.f32 %v3147_v2, %v2938_v60  ;;  %v3189_v7 = vadd.f32 %v3188_v3, %v2946_v61  ;;  %v3149_v62 = vpop.f32.mrb[18].mxu0  ;;  %v3190_v8 = vpop.f32.mrb[18].mxu1  ;;  %v6379_v60 = vcombine.low %v3362_v48, %v3366_v28  ;;  %v3381_v2 = vld [vmem:[%s9675_s9 + $0x5a0] sm:$0xff]  ;;  %v3378_v3 = vld [vmem:[%s9675_s9 + $0x588] sm:$0xff]  ;;  %v6419_v28 = vcombine.low %v3402_v37, %v3406_v39 }
 0x452   :  { %v3193_v9 = vmax.f32 %v3146_v1, 0.0  ;;  %v3150_v15 = vpop.f32.mrb[19].mxu0  ;;  %v3191_v16 = vpop.f32.mrb[19].mxu1  ;;  %v3377_v1 = vld [vmem:[%s9675_s9 + $0x580] sm:$0xff]  ;;  %v3414_v47 = vld [vmem:[%s9675_s9 + $0x6a8] sm:$0xff] }
 0x453   :  { %v3194_v19 = vmax.f32 %v3148_v4, 0.0  ;;  %v3196_v5 = vmax.f32 %v3189_v7, 0.0  ;;  %v3382_v4 = vld [vmem:[%s9675_s9 + $0x5a8] sm:$0xff]  ;;  %v6394_v8 = vcombine.high %v3377_v1, %v3381_v2  ;;  %v3385_v15 = vld [vmem:[%s9675_s9 + $0x5c0] sm:$0xff] }
 0x454   :  { %v8845_v25 = vpack.c.bf16 %v3193_v9, %v3193_v9  ;;  %v6396_v9 = vcombine.high %v3378_v3, %v3382_v4  ;;  %v3389_v16 = vld [vmem:[%s9675_s9 + $0x5e0] sm:$0xff]  ;;  %v6395_v21 = vcombine.low %v3378_v3, %v3382_v4 }
 0x455   :  { %v8843_v24 = vpack.c.bf16 %v3194_v19, %v3194_v19  ;;  %v8861_v32 = vpack.c.bf16 %v3196_v5, %v3196_v5  ;;  %v3386_v19 = vld [vmem:[%s9675_s9 + $0x5c8] sm:$0xff]  ;;  %v6393_v5 = vcombine.low %v3377_v1, %v3381_v2  ;;  %v6402_v22 = vcombine.high %v3385_v15, %v3389_v16 }
 0x456   :  { %v6404_v23 = vcombine.high %v3386_v19, %v3390_v18  ;;  %v6401_v30 = vcombine.low %v3385_v15, %v3389_v16  ;;  %v6403_v31 = vcombine.low %v3386_v19, %v3390_v18  ;;  %v3426_v1 = vld [vmem:[%s9675_s9 + $0x708] sm:$0xff] }
 0x457   :  { %4811 = vmatprep.mubr.bf16.mxu0 %v8843_v24  ;;  %4893 = vmatprep.mubr.bf16.mxu1 %v8843_v24  ;;  %v3430_v2 = vld [vmem:[%s9675_s9 + $0x728] sm:$0xff] }
 0x458   :  { %4812 = vmatmul.mubr.bf16.vlgmr.msra.gmra.mrb[20].mxu0 %v8845_v25  ;;  %4894 = vmatmul.mubr.bf16.vlgmr.msra.gmra.mrb[20].mxu1 %v8845_v25  ;;  %v3434_v15 = vld [vmem:[%s9675_s9 + $0x748] sm:$0xff]  ;;  %v6443_v18 = vcombine.low %v3426_v1, %v3430_v2 }
 0x459   :  { %4821 = vmatpush1.bf16.msra.mxu0 %v6345_v54  ;;  %4903 = vmatpush1.bf16.msra.mxu1 %v6347_v55  ;;  %v3373_v54 = vld [vmem:[%s9675_s9 + $0x560] sm:$0xff]  ;;  %v3370_v55 = vld [vmem:[%s9675_s9 + $0x548] sm:$0xff] }
 0x45a   :  { %4852 = vmatprep.mubr.bf16.mxu0 %v8861_v32  ;;  %4934 = vmatprep.mubr.bf16.mxu1 %v8861_v32  ;;  %v6386_v61 = vcombine.high %v3369_v52, %v3373_v54  ;;  %v6388_v63 = vcombine.high %v3370_v55, %v3374_v56  ;;  %v6385_v7 = vcombine.low %v3369_v52, %v3373_v54  ;;  %v3418_v52 = vld [vmem:[%s9675_s9 + $0x6c8] sm:$0xff] }
 0x45b   :  { %4822 = vmatprep.subr.bf16.mxu0 %v6354_v27  ;;  %4904 = vmatprep.subr.bf16.mxu1 %v6356_v12  ;;  %v6387_v62 = vcombine.low %v3370_v55, %v3374_v56  ;;  %v3397_v27 = vld [vmem:[%s9675_s9 + $0x620] sm:$0xff]  ;;  %v3394_v12 = vld [vmem:[%s9675_s9 + $0x608] sm:$0xff]  ;;  %v6427_v56 = vcombine.low %v3410_v46, %v3414_v47 }
 0x45c   :  { %v6409_v40 = vcombine.low %v3393_v26, %v3397_v27  ;;  %v6411_v41 = vcombine.low %v3394_v12, %v3398_v29  ;;  %v3422_v54 = vld [vmem:[%s9675_s9 + $0x6e8] sm:$0xff] }
 0x45d   :  { %4823 = vmatpush1.bf16.msra.mxu0 %v6353_v14  ;;  %4905 = vmatpush1.bf16.msra.mxu1 %v6355_v34  ;;  %v6410_v14 = vcombine.high %v3393_v26, %v3397_v27  ;;  %v6412_v34 = vcombine.high %v3394_v12, %v3398_v29  ;;  %v6435_v4 = vcombine.low %v3418_v52, %v3422_v54  ;;  %v3438_v16 = vld [vmem:[%s9675_s9 + $0x768] sm:$0xff] }
 0x45e   :  { %4824 = vmatprep.subr.bf16.mxu0 %v6362_v35  ;;  %4906 = vmatprep.subr.bf16.mxu1 %v6364_v36  ;;  %v3401_v35 = vld [vmem:[%s9675_s9 + $0x640] sm:$0xff]  ;;  %v3442_v26 = vld [vmem:[%s9675_s9 + $0x788] sm:$0xff]  ;;  %v6451_v29 = vcombine.low %v3434_v15, %v3438_v16 }
 0x45f   :  { %v3405_v36 = vld [vmem:[%s9675_s9 + $0x660] sm:$0xff]  ;;  %v3446_v27 = vld [vmem:[%s9675_s9 + $0x7a8] sm:$0xff] }
 0x460   :  { %v6417_v48 = vcombine.low %v3401_v35, %v3405_v36 }
 0x461   :  { %4825 = vmatpush1.bf16.msra.mxu0 %v6361_v42  ;;  %4907 = vmatpush1.bf16.msra.mxu1 %v6363_v43  ;;  %v6418_v42 = vcombine.high %v3401_v35, %v3405_v36  ;;  %v6420_v43 = vcombine.high %v3402_v37, %v3406_v39  ;;  %v3453_v35 = vld [vmem:[%s9675_s9 + $0x7e0] sm:$0xff]  ;;  %v3450_v36 = vld [vmem:[%s9675_s9 + $0x7c8] sm:$0xff]  ;;  %v6459_v39 = vcombine.low %v3442_v26, %v3446_v27 }
 0x462   :  { %4826 = vmatprep.subr.bf16.mxu0 %v6370_v44  ;;  %4908 = vmatprep.subr.bf16.mxu1 %v6372_v45  ;;  %v3409_v44 = vld [vmem:[%s9675_s9 + $0x680] sm:$0xff] }
 0x463   :  { %v3413_v45 = vld [vmem:[%s9675_s9 + $0x6a0] sm:$0xff] }
 0x464   :  { %v6425_v55 = vcombine.low %v3409_v44, %v3413_v45 }
 0x465   :  { %4827 = vmatpush1.bf16.msra.mxu0 %v6369_v49  ;;  %4909 = vmatpush1.bf16.msra.mxu1 %v6371_v50  ;;  %v6426_v49 = vcombine.high %v3409_v44, %v3413_v45  ;;  %v6428_v50 = vcombine.high %v3410_v46, %v3414_v47  ;;  %v3207_v44 = vld [vmem:[%s9675_s9 + $0x30] sm:$0xff]  ;;  %v3204_v45 = vld [vmem:[%s9675_s9 + $0x18] sm:$0xff] }
 0x466   :  { %4828 = vmatprep.subr.bf16.mxu0 %v6378_v51  ;;  %4910 = vmatprep.subr.bf16.mxu1 %v6380_v6  ;;  %v3417_v51 = vld [vmem:[%s9675_s9 + $0x6c0] sm:$0xff] }
 0x467   :  { %v3421_v6 = vld [vmem:[%s9675_s9 + $0x6e0] sm:$0xff] }
 0x468   :  { %v6433_v3 = vcombine.low %v3417_v51, %v3421_v6 }
 0x469   :  { %4829 = vmatpush1.bf16.msra.mxu0 %v6377_v59  ;;  %4911 = vmatpush1.bf16.msra.mxu1 %v6379_v60  ;;  %v6434_v59 = vcombine.high %v3417_v51, %v3421_v6  ;;  %v6436_v60 = vcombine.high %v3418_v52, %v3422_v54  ;;  %v3215_v51 = vld [vmem:[%s9675_s9 + $0x70] sm:$0xff]  ;;  %v3212_v6 = vld [vmem:[%s9675_s9 + $0x58] sm:$0xff] }
 0x46a   :  { %4830 = vmatprep.subr.bf16.mxu0 %v6386_v61  ;;  %4912 = vmatprep.subr.bf16.mxu1 %v6388_v63  ;;  %v3425_v61 = vld [vmem:[%s9675_s9 + $0x700] sm:$0xff]  ;;  %v3216_v52 = vld [vmem:[%s9675_s9 + $0x78] sm:$0xff] }
 0x46b   :  { %v3429_v63 = vld [vmem:[%s9675_s9 + $0x720] sm:$0xff] }
 0x46c   :  { %v6441_v19 = vcombine.low %v3425_v61, %v3429_v63 }
 0x46d   :  { %4831 = vmatpush1.bf16.msra.mxu0 %v6385_v7  ;;  %4913 = vmatpush1.bf16.msra.mxu1 %v6387_v62  ;;  %v6442_v7 = vcombine.high %v3425_v61, %v3429_v63  ;;  %v6444_v62 = vcombine.high %v3426_v1, %v3430_v2  ;;  %v3219_v61 = vld [vmem:[%s9675_s9 + $0x90] sm:$0xff]  ;;  %v3220_v1 = vld [vmem:[%s9675_s9 + $0x98] sm:$0xff] }
 0x46e   :  { %4832 = vmatprep.subr.bf16.mxu0 %v6394_v8  ;;  %4914 = vmatprep.subr.bf16.mxu1 %v6396_v9  ;;  %v3433_v8 = vld [vmem:[%s9675_s9 + $0x740] sm:$0xff]  ;;  %v3223_v63 = vld [vmem:[%s9675_s9 + $0xb0] sm:$0xff]  ;;  %v3224_v2 = vld [vmem:[%s9675_s9 + $0xb8] sm:$0xff] }
 0x46f   :  { %v3437_v9 = vld [vmem:[%s9675_s9 + $0x760] sm:$0xff] }
 0x470   :  { %v6449_v12 = vcombine.low %v3433_v8, %v3437_v9 }
 0x471   :  { %4833 = vmatpush1.bf16.msra.mxu0 %v6393_v5  ;;  %4915 = vmatpush1.bf16.msra.mxu1 %v6395_v21  ;;  %v6450_v5 = vcombine.high %v3433_v8, %v3437_v9  ;;  %v6452_v21 = vcombine.high %v3434_v15, %v3438_v16  ;;  %v3227_v8 = vld [vmem:[%s9675_s9 + $0xd0] sm:$0xff]  ;;  %v3228_v15 = vld [vmem:[%s9675_s9 + $0xd8] sm:$0xff]  ;;  %v6237_v16 = vcombine.low %v3219_v61, %v3223_v63 }
 0x472   :  { %4834 = vmatprep.subr.bf16.mxu0 %v6402_v22  ;;  %4916 = vmatprep.subr.bf16.mxu1 %v6404_v23  ;;  %v3441_v22 = vld [vmem:[%s9675_s9 + $0x780] sm:$0xff]  ;;  %v3231_v9 = vld [vmem:[%s9675_s9 + $0xf0] sm:$0xff] }
 0x473   :  { %v3445_v23 = vld [vmem:[%s9675_s9 + $0x7a0] sm:$0xff] }
 0x474   :  { %v6457_v37 = vcombine.low %v3441_v22, %v3445_v23 }
 0x475   :  { %4835 = vmatpush1.bf16.msra.mxu0 %v6401_v30  ;;  %4917 = vmatpush1.bf16.msra.mxu1 %v6403_v31  ;;  %v2942_v30 = vrot.slane %v8821_v57, %v7959_v33  ;;  %v6458_v31 = vcombine.high %v3441_v22, %v3445_v23  ;;  %v3454_v57 = vld [vmem:[%s9675_s9 + $0x7e8] sm:$0xff]  ;;  %v3239_v22 = vld [vmem:[%s9675_s9 + $0x130] sm:$0xff]  ;;  %v3236_v23 = vld [vmem:[%s9675_s9 + $0x118] sm:$0xff] }
 0x476   :  { %4836 = vmatprep.subr.bf16.mxu0 %v6410_v14  ;;  %4918 = vmatprep.subr.bf16.mxu1 %v6412_v34  ;;  %v6460_v14 = vcombine.high %v3442_v26, %v3446_v27  ;;  %v3449_v34 = vld [vmem:[%s9675_s9 + $0x7c0] sm:$0xff]  ;;  %v6467_v47 = vcombine.low %v3450_v36, %v3454_v57  ;;  %v3240_v26 = vld [vmem:[%s9675_s9 + $0x138] sm:$0xff]  ;;  %v6245_v27 = vcombine.low %v3227_v8, %v3231_v9 }
 0x477   :  { %v6465_v46 = vcombine.low %v3449_v34, %v3453_v35 }
 0x479   :  { %4837 = vmatpush1.bf16.msra.mxu0 %v6409_v40  ;;  %4919 = vmatpush1.bf16.msra.mxu1 %v6411_v41  ;;  %v3187_v40 = vadd.f32 %v8829_v0, %v2942_v30  ;;  %v6466_v41 = vcombine.high %v3449_v34, %v3453_v35  ;;  %v3208_v0 = vld [vmem:[%s9675_s9 + $0x38] sm:$0xff]  ;;  %v6256_v30 = vcombine.high %v3236_v23, %v3240_v26 }
 0x47a   :  { %4838 = vmatprep.subr.bf16.mxu0 %v6418_v42  ;;  %4920 = vmatprep.subr.bf16.mxu1 %v6420_v43  ;;  %v6468_v42 = vcombine.high %v3450_v36, %v3454_v57  ;;  %v3203_v43 = vld [vmem:[%s9675_s9 + $0x10] sm:$0xff]  ;;  %v3244_v34 = vld [vmem:[%s9675_s9 + $0x158] sm:$0xff]  ;;  %v6255_v57 = vcombine.low %v3236_v23, %v3240_v26 }
 0x47b   :  { %v6221_v54 = vcombine.low %v3203_v43, %v3207_v44  ;;  %v3248_v35 = vld [vmem:[%s9675_s9 + $0x178] sm:$0xff] }
 0x47d   :  { %4839 = vmatpush1.bf16.msra.mxu0 %v6417_v48  ;;  %4921 = vmatpush1.bf16.msra.mxu1 %v6419_v28  ;;  %v3195_v48 = vmax.f32 %v3187_v40, 0.0  ;;  %v6222_v28 = vcombine.high %v3203_v43, %v3207_v44  ;;  %v3251_v40 = vld [vmem:[%s9675_s9 + $0x190] sm:$0xff]  ;;  %v3256_v43 = vld [vmem:[%s9675_s9 + $0x1b8] sm:$0xff] }
 0x47e   :  { %4840 = vmatprep.subr.bf16.mxu0 %v6426_v49  ;;  %4922 = vmatprep.subr.bf16.mxu1 %v6428_v50  ;;  %v6224_v49 = vcombine.high %v3204_v45, %v3208_v0  ;;  %v3211_v50 = vld [vmem:[%s9675_s9 + $0x50] sm:$0xff] }
 0x481   :  { %4841 = vmatpush1.bf16.msra.mxu0 %v6425_v55  ;;  %4923 = vmatpush1.bf16.msra.mxu1 %v6427_v56  ;;  %v9050_v55 = vpack.c.bf16 %v3195_v48, %v3195_v48  ;;  %v6223_v56 = vcombine.low %v3204_v45, %v3208_v0  ;;  %v6263_v45 = vcombine.low %v3244_v34, %v3248_v35  ;;  %v3263_v48 = vld [vmem:[%s9675_s9 + $0x1f0] sm:$0xff] }
 0x482   :  { %4842 = vmatprep.subr.bf16.mxu0 %v6434_v59  ;;  %4924 = vmatprep.subr.bf16.mxu1 %v6436_v60  ;;  %v6230_v59 = vcombine.high %v3211_v50, %v3215_v51  ;;  %v6232_v60 = vcombine.high %v3212_v6, %v3216_v52 }
 0x485   :  { %4843 = vmatpush1.bf16.msra.mxu0 %v6433_v3  ;;  %4925 = vmatpush1.bf16.msra.mxu1 %v6435_v4  ;;  %v6229_v3 = vcombine.low %v3211_v50, %v3215_v51  ;;  %v6231_v4 = vcombine.low %v3212_v6, %v3216_v52 }
 0x486   :  { %4844 = vmatprep.subr.bf16.mxu0 %v6442_v7  ;;  %4926 = vmatprep.subr.bf16.mxu1 %v6444_v62  ;;  %v6238_v7 = vcombine.high %v3219_v61, %v3223_v63  ;;  %v6240_v62 = vcombine.high %v3220_v1, %v3224_v2 }
 0x489   :  { %4845 = vmatpush1.bf16.msra.mxu0 %v6441_v19  ;;  %4927 = vmatpush1.bf16.msra.mxu1 %v6443_v18  ;;  %v6239_v19 = vcombine.low %v3220_v1, %v3224_v2  ;;  %v6246_v18 = vcombine.high %v3227_v8, %v3231_v9 }
 0x48a   :  { %4846 = vmatprep.subr.bf16.mxu0 %v6450_v5  ;;  %4928 = vmatprep.subr.bf16.mxu1 %v6452_v21  ;;  %v3235_v21 = vld [vmem:[%s9675_s9 + $0x110] sm:$0xff] }
 0x48b   :  { %v6253_v36 = vcombine.low %v3235_v21, %v3239_v22 }
 0x48d   :  { %4847 = vmatpush1.bf16.msra.mxu0 %v6449_v12  ;;  %4929 = vmatpush1.bf16.msra.mxu1 %v6451_v29  ;;  %v6254_v29 = vcombine.high %v3235_v21, %v3239_v22 }
 0x48e   :  { %4848 = vmatprep.subr.bf16.mxu0 %v6458_v31  ;;  %4930 = vmatprep.subr.bf16.mxu1 %v6460_v14  ;;  %v3243_v31 = vld [vmem:[%s9675_s9 + $0x150] sm:$0xff] }
 0x48f   :  { %v3247_v14 = vld [vmem:[%s9675_s9 + $0x170] sm:$0xff] }
 0x490   :  { %v6261_v44 = vcombine.low %v3243_v31, %v3247_v14 }
 0x491   :  { %4849 = vmatpush1.bf16.msra.mxu0 %v6457_v37  ;;  %4931 = vmatpush1.bf16.msra.mxu1 %v6459_v39  ;;  %v6262_v37 = vcombine.high %v3243_v31, %v3247_v14  ;;  %v6264_v39 = vcombine.high %v3244_v34, %v3248_v35 }
 0x492   :  { %4850 = vmatprep.subr.bf16.mxu0 %v6466_v41  ;;  %4932 = vmatprep.subr.bf16.mxu1 %v6468_v42  ;;  %v3255_v41 = vld [vmem:[%s9675_s9 + $0x1b0] sm:$0xff]  ;;  %v3252_v42 = vld [vmem:[%s9675_s9 + $0x198] sm:$0xff] }
 0x493   :  { %v6270_v0 = vcombine.high %v3251_v40, %v3255_v41  ;;  %v6269_v50 = vcombine.low %v3251_v40, %v3255_v41  ;;  %v6271_v51 = vcombine.low %v3252_v42, %v3256_v43 }
 0x495   :  { %4851 = vmatpush1.bf16.msra.mxu0 %v6465_v46  ;;  %4933 = vmatpush1.bf16.msra.mxu1 %v6467_v47  ;;  %v6272_v46 = vcombine.high %v3252_v42, %v3256_v43  ;;  %v3259_v47 = vld [vmem:[%s9675_s9 + $0x1d0] sm:$0xff] }
 0x496   :  { %4943 = vmatprep.subr.bf16.mxu0 %v6222_v28  ;;  %5025 = vmatprep.subr.bf16.mxu1 %v6224_v49  ;;  %v3260_v28 = vld [vmem:[%s9675_s9 + $0x1d8] sm:$0xff]  ;;  %v6278_v6 = vcombine.high %v3259_v47, %v3263_v48  ;;  %v6277_v61 = vcombine.low %v3259_v47, %v3263_v48 }
 0x497   :  { %v3264_v49 = vld [vmem:[%s9675_s9 + $0x1f8] sm:$0xff] }
 0x498   :  { %4853 = vmatmul.mubr.bf16.vlgmr.msra.gmra.mrb[20].mxu0 %v9050_v55  ;;  %4935 = vmatmul.mubr.bf16.vlgmr.msra.gmra.mrb[20].mxu1 %v9050_v55  ;;  %v6280_v52 = vcombine.high %v3260_v28, %v3264_v49  ;;  %v6279_v63 = vcombine.low %v3260_v28, %v3264_v49 }
 0x499   :  { %4944 = vmatpush1.bf16.msra.mxu0 %v6221_v54  ;;  %4975 = vmatprep.mubr.bf16.mxu0 %v8843_v24  ;;  %v3267_v54 = vld [vmem:[%s9675_s9 + $0x210] sm:$0xff] }
 0x49a   :  { %5026 = vmatpush1.bf16.msra.mxu1 %v6223_v56  ;;  %5057 = vmatprep.mubr.bf16.mxu1 %v8843_v24  ;;  %v3232_v24 = vld [vmem:[%s9675_s9 + $0xf8] sm:$0xff]  ;;  %v3271_v56 = vld [vmem:[%s9675_s9 + $0x230] sm:$0xff] }
 0x49b   :  { %4945 = vmatprep.subr.bf16.mxu0 %v6230_v59  ;;  %5027 = vmatprep.subr.bf16.mxu1 %v6232_v60  ;;  %v6248_v5 = vcombine.high %v3228_v15, %v3232_v24  ;;  %v6247_v12 = vcombine.low %v3228_v15, %v3232_v24  ;;  %v3268_v59 = vld [vmem:[%s9675_s9 + $0x218] sm:$0xff]  ;;  %v6286_v1 = vcombine.high %v3267_v54, %v3271_v56 }
 0x49c   :  { %v3272_v60 = vld [vmem:[%s9675_s9 + $0x238] sm:$0xff]  ;;  %v6285_v8 = vcombine.low %v3267_v54, %v3271_v56 }
 0x49d   :  { %4946 = vmatpush1.bf16.msra.mxu0 %v6229_v3  ;;  %v6288_v2 = vcombine.high %v3268_v59, %v3272_v60  ;;  %v3275_v3 = vld [vmem:[%s9675_s9 + $0x250] sm:$0xff]  ;;  %v6287_v9 = vcombine.low %v3268_v59, %v3272_v60 }
 0x49e   :  { %5028 = vmatpush1.bf16.msra.mxu1 %v6231_v4  ;;  %4947 = vmatprep.subr.bf16.mxu0 %v6238_v7  ;;  %v3279_v4 = vld [vmem:[%s9675_s9 + $0x270] sm:$0xff]  ;;  %v3276_v7 = vld [vmem:[%s9675_s9 + $0x258] sm:$0xff] }
 0x49f   :  { %5029 = vmatprep.subr.bf16.mxu1 %v6240_v62  ;;  %v3280_v62 = vld [vmem:[%s9675_s9 + $0x278] sm:$0xff]  ;;  %v6294_v15 = vcombine.high %v3275_v3, %v3279_v4  ;;  %v6293_v21 = vcombine.low %v3275_v3, %v3279_v4 }
 0x4a0   :  { %v6296_v24 = vcombine.high %v3276_v7, %v3280_v62  ;;  %v6295_v22 = vcombine.low %v3276_v7, %v3280_v62 }
 0x4a1   :  { %4948 = vmatpush1.bf16.msra.mxu0 %v6237_v16  ;;  %v3283_v16 = vld [vmem:[%s9675_s9 + $0x290] sm:$0xff] }
 0x4a2   :  { %5030 = vmatpush1.bf16.msra.mxu1 %v6239_v19  ;;  %4949 = vmatprep.subr.bf16.mxu0 %v6246_v18  ;;  %v3287_v19 = vld [vmem:[%s9675_s9 + $0x2b0] sm:$0xff]  ;;  %v3284_v18 = vld [vmem:[%s9675_s9 + $0x298] sm:$0xff] }
 0x4a3   :  { %5031 = vmatprep.subr.bf16.mxu1 %v6248_v5  ;;  %v3288_v5 = vld [vmem:[%s9675_s9 + $0x2b8] sm:$0xff]  ;;  %v6302_v23 = vcombine.high %v3283_v16, %v3287_v19  ;;  %v6301_v31 = vcombine.low %v3283_v16, %v3287_v19 }
 0x4a4   :  { %v6304_v26 = vcombine.high %v3284_v18, %v3288_v5  ;;  %v6303_v14 = vcombine.low %v3284_v18, %v3288_v5 }
 0x4a5   :  { %4950 = vmatpush1.bf16.msra.mxu0 %v6245_v27  ;;  %v3291_v27 = vld [vmem:[%s9675_s9 + $0x2d0] sm:$0xff] }
 0x4a6   :  { %5032 = vmatpush1.bf16.msra.mxu1 %v6247_v12  ;;  %4951 = vmatprep.subr.bf16.mxu0 %v6254_v29  ;;  %v3295_v12 = vld [vmem:[%s9675_s9 + $0x2f0] sm:$0xff]  ;;  %v3292_v29 = vld [vmem:[%s9675_s9 + $0x2d8] sm:$0xff] }
 0x4a7   :  { %5033 = vmatprep.subr.bf16.mxu1 %v6256_v30  ;;  %v3296_v30 = vld [vmem:[%s9675_s9 + $0x2f8] sm:$0xff]  ;;  %v6310_v34 = vcombine.high %v3291_v27, %v3295_v12  ;;  %v6309_v40 = vcombine.low %v3291_v27, %v3295_v12 }
 0x4a8   :  { %v6312_v35 = vcombine.high %v3292_v29, %v3296_v30  ;;  %v6311_v41 = vcombine.low %v3292_v29, %v3296_v30  ;;  %v3344_v27 = vld [vmem:[%s9675_s9 + $0x478] sm:$0xff]  ;;  %v3347_v30 = vld [vmem:[%s9675_s9 + $0x490] sm:$0xff] }
 0x4a9   :  { %4952 = vmatpush1.bf16.msra.mxu0 %v6253_v36  ;;  %v3299_v36 = vld [vmem:[%s9675_s9 + $0x310] sm:$0xff] }
 0x4aa   :  { %5034 = vmatpush1.bf16.msra.mxu1 %v6255_v57  ;;  %4953 = vmatprep.subr.bf16.mxu0 %v6262_v37  ;;  %v3303_v57 = vld [vmem:[%s9675_s9 + $0x330] sm:$0xff]  ;;  %v3300_v37 = vld [vmem:[%s9675_s9 + $0x318] sm:$0xff] }
 0x4ab   :  { %5035 = vmatprep.subr.bf16.mxu1 %v6264_v39  ;;  %v3304_v39 = vld [vmem:[%s9675_s9 + $0x338] sm:$0xff]  ;;  %v6318_v42 = vcombine.high %v3299_v36, %v3303_v57  ;;  %v6317_v47 = vcombine.low %v3299_v36, %v3303_v57 }
 0x4ac   :  { %v6320_v43 = vcombine.high %v3300_v37, %v3304_v39  ;;  %v6319_v48 = vcombine.low %v3300_v37, %v3304_v39 }
 0x4ad   :  { %4954 = vmatpush1.bf16.msra.mxu0 %v6261_v44  ;;  %v3307_v44 = vld [vmem:[%s9675_s9 + $0x350] sm:$0xff] }
 0x4ae   :  { %5036 = vmatpush1.bf16.msra.mxu1 %v6263_v45  ;;  %4955 = vmatprep.subr.bf16.mxu0 %v6270_v0  ;;  %v3311_v45 = vld [vmem:[%s9675_s9 + $0x370] sm:$0xff]  ;;  %v3308_v0 = vld [vmem:[%s9675_s9 + $0x358] sm:$0xff] }
 0x4af   :  { %5037 = vmatprep.subr.bf16.mxu1 %v6272_v46  ;;  %v3312_v46 = vld [vmem:[%s9675_s9 + $0x378] sm:$0xff]  ;;  %v6326_v28 = vcombine.high %v3307_v44, %v3311_v45  ;;  %v6325_v54 = vcombine.low %v3307_v44, %v3311_v45 }
 0x4b0   :  { %v6328_v49 = vcombine.high %v3308_v0, %v3312_v46  ;;  %v6327_v56 = vcombine.low %v3308_v0, %v3312_v46  ;;  %v3363_v0 = vld [vmem:[%s9675_s9 + $0x510] sm:$0xff] }
 0x4b1   :  { %4956 = vmatpush1.bf16.msra.mxu0 %v6269_v50  ;;  %v3315_v50 = vld [vmem:[%s9675_s9 + $0x390] sm:$0xff] }
 0x4b2   :  { %5038 = vmatpush1.bf16.msra.mxu1 %v6271_v51  ;;  %4957 = vmatprep.subr.bf16.mxu0 %v6278_v6  ;;  %v3319_v51 = vld [vmem:[%s9675_s9 + $0x3b0] sm:$0xff]  ;;  %v3316_v6 = vld [vmem:[%s9675_s9 + $0x398] sm:$0xff] }
 0x4b3   :  { %5039 = vmatprep.subr.bf16.mxu1 %v6280_v52  ;;  %v3320_v52 = vld [vmem:[%s9675_s9 + $0x3b8] sm:$0xff]  ;;  %v6334_v59 = vcombine.high %v3315_v50, %v3319_v51  ;;  %v6333_v3 = vcombine.low %v3315_v50, %v3319_v51  ;;  %v3367_v46 = vld [vmem:[%s9675_s9 + $0x530] sm:$0xff] }
 0x4b4   :  { %v6336_v60 = vcombine.high %v3316_v6, %v3320_v52  ;;  %v6335_v4 = vcombine.low %v3316_v6, %v3320_v52  ;;  %v6382_v50 = vcombine.high %v3363_v0, %v3367_v46  ;;  %v3371_v6 = vld [vmem:[%s9675_s9 + $0x550] sm:$0xff] }
 0x4b5   :  { %4958 = vmatpush1.bf16.msra.mxu0 %v6277_v61  ;;  %v3323_v61 = vld [vmem:[%s9675_s9 + $0x3d0] sm:$0xff] }
 0x4b6   :  { %5040 = vmatpush1.bf16.msra.mxu1 %v6279_v63  ;;  %4959 = vmatprep.subr.bf16.mxu0 %v6286_v1  ;;  %v3327_v63 = vld [vmem:[%s9675_s9 + $0x3f0] sm:$0xff]  ;;  %v3324_v1 = vld [vmem:[%s9675_s9 + $0x3d8] sm:$0xff] }
 0x4b7   :  { %5041 = vmatprep.subr.bf16.mxu1 %v6288_v2  ;;  %v3328_v2 = vld [vmem:[%s9675_s9 + $0x3f8] sm:$0xff]  ;;  %v6342_v7 = vcombine.high %v3323_v61, %v3327_v63  ;;  %v6341_v16 = vcombine.low %v3323_v61, %v3327_v63  ;;  %v3375_v52 = vld [vmem:[%s9675_s9 + $0x570] sm:$0xff] }
 0x4b8   :  { %v6344_v62 = vcombine.high %v3324_v1, %v3328_v2  ;;  %v6343_v19 = vcombine.low %v3324_v1, %v3328_v2  ;;  %v6390_v61 = vcombine.high %v3371_v6, %v3375_v52  ;;  %v3379_v1 = vld [vmem:[%s9675_s9 + $0x590] sm:$0xff] }
 0x4b9   :  { %4960 = vmatpush1.bf16.msra.mxu0 %v6285_v8  ;;  %v3331_v8 = vld [vmem:[%s9675_s9 + $0x410] sm:$0xff] }
 0x4ba   :  { %5042 = vmatpush1.bf16.msra.mxu1 %v6287_v9  ;;  %4961 = vmatprep.subr.bf16.mxu0 %v6294_v15  ;;  %v3335_v9 = vld [vmem:[%s9675_s9 + $0x430] sm:$0xff]  ;;  %v3332_v15 = vld [vmem:[%s9675_s9 + $0x418] sm:$0xff] }
 0x4bb   :  { %5043 = vmatprep.subr.bf16.mxu1 %v6296_v24  ;;  %v3336_v24 = vld [vmem:[%s9675_s9 + $0x438] sm:$0xff]  ;;  %v6350_v18 = vcombine.high %v3331_v8, %v3335_v9  ;;  %v3383_v2 = vld [vmem:[%s9675_s9 + $0x5b0] sm:$0xff] }
 0x4bc   :  { %v6352_v5 = vcombine.high %v3332_v15, %v3336_v24  ;;  %v6351_v12 = vcombine.low %v3332_v15, %v3336_v24  ;;  %v3387_v15 = vld [vmem:[%s9675_s9 + $0x5d0] sm:$0xff] }
 0x4bd   :  { %4962 = vmatpush1.bf16.msra.mxu0 %v6293_v21  ;;  %v3339_v21 = vld [vmem:[%s9675_s9 + $0x450] sm:$0xff] }
 0x4be   :  { %5044 = vmatpush1.bf16.msra.mxu1 %v6295_v22  ;;  %4963 = vmatprep.subr.bf16.mxu0 %v6302_v23  ;;  %v3343_v22 = vld [vmem:[%s9675_s9 + $0x470] sm:$0xff]  ;;  %v6349_v23 = vcombine.low %v3331_v8, %v3335_v9  ;;  %v6398_v8 = vcombine.high %v3379_v1, %v3383_v2 }
 0x4bf   :  { %5045 = vmatprep.subr.bf16.mxu1 %v6304_v26  ;;  %v3340_v26 = vld [vmem:[%s9675_s9 + $0x458] sm:$0xff]  ;;  %v6358_v29 = vcombine.high %v3339_v21, %v3343_v22  ;;  %v6357_v36 = vcombine.low %v3339_v21, %v3343_v22  ;;  %v3391_v24 = vld [vmem:[%s9675_s9 + $0x5f0] sm:$0xff] }
 0x4c0   :  { %v6359_v57 = vcombine.low %v3340_v26, %v3344_v27  ;;  %v6406_v21 = vcombine.high %v3387_v15, %v3391_v24 }
 0x4c1   :  { %4964 = vmatpush1.bf16.msra.mxu0 %v6301_v31  ;;  %v3351_v31 = vld [vmem:[%s9675_s9 + $0x4b0] sm:$0xff] }
 0x4c2   :  { %5046 = vmatpush1.bf16.msra.mxu1 %v6303_v14  ;;  %4965 = vmatprep.subr.bf16.mxu0 %v6310_v34  ;;  %v6360_v14 = vcombine.high %v3340_v26, %v3344_v27  ;;  %v3348_v34 = vld [vmem:[%s9675_s9 + $0x498] sm:$0xff]  ;;  %v6366_v37 = vcombine.high %v3347_v30, %v3351_v31  ;;  %v3399_v26 = vld [vmem:[%s9675_s9 + $0x630] sm:$0xff] }
 0x4c3   :  { %5047 = vmatprep.subr.bf16.mxu1 %v6312_v35  ;;  %v3352_v35 = vld [vmem:[%s9675_s9 + $0x4b8] sm:$0xff] }
 0x4c4   :  { %v6368_v39 = vcombine.high %v3348_v34, %v3352_v35  ;;  %v3396_v27 = vld [vmem:[%s9675_s9 + $0x618] sm:$0xff] }
 0x4c5   :  { %4966 = vmatpush1.bf16.msra.mxu0 %v6309_v40  ;;  %v3355_v40 = vld [vmem:[%s9675_s9 + $0x4d0] sm:$0xff] }
 0x4c6   :  { %5048 = vmatpush1.bf16.msra.mxu1 %v6311_v41  ;;  %4967 = vmatprep.subr.bf16.mxu0 %v6318_v42  ;;  %v3359_v41 = vld [vmem:[%s9675_s9 + $0x4f0] sm:$0xff]  ;;  %v3360_v42 = vld [vmem:[%s9675_s9 + $0x4f8] sm:$0xff] }
 0x4c7   :  { %5049 = vmatprep.subr.bf16.mxu1 %v6320_v43  ;;  %v6367_v43 = vcombine.low %v3348_v34, %v3352_v35  ;;  %v6374_v44 = vcombine.high %v3355_v40, %v3359_v41  ;;  %v3403_v34 = vld [vmem:[%s9675_s9 + $0x650] sm:$0xff] }
 0x4c8   :  { %v3407_v35 = vld [vmem:[%s9675_s9 + $0x670] sm:$0xff] }
 0x4c9   :  { %4968 = vmatpush1.bf16.msra.mxu0 %v6317_v47  ;;  %v3364_v47 = vld [vmem:[%s9675_s9 + $0x518] sm:$0xff] }
 0x4ca   :  { %5050 = vmatpush1.bf16.msra.mxu1 %v6319_v48  ;;  %4969 = vmatprep.subr.bf16.mxu0 %v6326_v28  ;;  %v3368_v48 = vld [vmem:[%s9675_s9 + $0x538] sm:$0xff]  ;;  %v6373_v28 = vcombine.low %v3355_v40, %v3359_v41  ;;  %v6422_v40 = vcombine.high %v3403_v34, %v3407_v35 }
 0x4cb   :  { %5051 = vmatprep.subr.bf16.mxu1 %v6328_v49  ;;  %v6384_v51 = vcombine.high %v3364_v47, %v3368_v48 }
 0x4cd   :  { %4970 = vmatpush1.bf16.msra.mxu0 %v6325_v54  ;;  %v3372_v54 = vld [vmem:[%s9675_s9 + $0x558] sm:$0xff] }
 0x4ce   :  { %5052 = vmatpush1.bf16.msra.mxu1 %v6327_v56  ;;  %4971 = vmatprep.subr.bf16.mxu0 %v6334_v59  ;;  %v3376_v56 = vld [vmem:[%s9675_s9 + $0x578] sm:$0xff]  ;;  %v6381_v59 = vcombine.low %v3363_v0, %v3367_v46 }
 0x4cf   :  { %5053 = vmatprep.subr.bf16.mxu1 %v6336_v60  ;;  %v6383_v60 = vcombine.low %v3364_v47, %v3368_v48  ;;  %v6392_v63 = vcombine.high %v3372_v54, %v3376_v56  ;;  %v3419_v47 = vld [vmem:[%s9675_s9 + $0x6d0] sm:$0xff] }
 0x4d0   :  { %v3423_v48 = vld [vmem:[%s9675_s9 + $0x6f0] sm:$0xff] }
 0x4d1   :  { %4972 = vmatpush1.bf16.msra.mxu0 %v6333_v3  ;;  %v3380_v3 = vld [vmem:[%s9675_s9 + $0x598] sm:$0xff] }
 0x4d2   :  { %5054 = vmatpush1.bf16.msra.mxu1 %v6335_v4  ;;  %4973 = vmatprep.subr.bf16.mxu0 %v6342_v7  ;;  %v3384_v4 = vld [vmem:[%s9675_s9 + $0x5b8] sm:$0xff]  ;;  %v6389_v7 = vcombine.low %v3371_v6, %v3375_v52  ;;  %v6438_v6 = vcombine.high %v3419_v47, %v3423_v48 }
 0x4d3   :  { %5055 = vmatprep.subr.bf16.mxu1 %v6344_v62  ;;  %v6391_v62 = vcombine.low %v3372_v54, %v3376_v56  ;;  %v6400_v9 = vcombine.high %v3380_v3, %v3384_v4  ;;  %v3427_v54 = vld [vmem:[%s9675_s9 + $0x710] sm:$0xff] }
 0x4d4   :  { %v3431_v56 = vld [vmem:[%s9675_s9 + $0x730] sm:$0xff] }
 0x4d5   :  { %4974 = vmatpush1.bf16.msra.mxu0 %v6341_v16  ;;  %v3388_v16 = vld [vmem:[%s9675_s9 + $0x5d8] sm:$0xff] }
 0x4d6   :  { %5056 = vmatpush1.bf16.msra.mxu1 %v6343_v19  ;;  %4984 = vmatprep.subr.bf16.mxu0 %v6350_v18  ;;  %v3392_v19 = vld [vmem:[%s9675_s9 + $0x5f8] sm:$0xff]  ;;  %v6397_v18 = vcombine.low %v3379_v1, %v3383_v2  ;;  %v6446_v1 = vcombine.high %v3427_v54, %v3431_v56 }
 0x4d7   :  { %5066 = vmatprep.subr.bf16.mxu1 %v6352_v5  ;;  %v6399_v5 = vcombine.low %v3380_v3, %v3384_v4  ;;  %v6408_v22 = vcombine.high %v3388_v16, %v3392_v19  ;;  %v3435_v3 = vld [vmem:[%s9675_s9 + $0x750] sm:$0xff] }
 0x4d8   :  { %4976 = vmatmul.mubr.bf16.vlgmr.msra.gmra.mrb[24].mxu0 %v8845_v25  ;;  %v3439_v4 = vld [vmem:[%s9675_s9 + $0x770] sm:$0xff] }
 0x4d9   :  { %5058 = vmatmul.mubr.bf16.vlgmr.msra.gmra.mrb[24].mxu1 %v8845_v25  ;;  %4985 = vmatpush1.bf16.msra.mxu0 %v6349_v23  ;;  %v3356_v25 = vld [vmem:[%s9675_s9 + $0x4d8] sm:$0xff]  ;;  %v3395_v23 = vld [vmem:[%s9675_s9 + $0x610] sm:$0xff] }
 0x4da   :  { %5016 = vmatprep.mubr.bf16.mxu0 %v8861_v32  ;;  %5067 = vmatpush1.bf16.msra.mxu1 %v6351_v12  ;;  %v6376_v45 = vcombine.high %v3356_v25, %v3360_v42  ;;  %v6375_v49 = vcombine.low %v3356_v25, %v3360_v42  ;;  %v3400_v12 = vld [vmem:[%s9675_s9 + $0x638] sm:$0xff]  ;;  %v3411_v25 = vld [vmem:[%s9675_s9 + $0x690] sm:$0xff] }
 0x4db   :  { %5098 = vmatprep.mubr.bf16.mxu1 %v8861_v32  ;;  %4986 = vmatprep.subr.bf16.mxu0 %v6358_v29  ;;  %v6365_v32 = vcombine.low %v3347_v30, %v3351_v31  ;;  %v6405_v29 = vcombine.low %v3387_v15, %v3391_v24  ;;  %v6407_v30 = vcombine.low %v3388_v16, %v3392_v19  ;;  %v3415_v42 = vld [vmem:[%s9675_s9 + $0x6b0] sm:$0xff] }
 0x4dc   :  { %5068 = vmatprep.subr.bf16.mxu1 %v6360_v14  ;;  %v6414_v31 = vcombine.high %v3395_v23, %v3399_v26  ;;  %v6416_v14 = vcombine.high %v3396_v27, %v3400_v12  ;;  %v6430_v0 = vcombine.high %v3411_v25, %v3415_v42  ;;  %v6454_v15 = vcombine.high %v3435_v3, %v3439_v4  ;;  %v3443_v16 = vld [vmem:[%s9675_s9 + $0x790] sm:$0xff] }
 0x4dd   :  { %4987 = vmatpush1.bf16.msra.mxu0 %v6357_v36  ;;  %v3404_v36 = vld [vmem:[%s9675_s9 + $0x658] sm:$0xff]  ;;  %v3447_v19 = vld [vmem:[%s9675_s9 + $0x7b0] sm:$0xff] }
 0x4de   :  { %5069 = vmatpush1.bf16.msra.mxu1 %v6359_v57  ;;  %4988 = vmatprep.subr.bf16.mxu0 %v6366_v37  ;;  %v3408_v57 = vld [vmem:[%s9675_s9 + $0x678] sm:$0xff]  ;;  %v6413_v37 = vcombine.low %v3395_v23, %v3399_v26  ;;  %v6462_v23 = vcombine.high %v3443_v16, %v3447_v19 }
 0x4df   :  { %5070 = vmatprep.subr.bf16.mxu1 %v6368_v39  ;;  %v6415_v39 = vcombine.low %v3396_v27, %v3400_v12  ;;  %v6424_v41 = vcombine.high %v3404_v36, %v3408_v57  ;;  %v3451_v27 = vld [vmem:[%s9675_s9 + $0x7d0] sm:$0xff] }
 0x4e0   :  { %v3455_v12 = vld [vmem:[%s9675_s9 + $0x7f0] sm:$0xff] }
 0x4e1   :  { %4989 = vmatpush1.bf16.msra.mxu0 %v6365_v32  ;;  %v3412_v32 = vld [vmem:[%s9675_s9 + $0x698] sm:$0xff] }
 0x4e2   :  { %5071 = vmatpush1.bf16.msra.mxu1 %v6367_v43  ;;  %4990 = vmatprep.subr.bf16.mxu0 %v6374_v44  ;;  %v3416_v43 = vld [vmem:[%s9675_s9 + $0x6b8] sm:$0xff]  ;;  %v6421_v44 = vcombine.low %v3403_v34, %v3407_v35  ;;  %v6470_v34 = vcombine.high %v3451_v27, %v3455_v12 }
 0x4e3   :  { %5072 = vmatprep.subr.bf16.mxu1 %v6376_v45  ;;  %v6423_v45 = vcombine.low %v3404_v36, %v3408_v57  ;;  %v6432_v46 = vcombine.high %v3412_v32, %v3416_v43  ;;  %v6469_v36 = vcombine.low %v3451_v27, %v3455_v12 }
 0x4e5   :  { %4991 = vmatpush1.bf16.msra.mxu0 %v6373_v28  ;;  %v3420_v28 = vld [vmem:[%s9675_s9 + $0x6d8] sm:$0xff] }
 0x4e6   :  { %5073 = vmatpush1.bf16.msra.mxu1 %v6375_v49  ;;  %4992 = vmatprep.subr.bf16.mxu0 %v6382_v50  ;;  %v3424_v49 = vld [vmem:[%s9675_s9 + $0x6f8] sm:$0xff]  ;;  %v6429_v50 = vcombine.low %v3411_v25, %v3415_v42  ;;  %v7193_v25 = vld [vmem:[%s9677_s11 + $0x48] sm:$0xff]  }
 0x4e7   :  { %5074 = vmatprep.subr.bf16.mxu1 %v6384_v51  ;;  %v6431_v51 = vcombine.low %v3412_v32, %v3416_v43  ;;  %v6440_v52 = vcombine.high %v3420_v28, %v3424_v49  ;;  %v7194_v42 = vld [vmem:[%s9677_s11 + $0xc8] sm:$0xff]  }
 0x4e8   :  { %v7195_v32 = vld [vmem:[%s9677_s11 + $0x8] sm:$0xff]  }
 0x4e9   :  { %4993 = vmatpush1.bf16.msra.mxu0 %v6381_v59  ;;  %v3428_v59 = vld [vmem:[%s9675_s9 + $0x718] sm:$0xff]  ;;  %v7196_v43 = vld [vmem:[%s9677_s11 + $0x88] sm:$0xff]  }
 0x4ea   :  { %5075 = vmatpush1.bf16.msra.mxu1 %v6383_v60  ;;  %4994 = vmatprep.subr.bf16.mxu0 %v6390_v61  ;;  %v3432_v60 = vld [vmem:[%s9675_s9 + $0x738] sm:$0xff]  ;;  %v6437_v61 = vcombine.low %v3419_v47, %v3423_v48 }
 0x4eb   :  { %5076 = vmatprep.subr.bf16.mxu1 %v6392_v63  ;;  %v6439_v63 = vcombine.low %v3420_v28, %v3424_v49  ;;  %v6448_v2 = vcombine.high %v3428_v59, %v3432_v60  ;;  %v7202_v47 = vld [vmem:[%s9677_s11 + $0xd8] sm:$0xff]   ;;  %v7205_v49 = vld [vmem:[%s9677_s11 + $0x60] sm:$0xff]  }
 0x4ec   :  { %v7203_v48 = vld [vmem:[%s9677_s11 + $0x18] sm:$0xff]  }
 0x4ed   :  { %4995 = vmatpush1.bf16.msra.mxu0 %v6389_v7  ;;  %v3436_v7 = vld [vmem:[%s9675_s9 + $0x758] sm:$0xff] }
 0x4ee   :  { %5077 = vmatpush1.bf16.msra.mxu1 %v6391_v62  ;;  %4996 = vmatprep.subr.bf16.mxu0 %v6398_v8  ;;  %v3440_v62 = vld [vmem:[%s9675_s9 + $0x778] sm:$0xff]  ;;  %v6445_v8 = vcombine.low %v3427_v54, %v3431_v56  ;;  %v7210_v54 = vld [vmem:[%s9677_s11 + $0xe8] sm:$0xff]  }
 0x4ef   :  { %5078 = vmatprep.subr.bf16.mxu1 %v6400_v9  ;;  %v6447_v9 = vcombine.low %v3428_v59, %v3432_v60  ;;  %v6456_v24 = vcombine.high %v3436_v7, %v3440_v62  ;;  %v7204_v28 = vld [vmem:[%s9677_s11 + $0x98] sm:$0xff]   ;;  %v7211_v56 = vld [vmem:[%s9677_s11 + $0x28] sm:$0xff]   ;;  %v7213_v60 = vld [vmem:[%s9677_s11 + $0x70] sm:$0xff]  }
 0x4f0   :  { %v7212_v59 = vld [vmem:[%s9677_s11 + $0xa8] sm:$0xff]  }
 0x4f1   :  { %4997 = vmatpush1.bf16.msra.mxu0 %v6397_v18  ;;  %v3444_v18 = vld [vmem:[%s9675_s9 + $0x798] sm:$0xff] }
 0x4f2   :  { %5079 = vmatpush1.bf16.msra.mxu1 %v6399_v5  ;;  %4998 = vmatprep.subr.bf16.mxu0 %v6406_v21  ;;  %v3448_v5 = vld [vmem:[%s9675_s9 + $0x7b8] sm:$0xff]  ;;  %v6453_v21 = vcombine.low %v3435_v3, %v3439_v4 }
 0x4f3   :  { %5080 = vmatprep.subr.bf16.mxu1 %v6408_v22  ;;  %v6455_v22 = vcombine.low %v3436_v7, %v3440_v62  ;;  %v6464_v26 = vcombine.high %v3444_v18, %v3448_v5  ;;  %v7218_v3 = vld [vmem:[%s9677_s11 + $0xf8] sm:$0xff]   ;;  %v7221_v62 = vld [vmem:[%s9677_s11 + $0x140] sm:$0xff]  }
 0x4f4   :  { %v7219_v4 = vld [vmem:[%s9677_s11 + $0x38] sm:$0xff]  }
 0x4f5   :  { %4999 = vmatpush1.bf16.msra.mxu0 %v6405_v29  ;;  %v3452_v29 = vld [vmem:[%s9675_s9 + $0x7d8] sm:$0xff] }
 0x4f6   :  { %5081 = vmatpush1.bf16.msra.mxu1 %v6407_v30  ;;  %5000 = vmatprep.subr.bf16.mxu0 %v6414_v31  ;;  %v3456_v30 = vld [vmem:[%s9675_s9 + $0x7f8] sm:$0xff]  ;;  %v6461_v31 = vcombine.low %v3443_v16, %v3447_v19 }
 0x4f7   :  { %5082 = vmatprep.subr.bf16.mxu1 %v6416_v14  ;;  %v6463_v14 = vcombine.low %v3444_v18, %v3448_v5  ;;  %v6472_v35 = vcombine.high %v3452_v29, %v3456_v30  ;;  %v6471_v57 = vcombine.low %v3452_v29, %v3456_v30  ;;  %v7220_v7 = vld [vmem:[%s9677_s11 + $0xb8] sm:$0xff]  }
 0x4f9   :  { %5001 = vmatpush1.bf16.msra.mxu0 %v6413_v37  ;;  %v7189_v37 = vld [vmem:[%s9677_s11 + $0x40] sm:$0xff]  }
 0x4fa   :  { %5083 = vmatpush1.bf16.msra.mxu1 %v6415_v39  ;;  %5002 = vmatprep.subr.bf16.mxu0 %v6422_v40  ;;  %v7190_v39 = vld [vmem:[%s9677_s11 + $0xc0] sm:$0xff]  }
 0x4fb   :  { %5084 = vmatprep.subr.bf16.mxu1 %v6424_v41  ;;  %v7191_v40 = vld [vmem:[%s9677_s11] sm:$0xff]  }
 0x4fc   :  { %v7192_v41 = vld [vmem:[%s9677_s11 + $0x80] sm:$0xff]  }
 0x4fd   :  { %5003 = vmatpush1.bf16.msra.mxu0 %v6421_v44  ;;  %v7197_v44 = vld [vmem:[%s9677_s11 + $0x50] sm:$0xff]  }
 0x4fe   :  { %5085 = vmatpush1.bf16.msra.mxu1 %v6423_v45  ;;  %5004 = vmatprep.subr.bf16.mxu0 %v6430_v0  ;;  %v7199_v45 = vld [vmem:[%s9677_s11 + $0x10] sm:$0xff]  }
 0x4ff   :  { %5086 = vmatprep.subr.bf16.mxu1 %v6432_v46  ;;  %v7200_v0 = vld [vmem:[%s9677_s11 + $0x90] sm:$0xff]   ;;  %v7201_v46 = vld [vmem:[%s9677_s11 + $0x58] sm:$0xff]  }
 0x501   :  { %5005 = vmatpush1.bf16.msra.mxu0 %v6429_v50  ;;  %v7206_v50 = vld [vmem:[%s9677_s11 + $0xe0] sm:$0xff]  }
 0x502   :  { %5087 = vmatpush1.bf16.msra.mxu1 %v6431_v51  ;;  %5006 = vmatprep.subr.bf16.mxu0 %v6438_v6  ;;  %v7207_v51 = vld [vmem:[%s9677_s11 + $0x20] sm:$0xff]  }
 0x503   :  { %5088 = vmatprep.subr.bf16.mxu1 %v6440_v52  ;;  %v7208_v6 = vld [vmem:[%s9677_s11 + $0xa0] sm:$0xff]   ;;  %v7209_v52 = vld [vmem:[%s9677_s11 + $0x68] sm:$0xff]  }
 0x505   :  { %5007 = vmatpush1.bf16.msra.mxu0 %v6437_v61  ;;  %v7214_v61 = vld [vmem:[%s9677_s11 + $0xf0] sm:$0xff]  }
 0x506   :  { %5089 = vmatpush1.bf16.msra.mxu1 %v6439_v63  ;;  %5008 = vmatprep.subr.bf16.mxu0 %v6446_v1  ;;  %v7215_v63 = vld [vmem:[%s9677_s11 + $0x30] sm:$0xff]  }
 0x507   :  { %5090 = vmatprep.subr.bf16.mxu1 %v6448_v2  ;;  %v7216_v1 = vld [vmem:[%s9677_s11 + $0xb0] sm:$0xff]   ;;  %v7217_v2 = vld [vmem:[%s9677_s11 + $0x78] sm:$0xff]  }
 0x509   :  { %5009 = vmatpush1.bf16.msra.mxu0 %v6445_v8  ;;  %v7222_v8 = vld [vmem:[%s9677_s11 + $0x1c0] sm:$0xff]  }
 0x50a   :  { %5091 = vmatpush1.bf16.msra.mxu1 %v6447_v9  ;;  %5010 = vmatprep.subr.bf16.mxu0 %v6454_v15  ;;  %v9527_v9 = vld [vmem:[%s9676_s10] sm:$0xff] }
 0x50b   :  { %5092 = vmatprep.subr.bf16.mxu1 %v6456_v24  ;;  %v3462_v15 = vrot.slane %v9527_v9, %v7785_v11  ;;  %v3470_v24 = vrot.slane %v9527_v9, %v7959_v33  ;;  %v3466_v16 = vrot.slane %v9527_v9, %v7793_v13  ;;  %v3474_v19 = vrot.slane %v9527_v9, %v7800_v17  ;;  %v7223_v17 = vld [vmem:[%s9677_s11 + $0x100] sm:$0xff]  }
 0x50d   :  { %5011 = vmatpush1.bf16.msra.mxu0 %v6453_v21 }
 0x50e   :  { %5093 = vmatpush1.bf16.msra.mxu1 %v6455_v22  ;;  %5012 = vmatprep.subr.bf16.mxu0 %v6462_v23 }
 0x50f   :  { %5094 = vmatprep.subr.bf16.mxu1 %v6464_v26 }
 0x511   :  { %5013 = vmatpush1.bf16.msra.mxu0 %v6461_v31 }
 0x512   :  { %5095 = vmatpush1.bf16.msra.mxu1 %v6463_v14  ;;  %5014 = vmatprep.subr.bf16.mxu0 %v6470_v34 }
 0x513   :  { %5096 = vmatprep.subr.bf16.mxu1 %v6472_v35 }
 0x515   :  { %5015 = vmatpush1.bf16.msra.mxu0 %v6469_v36 }
 0x516   :  { %5097 = vmatpush1.bf16.msra.mxu1 %v6471_v57  ;;  %6582 = vmatprep.subr.bf16.mxu0 %v7189_v37  ;;  %v7224_v57 = vld [vmem:[%s9677_s11 + $0x180] sm:$0xff]  }
 0x517   :  { %6604 = vmatprep.subr.bf16.mxu1 %v7190_v39 }
 0x518   :  { %5017 = vmatmul.mubr.bf16.vlgmr.msra.gmra.mrb[24].mxu0 %v9050_v55 }
 0x519   :  { %5099 = vmatmul.mubr.bf16.vlgmr.msra.gmra.mrb[24].mxu1 %v9050_v55  ;;  %6583 = vmatpush3.bf16.msra.mxu0 %v7191_v40  ;;  %v7198_v55 = vld [vmem:[%s9677_s11 + $0xd0] sm:$0xff]   ;;  %v7225_v40 = vld [vmem:[%s9677_s11 + $0x148] sm:$0xff]  }
 0x51a   :  { %6605 = vmatpush3.bf16.msra.mxu1 %v7192_v41  ;;  %6584 = vmatprep.subr.bf16.mxu0 %v7193_v25  ;;  %v7226_v41 = vld [vmem:[%s9677_s11 + $0x1c8] sm:$0xff]  }
 0x51b   :  { %6606 = vmatprep.subr.bf16.mxu1 %v7194_v42  ;;  %v7227_v25 = vld [vmem:[%s9677_s11 + $0x108] sm:$0xff]  }
 0x51c   :  { %v7228_v42 = vld [vmem:[%s9677_s11 + $0x188] sm:$0xff]  }
 0x51d   :  { %6585 = vmatpush3.bf16.msra.mxu0 %v7195_v32  ;;  %v7229_v32 = vld [vmem:[%s9677_s11 + $0x150] sm:$0xff]  }
 0x51e   :  { %6607 = vmatpush3.bf16.msra.mxu1 %v7196_v43  ;;  %6586 = vmatprep.subr.bf16.mxu0 %v7197_v44  ;;  %v7230_v43 = vld [vmem:[%s9677_s11 + $0x1d0] sm:$0xff]  }
 0x51f   :  { %6608 = vmatprep.subr.bf16.mxu1 %v7198_v55  ;;  %v7231_v44 = vld [vmem:[%s9677_s11 + $0x110] sm:$0xff]  }
 0x520   :  { %v7232_v55 = vld [vmem:[%s9677_s11 + $0x190] sm:$0xff]  }
 0x521   :  { %6587 = vmatpush3.bf16.msra.mxu0 %v7199_v45  ;;  %v7233_v45 = vld [vmem:[%s9677_s11 + $0x158] sm:$0xff]  }
 0x522   :  { %6609 = vmatpush3.bf16.msra.mxu1 %v7200_v0  ;;  %6588 = vmatprep.subr.bf16.mxu0 %v7201_v46  ;;  %v7234_v0 = vld [vmem:[%s9677_s11 + $0x1d8] sm:$0xff]  }
 0x523   :  { %6610 = vmatprep.subr.bf16.mxu1 %v7202_v47  ;;  %v7235_v46 = vld [vmem:[%s9677_s11 + $0x118] sm:$0xff]  }
 0x524   :  { %v7236_v47 = vld [vmem:[%s9677_s11 + $0x198] sm:$0xff]  }
 0x525   :  { %6589 = vmatpush3.bf16.msra.mxu0 %v7203_v48  ;;  %v7237_v48 = vld [vmem:[%s9677_s11 + $0x160] sm:$0xff]  }
 0x526   :  { %6611 = vmatpush3.bf16.msra.mxu1 %v7204_v28  ;;  %6590 = vmatprep.subr.bf16.mxu0 %v7205_v49  ;;  %v7238_v28 = vld [vmem:[%s9677_s11 + $0x1e0] sm:$0xff]  }
 0x527   :  { %6612 = vmatprep.subr.bf16.mxu1 %v7206_v50  ;;  %v7239_v49 = vld [vmem:[%s9677_s11 + $0x120] sm:$0xff]  }
 0x528   :  { %v7240_v50 = vld [vmem:[%s9677_s11 + $0x1a0] sm:$0xff]  }
 0x529   :  { %6591 = vmatpush3.bf16.msra.mxu0 %v7207_v51  ;;  %v7241_v51 = vld [vmem:[%s9677_s11 + $0x168] sm:$0xff]  }
 0x52a   :  { %6613 = vmatpush3.bf16.msra.mxu1 %v7208_v6  ;;  %6592 = vmatprep.subr.bf16.mxu0 %v7209_v52  ;;  %v7242_v6 = vld [vmem:[%s9677_s11 + $0x1e8] sm:$0xff]  }
 0x52b   :  { %6614 = vmatprep.subr.bf16.mxu1 %v7210_v54  ;;  %v7243_v52 = vld [vmem:[%s9677_s11 + $0x128] sm:$0xff]  }
 0x52c   :  { %v7244_v54 = vld [vmem:[%s9677_s11 + $0x1a8] sm:$0xff]  }
 0x52d   :  { %6593 = vmatpush3.bf16.msra.mxu0 %v7211_v56  ;;  %v7245_v56 = vld [vmem:[%s9677_s11 + $0x170] sm:$0xff]  }
 0x52e   :  { %6615 = vmatpush3.bf16.msra.mxu1 %v7212_v59  ;;  %6594 = vmatprep.subr.bf16.mxu0 %v7213_v60  ;;  %v7246_v59 = vld [vmem:[%s9677_s11 + $0x1f0] sm:$0xff]  }
 0x52f   :  { %6616 = vmatprep.subr.bf16.mxu1 %v7214_v61  ;;  %v7247_v60 = vld [vmem:[%s9677_s11 + $0x130] sm:$0xff]  }
 0x530   :  { %v7248_v61 = vld [vmem:[%s9677_s11 + $0x1b0] sm:$0xff]  }
 0x531   :  { %6595 = vmatpush3.bf16.msra.mxu0 %v7215_v63  ;;  %v7249_v63 = vld [vmem:[%s9677_s11 + $0x178] sm:$0xff]  }
 0x532   :  { %6617 = vmatpush3.bf16.msra.mxu1 %v7216_v1  ;;  %6596 = vmatprep.subr.bf16.mxu0 %v7217_v2  ;;  %v7250_v1 = vld [vmem:[%s9677_s11 + $0x1f8] sm:$0xff]  }
 0x533   :  { %6618 = vmatprep.subr.bf16.mxu1 %v7218_v3  ;;  %v7251_v2 = vld [vmem:[%s9677_s11 + $0x138] sm:$0xff]  }
 0x534   :  { %v7252_v3 = vld [vmem:[%s9677_s11 + $0x1b8] sm:$0xff]  }
 0x535   :  { %6597 = vmatpush3.bf16.msra.mxu0 %v7219_v4  ;;  %v3478_v4 = vrot.slane %v9527_v9, %v135_v53 }
 0x536   :  { %6619 = vmatpush3.bf16.msra.mxu1 %v7220_v7  ;;  %6626 = vmatprep.subr.bf16.mxu0 %v7221_v62  ;;  %v3486_v7 = vrot.slane %v9527_v9, %v143_v20  ;;  %v3482_v62 = vrot.slane %v9527_v9, %v139_v38 }
 0x537   :  { %6648 = vmatprep.subr.bf16.mxu1 %v7222_v8  ;;  %v3490_v8 = vrot.slane %v9527_v9, %v147_v58 }
 0x56b   :  { %v4854_v18 = vpop.f32.mrb[20].mxu0  ;;  %v4936_v5 = vpop.f32.mrb[20].mxu1 }
 0x56c   :  { %v6674_v21 = vadd.f32 %v4854_v18, %v3462_v15  ;;  %v6676_v22 = vadd.f32 %v4936_v5, %v3470_v24  ;;  %v4856_v23 = vpop.f32.mrb[21].mxu0  ;;  %v4938_v26 = vpop.f32.mrb[21].mxu1 }
 0x56d   :  { %v6675_v27 = vadd.f32 %v4856_v23, %v3466_v16  ;;  %v6677_v12 = vadd.f32 %v4938_v26, %v3474_v19  ;;  %v4858_v29 = vpop.f32.mrb[22].mxu0  ;;  %v4940_v30 = vpop.f32.mrb[22].mxu1 }
 0x56e   :  { %v5107_v11 = vmax.f32 %v6674_v21, 0.0  ;;  %v5109_v31 = vmax.f32 %v6676_v22, 0.0  ;;  %v4859_v14 = vpop.f32.mrb[23].mxu0  ;;  %v4941_v33 = vpop.f32.mrb[23].mxu1 }
 0x56f   :  { %v5108_v34 = vmax.f32 %v6675_v27, 0.0  ;;  %v5110_v35 = vmax.f32 %v6677_v12, 0.0  ;;  %v6473_v14 = vld [vmem:[%s9678_s12] ss:$0 sm:$0xff] }
 0x570   :  { %v5115_v37 = vpack.c.bf16 %v5107_v11, %v5107_v11  ;;  %v5117_v39 = vpack.c.bf16 %v5109_v31, %v5109_v31 }
 0x571   :  { %v5116_v13 = vpack.c.bf16 %v5108_v34, %v5108_v34  ;;  %v5118_v36 = vpack.c.bf16 %v5110_v35, %v5110_v35 }
 0x573   :  { %5674 = vmatprep.mubr.bf16.mxu0 %v5116_v13  ;;  %5714 = vmatprep.mubr.bf16.mxu1 %v5118_v36 }
 0x574   :  { %5675 = vmatmul.mubr.bf16.vlgmr.msra.gmra.mrb[28].mxu0 %v5115_v37  ;;  %5715 = vmatmul.mubr.bf16.vlgmr.msra.gmra.mrb[28].mxu1 %v5117_v39 }
 0x575   :  { %6627 = vmatpush3.bf16.msra.mxu0 %v7223_v17  ;;  %6649 = vmatpush3.bf16.msra.mxu1 %v7224_v57 }
 0x576   :  { %6628 = vmatprep.subr.bf16.mxu0 %v7225_v40  ;;  %6650 = vmatprep.subr.bf16.mxu1 %v7226_v41 }
 0x579   :  { %6629 = vmatpush3.bf16.msra.mxu0 %v7227_v25  ;;  %6651 = vmatpush3.bf16.msra.mxu1 %v7228_v42 }
 0x57a   :  { %6630 = vmatprep.subr.bf16.mxu0 %v7229_v32  ;;  %6652 = vmatprep.subr.bf16.mxu1 %v7230_v43 }
 0x57d   :  { %6631 = vmatpush3.bf16.msra.mxu0 %v7231_v44  ;;  %6653 = vmatpush3.bf16.msra.mxu1 %v7232_v55 }
 0x57e   :  { %6632 = vmatprep.subr.bf16.mxu0 %v7233_v45  ;;  %6654 = vmatprep.subr.bf16.mxu1 %v7234_v0 }
 0x581   :  { %6633 = vmatpush3.bf16.msra.mxu0 %v7235_v46  ;;  %6655 = vmatpush3.bf16.msra.mxu1 %v7236_v47 }
 0x582   :  { %6634 = vmatprep.subr.bf16.mxu0 %v7237_v48  ;;  %6656 = vmatprep.subr.bf16.mxu1 %v7238_v28 }
 0x585   :  { %6635 = vmatpush3.bf16.msra.mxu0 %v7239_v49  ;;  %6657 = vmatpush3.bf16.msra.mxu1 %v7240_v50 }
 0x586   :  { %6636 = vmatprep.subr.bf16.mxu0 %v7241_v51  ;;  %6658 = vmatprep.subr.bf16.mxu1 %v7242_v6 }
 0x589   :  { %6637 = vmatpush3.bf16.msra.mxu0 %v7243_v52  ;;  %6659 = vmatpush3.bf16.msra.mxu1 %v7244_v54 }
 0x58a   :  { %6638 = vmatprep.subr.bf16.mxu0 %v7245_v56  ;;  %6660 = vmatprep.subr.bf16.mxu1 %v7246_v59 }
 0x58d   :  { %6639 = vmatpush3.bf16.msra.mxu0 %v7247_v60  ;;  %6661 = vmatpush3.bf16.msra.mxu1 %v7248_v61 }
 0x58e   :  { %6640 = vmatprep.subr.bf16.mxu0 %v7249_v63  ;;  %6662 = vmatprep.subr.bf16.mxu1 %v7250_v1 }
 0x591   :  { %6641 = vmatpush3.bf16.msra.mxu0 %v7251_v2  ;;  %6663 = vmatpush3.bf16.msra.mxu1 %v7252_v3 }
 0x5eb   :  { %v5018_v15 = vpop.f32.mrb[24].mxu0 }
 0x5ec   :  { %v6678_v24 = vadd.f32 %v5018_v15, %v3478_v4  ;;  %v5100_v16 = vpop.f32.mrb[24].mxu1  ;;  %v5020_v19 = vpop.f32.mrb[25].mxu0 }
 0x5ed   :  { %v6680_v18 = vadd.f32 %v5100_v16, %v3486_v7  ;;  %v6679_v5 = vadd.f32 %v5020_v19, %v3482_v62  ;;  %v5102_v21 = vpop.f32.mrb[25].mxu1  ;;  %v5022_v53 = vpop.f32.mrb[26].mxu0 }
 0x5ee   :  { %v5111_v22 = vmax.f32 %v6678_v24, 0.0  ;;  %v6681_v23 = vadd.f32 %v5102_v21, %v3490_v8  ;;  %v5104_v26 = vpop.f32.mrb[26].mxu1  ;;  %v5023_v20 = vpop.f32.mrb[27].mxu0 }
 0x5ef   :  { %v5113_v27 = vmax.f32 %v6680_v18, 0.0  ;;  %v5112_v12 = vmax.f32 %v6679_v5, 0.0  ;;  %v5105_v29 = vpop.f32.mrb[27].mxu1 }
 0x5f0   :  { %v5114_v38 = vmax.f32 %v6681_v23, 0.0  ;;  %v5119_v10 = vpack.c.bf16 %v5111_v22, %v5111_v22 }
 0x5f1   :  { %v5120_v30 = vpack.c.bf16 %v5112_v12, %v5112_v12  ;;  %v5121_v58 = vpack.c.bf16 %v5113_v27, %v5113_v27 }
 0x5f2   :  { %v5122_v11 = vpack.c.bf16 %v5114_v38, %v5114_v38 }
 0x5f3   :  { %5754 = vmatprep.mubr.bf16.mxu0 %v5120_v30 }
 0x5f4   :  { %5794 = vmatprep.mubr.bf16.mxu1 %v5122_v11  ;;  %5755 = vmatmul.mubr.bf16.vlgmr.msra.gmra.mrb[32].mxu0 %v5119_v10 }
 0x5f5   :  { %5795 = vmatmul.mubr.bf16.vlgmr.msra.gmra.mrb[32].mxu1 %v5121_v58 }
 0x647   :  { %v6598_v9 = vpop.f32.mrb[28].mxu0  ;;  %v6620_v31 = vpop.f32.mrb[28].mxu1 }
 0x648   :  { %v6599_v33 = vpop.f32.mrb[29].mxu0  ;;  %v6621_v34 = vpop.f32.mrb[29].mxu1 }
 0x649   :  { %v6600_v35 = vadd.f32 %v6599_v33, %v6598_v9  ;;  %v6622_v13 = vadd.f32 %v6621_v34, %v6620_v31  ;;  %v6601_v36 = vpop.f32.mrb[30].mxu0  ;;  %v6623_v17 = vpop.f32.mrb[30].mxu1 }
 0x64a   :  { %v6602_v57 = vpop.f32.mrb[31].mxu0  ;;  %v6624_v37 = vpop.f32.mrb[31].mxu1 }
 0x64b   :  { %v5677_v39 = vadd.f32 %v6600_v35, %v6473_v14 }
 0x64d   :  { %v5717_v40 = vadd.f32 %v6622_v13, %v5677_v39 }
 0x64e   :  { %7264 = shalt.err (!%p7261_p4)
}
 0x64f   :  { %s7265_s18 = scalar_lea.hbm %s9679_s13, 128 }
 0x650   :  { %p7266_p5 = scmp.ne.s32.totalorder %s9679_s13, %s7265_s18  ;;  %p7269_p6 = scmp.lt.u32.totalorder %s7265_s18, %s9679_s13 }
 0x652   :  { %p7271_p7 = pnand %p7269_p6, %p7266_p5 }
 0x654   :  { %7274 = shalt.err (!%p7271_p7)
}
 0x655   :  { %5813 = dma.vmem_to_hbm [thread:$0]  %s5811_s8, 128, %s9679_s13, [#allocation3]  }
 0x656   :  { %s7303_s3 = smov [#allocation4]  }
 0x657   :  { %s5820_s24 = sshll.u32 %s7303_s3, 4  ;;  %s5821_s24 = int_to_ptr.vmem [resolvable:$true] %s5820_s24 }
 0x658   :  { %s7275_s4 = scalar_lea.vmem %s5821_s24, 128  ;;  %p7280_p9 = scmp.lt.s32.totalorder %s5821_s24, %s5821_s24 }
 0x659   :  { %p7276_p8 = scmp.ne.s32.totalorder %s5821_s24, %s7275_s4  ;;  %p7281_p10 = scmp.lt.s32.totalorder %s7275_s4, %s7275_s4 }
 0x65b   :  { %p7282_p11 = por %p7281_p10, %p7280_p9 }
 0x65d   :  { %p7283_p12 = pnand %p7282_p11, %p7276_p8 }
 0x6c7   :  { %v6642_v41 = vpop.f32.mrb[32].mxu0 }
 0x6c8   :  { %v6664_v25 = vpop.f32.mrb[32].mxu1  ;;  %v6643_v42 = vpop.f32.mrb[33].mxu0 }
 0x6c9   :  { %v6644_v32 = vadd.f32 %v6643_v42, %v6642_v41  ;;  %v6665_v43 = vpop.f32.mrb[33].mxu1  ;;  %v6645_v44 = vpop.f32.mrb[34].mxu0 }
 0x6ca   :  { %v6666_v55 = vadd.f32 %v6665_v43, %v6664_v25  ;;  %v6667_v45 = vpop.f32.mrb[34].mxu1  ;;  %v6646_v0 = vpop.f32.mrb[35].mxu0 }
 0x6cb   :  { %v5757_v46 = vadd.f32 %v6644_v32, %v5717_v40  ;;  %v6668_v47 = vpop.f32.mrb[35].mxu1 }
 0x6cd   :  { %v5797_v48 = vadd.f32 %v6666_v55, %v5757_v46 }
 0x6cf   :  { %v5802_v28 = vmax.f32 %v5797_v48, 0.0 }
 0x6d1   :  { %5803 = vst [vmem:[#allocation4] sm:$0xff] %v5802_v28 }
 0x6d2   :  { %7286 = shalt.err (!%p7283_p12)
}
 0x6d3   :  { %s7287_s5 = scalar_lea.hbm %s9680_s14, 128 }
 0x6d4   :  { %p7288_p13 = scmp.ne.s32.totalorder %s9680_s14, %s7287_s5  ;;  %p7291_p0 = scmp.lt.u32.totalorder %s7287_s5, %s9680_s14 }
 0x6d6   :  { %p7293_p1 = pnand %p7291_p0, %p7288_p13 }
 0x6d8   :  { %7296 = shalt.err (!%p7293_p1)
}
 0x6d9   :  { %5823 = dma.vmem_to_hbm [thread:$0]  %s5821_s24, 128, %s9680_s14, [#allocation5]  }
 0x6da   :  { %7297 = dma.done.wait [#allocation3], 128  }
 0x6db   :  { %7298 = vsyncadd [#allocation3], 4294967168 }
 0x6dc   :  { %7299 = dma.done.wait [#allocation5], 128  }
 0x6dd   :  { %7300 = vsyncadd [#allocation5], 4294967168 }
 0x6de   :  { %5830 = vsyncpa [#allocation3], 1 }
 0x6df   :  { %5831 = vsyncpa [#allocation5], 1 }

</bundles_post_ra>
